<compile_context>
chip_gen: v5e
topology: v5e:2x2
jax: 0.10.0
libtpu: 0.0.40
codegen_flags: <defaults>
</compile_context>

<pallas_src>
import functools
import math

import jax
import jax.numpy as jnp
from jax.experimental import pallas as pl
from jax.experimental.pallas import tpu as pltpu


# ----------------------------- packing helpers -----------------------------

def _round_up(x, m):
    return (x + m - 1) // m * m


def _lcm(a, b):
    return a * b // math.gcd(a, b)


def _cpad(c):
    # pad a channel count to a power of two (<=128) or a multiple of 128
    if c >= 128:
        return _round_up(c, 128)
    return 1 << (c - 1).bit_length()


def _group(cp):
    # packing factor g such that g*cp is a multiple of 128 (lane width)
    return _lcm(cp, 128) // cp


def _group_for(*cps):
    g = 1
    for cp in cps:
        g = _lcm(g, _group(cp))
    return g


def _choose_tr(row_bytes, r0):
    # row-tile: multiple of 16 rows, ~4 MiB of operands per grid step
    # (x2 double buffering ~8 MiB), capped by the (padded) number of rows.
    tr = (4 * 1024 * 1024) // (2 * max(row_bytes, 1))
    tr = max(16, min(512, tr))
    tr -= tr % 16
    return min(tr, _round_up(max(r0, 1), 16))


def _pack2d(a, g, cp, rp):
    # (P, C) -> (rp, g*cp): zero-pad channels to cp and rows to rp*g.
    P, C = a.shape
    pr, pc = rp * g - P, cp - C
    if pr or pc:
        a = jnp.pad(a, ((0, pr), (0, pc)))
    return a.reshape(rp, g * cp)


def _unpack(y, cp, P, C):
    return y.reshape(-1, cp)[:P, :C]


def _tile_vec(v, g):
    # (cp,) -> (1, g*cp), matching the packed lane layout [pix0 c0..c_{cp-1}, ...]
    return jnp.tile(v, g).reshape(1, -1)


def _tile_rows(w, g):
    # (T, cp) -> (T, 1, g*cp)
    return jnp.tile(w, (1, g)).reshape(w.shape[0], 1, -1)


def _block_diag(w, g):
    # (cpi, cpo) -> (g*cpi, g*cpo) block diagonal (lane-dense 1x1 conv)
    return jnp.kron(jnp.eye(g, dtype=w.dtype), w)


_CPARAMS = pltpu.CompilerParams(
    dimension_semantics=("parallel",),         # shard the row grid across TCs (v7x)
    vmem_limit_bytes=32 * 1024 * 1024,
)


# ----------------------------- Pallas kernels -----------------------------

def _pw_kernel(x_ref, w_ref, b_ref, o_ref, *, relu):
    # 1x1 conv as block-diagonal matmul (bf16 in, f32 accumulate).
    y = jnp.dot(x_ref[...], w_ref[...], preferred_element_type=jnp.float32)
    y = y + b_ref[...]
    if relu:
        y = jnp.maximum(y, 0.0)
    o_ref[...] = y


def _spark_kernel(x_ref, w1_ref, b1_ref, w2_ref, b2_ref, o1_ref, o2_ref, *, ntaps):
    # fused (optional 2x2 avgpool) + squeeze (1x1+BN+relu) + expand_1x1 (1x1+BN+relu)
    x = x_ref[0]
    for t in range(1, ntaps):
        x = x + x_ref[t]
    y1 = jnp.dot(x, w1_ref[...], preferred_element_type=jnp.float32) + b1_ref[...]
    y1 = jnp.maximum(y1, 0.0)
    o1_ref[...] = y1
    y2 = jnp.dot(y1.astype(jnp.bfloat16), w2_ref[...],
                 preferred_element_type=jnp.float32) + b2_ref[...]
    o2_ref[...] = jnp.maximum(y2, 0.0)


def _dwblock_kernel(t_ref, mw_ref, w13_ref, b13_ref, w31c_ref, b31_ref,
                    wpw_ref, bpw_ref, o_ref):
    # Fused DwConv2d (k=3): (1,3) dw conv + bias + relu -> (3,1) dw conv with
    # row-validity pre-multiplied into its (folded) weights + relu -> 1x1 conv
    # (block diag, bf16 MXU) + folded BN + relu.
    # t_ref: (9, TR, Lin) taps (dy major, dx minor); mw_ref: (2, TR, Lin)
    # row-masked folded (3,1) weights for dy=0 and dy=2; dy=1 weight is constant.
    w31 = (mw_ref[0], w31c_ref[...], mw_ref[1])
    acc = None
    for dy in range(3):
        t = (t_ref[3 * dy + 0] * w13_ref[0] + t_ref[3 * dy + 1] * w13_ref[1]
             + t_ref[3 * dy + 2] * w13_ref[2] + b13_ref[...])
        c = jnp.maximum(t, 0.0) * w31[dy]
        acc = c if acc is None else acc + c
    y = jnp.maximum(acc + b31_ref[...], 0.0)
    z = jnp.dot(y.astype(jnp.bfloat16), wpw_ref[...],
                preferred_element_type=jnp.float32) + bpw_ref[...]
    o_ref[...] = jnp.maximum(z, 0.0)


def _dw_kernel(t_ref, w_ref, b_ref, o_ref, *, ntaps, relu):
    # depthwise MAC over a few taps; BN scale folded into w, shift into b.
    acc = t_ref[0] * w_ref[0]
    for t in range(1, ntaps):
        acc = acc + t_ref[t] * w_ref[t]
    y = acc + b_ref[...]
    if relu:
        y = jnp.maximum(y, 0.0)
    o_ref[...] = y


def _bilerp_kernel(a_ref, b_ref, c_ref, d_ref, fh_ref, fw_ref, o_ref):
    # fused 2-D bilinear (4 taps); the (1-f) weights are derived in-kernel.
    fw = fw_ref[...]
    top = a_ref[...] + fw * (b_ref[...] - a_ref[...])
    bot = c_ref[...] + fw * (d_ref[...] - c_ref[...])
    o_ref[...] = top + fh_ref[...] * (bot - top)


# ----------------------------- kernel wrappers -----------------------------

def conv1x1(x, lp, relu, keep_pad=False):
    N, H, W, Cin = x.shape
    g, cpi, cout = lp['g'], lp['cpi'], lp['cout']
    Lin, Lout = g * cpi, lp['w'].shape[1]
    cpo = Lout // g
    P = N * H * W
    r0 = pl.cdiv(P, g)
    tr = _choose_tr(Lin * 2 + Lout * 4, r0)
    rp = _round_up(max(r0, 1), tr)
    xp = _pack2d(x.reshape(P, Cin), g, cpi, rp).astype(jnp.bfloat16)
    out = pl.pallas_call(
        functools.partial(_pw_kernel, relu=relu),
        grid=(rp // tr,),
        in_specs=[pl.BlockSpec((tr, Lin), lambda i: (i, 0)),
                  pl.BlockSpec((Lin, Lout), lambda i: (0, 0)),
                  pl.BlockSpec((1, Lout), lambda i: (0, 0))],
        out_specs=pl.BlockSpec((tr, Lout), lambda i: (i, 0)),
        out_shape=jax.ShapeDtypeStruct((rp, Lout), jnp.float32),
        compiler_params=_CPARAMS,
    )(xp, lp['w'], lp['b'])
    co = cpo if keep_pad else cout
    return _unpack(out, cpo, P, co).reshape(N, H, W, co)


def spark_head(x, lp, pool):
    # fused [optional avgpool 2x2] + squeeze + expand_1x1; returns (squeeze, expand_1x1).
    N, H, W, Cin = x.shape
    g, cpi, c1, c2 = lp['g'], lp['cpi'], lp['c1'], lp['c2']
    Lin = g * cpi
    L1, L2 = lp['w1'].shape[1], lp['w2'].shape[1]
    if pool:
        Ho, Wo = H // 2, W // 2
        taps = [x[:, dy::2, dx::2, :][:, :Ho, :Wo, :].reshape(-1, Cin)
                for dy in range(2) for dx in range(2)]
    else:
        Ho, Wo = H, W
        taps = [x.reshape(-1, Cin)]
    T = len(taps)
    P = N * Ho * Wo
    r0 = pl.cdiv(P, g)
    tr = _choose_tr(T * Lin * 2 + (L1 + L2) * 4, r0)
    rp = _round_up(max(r0, 1), tr)
    tp = jnp.stack([_pack2d(t, g, cpi, rp) for t in taps], 0).astype(jnp.bfloat16)
    o1, o2 = pl.pallas_call(
        functools.partial(_spark_kernel, ntaps=T),
        grid=(rp // tr,),
        in_specs=[pl.BlockSpec((T, tr, Lin), lambda i: (0, i, 0)),
                  pl.BlockSpec((Lin, L1), lambda i: (0, 0)),
                  pl.BlockSpec((1, L1), lambda i: (0, 0)),
                  pl.BlockSpec((L1, L2), lambda i: (0, 0)),
                  pl.BlockSpec((1, L2), lambda i: (0, 0))],
        out_specs=(pl.BlockSpec((tr, L1), lambda i: (i, 0)),
                   pl.BlockSpec((tr, L2), lambda i: (i, 0))),
        out_shape=(jax.ShapeDtypeStruct((rp, L1), jnp.float32),
                   jax.ShapeDtypeStruct((rp, L2), jnp.float32)),
        compiler_params=_CPARAMS,
    )(tp, lp['w1'], lp['b1'], lp['w2'], lp['b2'])
    sq = _unpack(o1, L1 // g, P, c1).reshape(N, Ho, Wo, c1)
    a = _unpack(o2, L2 // g, P, c2).reshape(N, Ho, Wo, c2)
    return sq, a


def dwconv2d_block(x, lp, stride):
    # Fused DwConv2d block (stride applies to BOTH separable convs, as in the
    # reference nn.Sequential).  The composite output pixel only depends on a
    # 3x3 strided input neighbourhood -> gather 9 taps; the (3,1) conv's H
    # zero-padding is handled by row-masked folded weights for dy=0/2.
    N, H, W, Cin = x.shape
    s = stride
    g, cpi, cout = lp['g'], lp['cpi'], lp['cout']
    Lin, Lout = g * cpi, lp['wpw'].shape[1]
    cpo = Lout // g
    Ho, Wo = (H - 1) // s + 1, (W - 1) // s + 1          # after (1,3) conv
    Ho2, Wo2 = (Ho - 1) // s + 1, (Wo - 1) // s + 1      # after (3,1) conv
    P = N * Ho2 * Wo2
    r0 = pl.cdiv(P, g)
    tr = _choose_tr(11 * Lin * 4 + Lout * 4, r0)
    rp = _round_up(max(r0, 1), tr)

    if Cin != cpi:
        x = jnp.pad(x, ((0, 0), (0, 0), (0, 0), (0, cpi - Cin)))
    xpad = jnp.pad(x, ((0, 0), (0, 0), (1, 1), (0, 0)))  # W pad of the first conv
    h2 = jnp.arange(Ho2)
    taps, valid = [], {}
    for dy in range(3):
        h1 = h2 * s + dy - 1                             # intermediate row index
        valid[dy] = ((h1 >= 0) & (h1 < Ho)).astype(jnp.float32)
        rows = jnp.take(xpad, jnp.clip(h1, 0, Ho - 1) * s, axis=1)  # (N,Ho2,W+2,cpi)
        for dx in range(3):
            t = rows[:, :, dx::s * s, :][:, :, :Wo2, :]
            taps.append(_pack2d(t.reshape(P, cpi), g, cpi, rp))
    taps = jnp.stack(taps, 0)                            # (9, rp, Lin)
    mw = []
    for dy in (0, 2):                                    # dy=1 is always valid
        v = jnp.broadcast_to(valid[dy][None, :, None, None],
                             (N, Ho2, Wo2, 1)).reshape(P, 1)
        mw.append(_pack2d(v * lp['w31'][dy][None, :], g, cpi, rp))
    mw = jnp.stack(mw, 0)                                # (2, rp, Lin)

    out = pl.pallas_call(
        _dwblock_kernel,
        grid=(rp // tr,),
        in_specs=[
            pl.BlockSpec((9, tr, Lin), lambda i: (0, i, 0)),
            pl.BlockSpec((2, tr, Lin), lambda i: (0, i, 0)),
            pl.BlockSpec((3, 1, Lin), lambda i: (0, 0, 0)),
            pl.BlockSpec((1, Lin), lambda i: (0, 0)),
            pl.BlockSpec((1, Lin), lambda i: (0, 0)),
            pl.BlockSpec((1, Lin), lambda i: (0, 0)),
            pl.BlockSpec((Lin, Lout), lambda i: (0, 0)),
            pl.BlockSpec((1, Lout), lambda i: (0, 0)),
        ],
        out_specs=pl.BlockSpec((tr, Lout), lambda i: (i, 0)),
        out_shape=jax.ShapeDtypeStruct((rp, Lout), jnp.float32),
        compiler_params=_CPARAMS,
    )(taps, mw, lp['w13'], lp['b13'], lp['w31c'], lp['b31'], lp['wpw'], lp['bpw'])
    return _unpack(out, cpo, P, cout).reshape(N, Ho2, Wo2, cout)


def _dw_mac(taps, w, shift, relu):
    # taps: list of (P, C) f32; w: (T, C) folded; shift: (C,)
    T = len(taps)
    P, C = taps[0].shape
    cp = _cpad(C)
    g = 128 // cp if cp <= 128 else 1
    L = g * cp
    r0 = pl.cdiv(P, g)
    tr = _choose_tr((T + 1) * L * 4, r0)
    rp = _round_up(max(r0, 1), tr)
    tp = jnp.stack([_pack2d(t, g, cp, rp) for t in taps], 0)
    wt = _tile_rows(jnp.pad(w, ((0, 0), (0, cp - C))), g)
    sh = _tile_vec(jnp.pad(shift, (0, cp - C)), g)
    out = pl.pallas_call(
        functools.partial(_dw_kernel, ntaps=T, relu=relu),
        grid=(rp // tr,),
        in_specs=[pl.BlockSpec((T, tr, L), lambda i: (0, i, 0)),
                  pl.BlockSpec((T, 1, L), lambda i: (0, 0, 0)),
                  pl.BlockSpec((1, L), lambda i: (0, 0))],
        out_specs=pl.BlockSpec((tr, L), lambda i: (i, 0)),
        out_shape=jax.ShapeDtypeStruct((rp, L), jnp.float32),
        compiler_params=_CPARAMS,
    )(tp, wt, sh)
    return _unpack(out, cp, P, C)


# ----------------------------- layer ops (NHWC) -----------------------------

def dw_convT_1x3(x, w, shift):
    # depthwise ConvTranspose2d k=(1,3), stride 2, padding (0,1), BN folded.
    # Parity decomposition (no dilated-zeros intermediate):
    #   even rows, even cols: x*w1 ; even rows, odd cols: x[j]*w2 + x[j+1]*w0 ;
    #   odd rows: conv contribution is 0 -> constant relu(shift).
    N, H, W, C = x.shape
    Ho, Wo = 2 * H - 1, 2 * W - 1
    const = jnp.maximum(shift, 0.0)
    out = jnp.broadcast_to(const[None, None, None, :], (N, Ho, Wo, C))
    ee = _dw_mac([x.reshape(-1, C)], w[1:2], shift, relu=True).reshape(N, H, W, C)
    out = out.at[:, ::2, ::2, :].set(ee)
    if W > 1:
        eo = _dw_mac([x[:, :, :-1, :].reshape(-1, C), x[:, :, 1:, :].reshape(-1, C)],
                     jnp.stack([w[2], w[0]]), shift, relu=True).reshape(N, H, W - 1, C)
        out = out.at[:, ::2, 1::2, :].set(eo)
    return out


def dw_convT_3x1(x, w, shift):
    # depthwise ConvTranspose2d k=(3,1), stride 2, padding (1,0), BN folded.
    N, H, W, C = x.shape
    Ho, Wo = 2 * H - 1, 2 * W - 1
    const = jnp.maximum(shift, 0.0)
    out = jnp.broadcast_to(const[None, None, None, :], (N, Ho, Wo, C))
    ee = _dw_mac([x.reshape(-1, C)], w[1:2], shift, relu=True).reshape(N, H, W, C)
    out = out.at[:, ::2, ::2, :].set(ee)
    if H > 1:
        oe = _dw_mac([x[:, :-1, :, :].reshape(-1, C), x[:, 1:, :, :].reshape(-1, C)],
                     jnp.stack([w[2], w[0]]), shift, relu=True).reshape(N, H - 1, W, C)
        out = out.at[:, 1::2, ::2, :].set(oe)
    return out


def _bilinear_axis(n_in, n_out):
    # align_corners=True (nn.UpsamplingBilinear2d)
    if n_out == 1:
        src = jnp.zeros((1,), jnp.float32)
    else:
        src = jnp.arange(n_out, dtype=jnp.float32) * (n_in - 1) / (n_out - 1)
    i0 = jnp.clip(jnp.floor(src).astype(jnp.int32), 0, n_in - 1)
    i1 = jnp.clip(i0 + 1, 0, n_in - 1)
    frac = src - i0.astype(jnp.float32)
    return i0, i1, frac


def bilinear_up2(x):
    # single fused 4-tap bilinear kernel (H and W passes merged; 1-f in-kernel).
    # TODO(synk): pass the per-row/col fracs via SMEM scalars instead of
    #             channel-broadcast arrays, and fuse the preceding 1x1 conv.
    N, H, W, C = x.shape
    Ho, Wo = 2 * H, 2 * W
    i0, i1, fh = _bilinear_axis(H, Ho)
    j0, j1, fw = _bilinear_axis(W, Wo)
    r0_ = jnp.take(x, i0, axis=1)
    r1_ = jnp.take(x, i1, axis=1)
    t00 = jnp.take(r0_, j0, axis=2)
    t01 = jnp.take(r0_, j1, axis=2)
    t10 = jnp.take(r1_, j0, axis=2)
    t11 = jnp.take(r1_, j1, axis=2)
    fhb = jnp.broadcast_to(fh[None, :, None, None], (N, Ho, Wo, C))
    fwb = jnp.broadcast_to(fw[None, None, :, None], (N, Ho, Wo, C))
    P = N * Ho * Wo
    cp = _cpad(C)
    g = 128 // cp if cp <= 128 else 1
    L = g * cp
    r0 = pl.cdiv(P, g)
    tr = _choose_tr(7 * L * 4, r0)
    rp = _round_up(max(r0, 1), tr)
    packed = [_pack2d(a.reshape(P, C), g, cp, rp)
              for a in (t00, t01, t10, t11, fhb, fwb)]
    out = pl.pallas_call(
        _bilerp_kernel,
        grid=(rp // tr,),
        in_specs=[pl.BlockSpec((tr, L), lambda i: (i, 0))] * 6,
        out_specs=pl.BlockSpec((tr, L), lambda i: (i, 0)),
        out_shape=jax.ShapeDtypeStruct((rp, L), jnp.float32),
        compiler_params=_CPARAMS,
    )(*packed)
    return _unpack(out, cp, P, C).reshape(N, Ho, Wo, C)


def pad_or_crop_to(x, H, W):
    # F.pad(x, (0, W-xw, 0, H-xh)): zero-pad or crop at the bottom/right.
    xh, xw = x.shape[1], x.shape[2]
    x = x[:, :H] if xh >= H else jnp.pad(x, ((0, 0), (0, H - xh), (0, 0), (0, 0)))
    x = x[:, :, :W] if xw >= W else jnp.pad(x, ((0, 0), (0, 0), (0, W - xw), (0, 0)))
    return x


# ----------------------------- params (deterministic) -----------------------------

class PG:
    def __init__(self, seed=0):
        self._key = jax.random.PRNGKey(seed)
        self._n = 0

    def normal(self, shape, std=0.1):
        self._n += 1
        k = jax.random.fold_in(self._key, self._n)
        return std * jax.random.normal(k, shape, jnp.float32)


def make_bn(pg, c):
    return dict(gamma=1.0 + pg.normal((c,)), beta=pg.normal((c,)),
                mean=pg.normal((c,)), var=1.0 + jnp.abs(pg.normal((c,))))


def bn_fold(bn, eps=1e-5):
    s = bn['gamma'] / jnp.sqrt(bn['var'] + eps)
    t = bn['beta'] - bn['mean'] * s
    return s, t


def make_conv1x1(pg, cin, cout):
    return dict(w=pg.normal((cin, cout), std=1.0 / float(cin) ** 0.5),
                b=pg.normal((cout,)))


def make_dw(pg, c):
    return dict(w=pg.normal((3, c), std=0.5), b=pg.normal((c,)))


def make_dwconv2d(pg, cin, cout):  # k == 3
    return dict(dw13=make_dw(pg, cin), dw31=make_dw(pg, cin), bn1=make_bn(pg, cin),
                pw=make_conv1x1(pg, cin, cout), bn2=make_bn(pg, cout))


def make_spark(pg, cin, sq, e1, ek):
    return dict(squeeze=make_conv1x1(pg, cin, sq), bn_s=make_bn(pg, sq),
                e1=make_conv1x1(pg, sq, e1), bn_e1=make_bn(pg, e1),
                ek=make_dwconv2d(pg, sq, ek))


def make_down(pg, C):
    return dict(s1=make_spark(pg, C, C // 2, C, C),
                s2=make_spark(pg, 2 * C, C // 2, C, C))


def make_dwconvT(pg, cin, cout):  # k == 3
    return dict(pw=make_conv1x1(pg, cin, cout),
                ct13=make_dw(pg, cout), bn1=make_bn(pg, cout),
                ct31=make_dw(pg, cout), bn2=make_bn(pg, cout))


def make_up(pg, C):
    return dict(up=make_dwconvT(pg, 2 * C, C),
                cc=make_spark(pg, 2 * C, C // 2, C // 2, C // 2))


def make_segfast(pg, C, noc):
    return dict(primary=make_dwconv2d(pg, 3, C),
                d1=make_down(pg, C), d2=make_down(pg, 2 * C), d3=make_down(pg, 4 * C),
                u3=make_up(pg, 4 * C), u2=make_up(pg, 2 * C), u1=make_up(pg, C),
                cls=make_conv1x1(pg, C, noc))


# --------------------- one-time weight preparation (outside forward) ---------------------

def _fold_conv(conv, bn, scale=1.0):
    w, b = conv['w'], conv['b']
    if bn is not None:
        s, t = bn_fold(bn)
        w = w * s[None, :]
        b = b * s + t
    return w * scale, b


def _prep_pw(conv, bn, g, cpi, cpo, scale=1.0):
    w, b = _fold_conv(conv, bn, scale)
    w = jnp.pad(w, ((0, cpi - w.shape[0]), (0, cpo - w.shape[1])))
    b = jnp.pad(b, (0, cpo - b.shape[0]))
    return _block_diag(w, g).astype(jnp.bfloat16), _tile_vec(b, g)


def prep_conv1x1(conv, bn):
    cin, cout = conv['w'].shape
    cpi, cpo = _cpad(cin), _cpad(cout)
    g = _group_for(cpi, cpo)
    w, b = _prep_pw(conv, bn, g, cpi, cpo)
    return dict(w=w, b=b, g=g, cpi=cpi, cout=cout)


def prep_spark_head(p, pool):
    cin, c1 = p['squeeze']['w'].shape
    c2 = p['e1']['w'].shape[1]
    cpi, cp1, cp2 = _cpad(cin), _cpad(c1), _cpad(c2)
    g = _group_for(cpi, cp1, cp2)
    w1, b1 = _prep_pw(p['squeeze'], p['bn_s'], g, cpi, cp1, 0.25 if pool else 1.0)
    w2, b2 = _prep_pw(p['e1'], p['bn_e1'], g, cp1, cp2)
    return dict(w1=w1, b1=b1, w2=w2, b2=b2, g=g, cpi=cpi, c1=c1, c2=c2)


def prep_dwblock(p):
    cin = p['dw13']['w'].shape[1]
    cout = p['pw']['w'].shape[1]
    cpi, cpo = _cpad(cin), _cpad(cout)
    g = _group_for(cpi, cpo)
    s1, t1 = bn_fold(p['bn1'])
    w31 = p['dw31']['w'] * s1[None, :]
    b31 = p['dw31']['b'] * s1 + t1
    wpw, bpw = _prep_pw(p['pw'], p['bn2'], g, cpi, cpo)
    pad = cpi - cin
    w13p = jnp.pad(p['dw13']['w'], ((0, 0), (0, pad)))
    b13p = jnp.pad(p['dw13']['b'], (0, pad))
    w31p = jnp.pad(w31, ((0, 0), (0, pad)))
    b31p = jnp.pad(b31, (0, pad))
    return dict(w13=_tile_rows(w13p, g), b13=_tile_vec(b13p, g),
                w31=w31p, w31c=_tile_vec(w31p[1], g), b31=_tile_vec(b31p, g),
                wpw=wpw, bpw=bpw, g=g, cpi=cpi, cout=cout)


def prep_spark(p, pool):
    return dict(head=prep_spark_head(p, pool), ek=prep_dwblock(p['ek']))


def prep_down(p):
    return dict(s1=prep_spark(p['s1'], pool=True), s2=prep_spark(p['s2'], pool=False))


def prep_dwconvT(p):
    s, t = bn_fold(p['bn1'])
    ct13_w = p['ct13']['w'] * s[None, :]
    ct13_b = p['ct13']['b'] * s + t
    s, t = bn_fold(p['bn2'])
    ct31_w = p['ct31']['w'] * s[None, :]
    ct31_b = p['ct31']['b'] * s + t
    return dict(pw=prep_conv1x1(p['pw'], None),
                ct13_w=ct13_w, ct13_b=ct13_b, ct31_w=ct31_w, ct31_b=ct31_b)


def prep_up(p):
    return dict(up=prep_dwconvT(p['up']), cc=prep_spark(p['cc'], pool=False))


def prepare_params(params):
    return dict(primary=prep_dwblock(params['primary']),
                d1=prep_down(params['d1']), d2=prep_down(params['d2']),
                d3=prep_down(params['d3']),
                u3=prep_up(params['u3']), u2=prep_up(params['u2']),
                u1=prep_up(params['u1']),
                cls=prep_conv1x1(params['cls'], None))


# ----------------------------- model forward -----------------------------

def apply_spark(lp, x, pool=False):
    sq, a = spark_head(x, lp['head'], pool)
    b = dwconv2d_block(sq, lp['ek'], stride=1)
    # TODO(synk): write both branches into one buffer via channel-offset out_specs
    # (and thread the un-concatenated pair to consumers) instead of jnp.concatenate.
    return jnp.concatenate([a, b], axis=-1)


def apply_down(lp, x):
    # AvgPool2d(2,2) is folded into the first Spark's squeeze (4 taps, 0.25 in w).
    x = apply_spark(lp['s1'], x, pool=True)
    return apply_spark(lp['s2'], x, pool=False)


def apply_dwconvT(lp, x):  # stride == 2
    x = conv1x1(x, lp['pw'], relu=True)      # Conv1x1 + ReLU (no BN in the reference)
    x = dw_convT_1x3(x, lp['ct13_w'], lp['ct13_b'])
    x = dw_convT_3x1(x, lp['ct31_w'], lp['ct31_b'])
    return x


def apply_up(lp, x, bridge):
    x = apply_dwconvT(lp['up'], x)
    x = pad_or_crop_to(x, bridge.shape[1], bridge.shape[2])
    x = jnp.concatenate([x, bridge], axis=-1)
    return apply_spark(lp['cc'], x)


def segfast_forward(pp, x_nchw):
    x = jnp.transpose(x_nchw, (0, 2, 3, 1))          # NCHW -> NHWC
    x = dwconv2d_block(x, pp['primary'], stride=2)
    d1 = apply_down(pp['d1'], x)
    d2 = apply_down(pp['d2'], d1)
    d3 = apply_down(pp['d3'], d2)
    u3 = apply_up(pp['u3'], d3, d2)
    u2 = apply_up(pp['u2'], u3, d1)
    u1 = apply_up(pp['u1'], u2, x)
    y = conv1x1(u1, pp['cls'], relu=False, keep_pad=True)
    y = bilinear_up2(y)[..., :pp['cls']['cout']]
    return jnp.transpose(y, (0, 3, 1, 2))            # NHWC -> NCHW


# ----------------------------- demo -----------------------------

if __name__ == "__main__":
    C, noc, k = 4, 3, 3
    assert k == 3  # TODO(synk): k=5 variant of Dw blocks not wired for this demo
    pg = PG(seed=0)
    params = make_segfast(pg, C, noc)
    # one-time: BN folding, channel padding, block-diagonalization, bf16 casts
    pp = prepare_params(params)

    x = jax.random.normal(jax.random.PRNGKey(0), (2, 3, 32, 32), jnp.float32)

    fwd = jax.jit(functools.partial(segfast_forward, pp))
    y = jax.block_until_ready(fwd(x))

    assert y.shape == (2, noc, 16, 16), y.shape
    assert bool(jnp.all(jnp.isfinite(y)))
    print("KERNEL_OK")
</pallas_src>

<mosaic_0001>
module attributes {stable_mosaic.version = 11 : i64} {
  func.func @_dwblock_kernel(%arg0: i32, %arg1: memref<9x16x128xf32, #tpu.memory_space<vmem>>, %arg2: memref<2x16x128xf32, #tpu.memory_space<vmem>>, %arg3: memref<3x1x128xf32, #tpu.memory_space<vmem>>, %arg4: memref<1x128xf32, #tpu.memory_space<vmem>>, %arg5: memref<1x128xf32, #tpu.memory_space<vmem>>, %arg6: memref<1x128xf32, #tpu.memory_space<vmem>>, %arg7: memref<128x128xbf16, #tpu.memory_space<vmem>>, %arg8: memref<1x128xf32, #tpu.memory_space<vmem>>, %arg9: memref<16x128xf32, #tpu.memory_space<vmem>>) attributes {dimension_semantics = [#tpu.dimension_semantics<parallel>], iteration_bounds = array<i64: 1>, scalar_prefetch = 0 : i64, scratch_operands = 0 : i64, tpu.core_type = #tpu.core_type<tc>, window_params = [{transform_indices = @transform_0, window_bounds = array<i64: 9, 16, 128>}, {transform_indices = @transform_1, window_bounds = array<i64: 2, 16, 128>}, {pipeline_mode = #tpu.pipeline_mode<synchronous>, transform_indices = @transform_2, window_bounds = array<i64: 3, 1, 128>}, {pipeline_mode = #tpu.pipeline_mode<synchronous>, transform_indices = @transform_3, window_bounds = array<i64: 1, 128>}, {pipeline_mode = #tpu.pipeline_mode<synchronous>, transform_indices = @transform_4, window_bounds = array<i64: 1, 128>}, {pipeline_mode = #tpu.pipeline_mode<synchronous>, transform_indices = @transform_5, window_bounds = array<i64: 1, 128>}, {pipeline_mode = #tpu.pipeline_mode<synchronous>, transform_indices = @transform_6, window_bounds = array<i64: 128, 128>}, {pipeline_mode = #tpu.pipeline_mode<synchronous>, transform_indices = @transform_7, window_bounds = array<i64: 1, 128>}, {transform_indices = @transform_8, window_bounds = array<i64: 16, 128>}]} {
    %c0 = arith.constant 0 : index
    %c0_0 = arith.constant 0 : index
    %c0_1 = arith.constant 0 : index
    %0 = vector.load %arg2[%c0, %c0_0, %c0_1] : memref<2x16x128xf32, #tpu.memory_space<vmem>>, vector<1x16x128xf32>
    %1 = vector.shape_cast %0 : vector<1x16x128xf32> to vector<16x128xf32>
    %c0_2 = arith.constant 0 : index
    %c0_3 = arith.constant 0 : index
    %2 = vector.load %arg5[%c0_2, %c0_3] : memref<1x128xf32, #tpu.memory_space<vmem>>, vector<1x128xf32>
    %c1 = arith.constant 1 : index
    %c0_4 = arith.constant 0 : index
    %c0_5 = arith.constant 0 : index
    %3 = vector.load %arg2[%c1, %c0_4, %c0_5] : memref<2x16x128xf32, #tpu.memory_space<vmem>>, vector<1x16x128xf32>
    %4 = vector.shape_cast %3 : vector<1x16x128xf32> to vector<16x128xf32>
    %c0_6 = arith.constant 0 : index
    %c0_7 = arith.constant 0 : index
    %c0_8 = arith.constant 0 : index
    %5 = vector.load %arg1[%c0_6, %c0_7, %c0_8] : memref<9x16x128xf32, #tpu.memory_space<vmem>>, vector<1x16x128xf32>
    %6 = vector.shape_cast %5 : vector<1x16x128xf32> to vector<16x128xf32>
    %c0_9 = arith.constant 0 : index
    %c0_10 = arith.constant 0 : index
    %c0_11 = arith.constant 0 : index
    %7 = vector.load %arg3[%c0_9, %c0_10, %c0_11] : memref<3x1x128xf32, #tpu.memory_space<vmem>>, vector<1x1x128xf32>
    %8 = vector.shape_cast %7 : vector<1x1x128xf32> to vector<1x128xf32>
    %9 = vector.broadcast %8 : vector<1x128xf32> to vector<16x128xf32>
    %10 = arith.mulf %6, %9 : vector<16x128xf32>
    %c1_12 = arith.constant 1 : index
    %c0_13 = arith.constant 0 : index
    %c0_14 = arith.constant 0 : index
    %11 = vector.load %arg1[%c1_12, %c0_13, %c0_14] : memref<9x16x128xf32, #tpu.memory_space<vmem>>, vector<1x16x128xf32>
    %12 = vector.shape_cast %11 : vector<1x16x128xf32> to vector<16x128xf32>
    %c1_15 = arith.constant 1 : index
    %c0_16 = arith.constant 0 : index
    %c0_17 = arith.constant 0 : index
    %13 = vector.load %arg3[%c1_15, %c0_16, %c0_17] : memref<3x1x128xf32, #tpu.memory_space<vmem>>, vector<1x1x128xf32>
    %14 = vector.shape_cast %13 : vector<1x1x128xf32> to vector<1x128xf32>
    %15 = vector.broadcast %14 : vector<1x128xf32> to vector<16x128xf32>
    %16 = arith.mulf %12, %15 : vector<16x128xf32>
    %17 = arith.addf %10, %16 : vector<16x128xf32>
    %c2 = arith.constant 2 : index
    %c0_18 = arith.constant 0 : index
    %c0_19 = arith.constant 0 : index
    %18 = vector.load %arg1[%c2, %c0_18, %c0_19] : memref<9x16x128xf32, #tpu.memory_space<vmem>>, vector<1x16x128xf32>
    %19 = vector.shape_cast %18 : vector<1x16x128xf32> to vector<16x128xf32>
    %c2_20 = arith.constant 2 : index
    %c0_21 = arith.constant 0 : index
    %c0_22 = arith.constant 0 : index
    %20 = vector.load %arg3[%c2_20, %c0_21, %c0_22] : memref<3x1x128xf32, #tpu.memory_space<vmem>>, vector<1x1x128xf32>
    %21 = vector.shape_cast %20 : vector<1x1x128xf32> to vector<1x128xf32>
    %22 = vector.broadcast %21 : vector<1x128xf32> to vector<16x128xf32>
    %23 = arith.mulf %19, %22 : vector<16x128xf32>
    %24 = arith.addf %17, %23 : vector<16x128xf32>
    %c0_23 = arith.constant 0 : index
    %c0_24 = arith.constant 0 : index
    %25 = vector.load %arg4[%c0_23, %c0_24] : memref<1x128xf32, #tpu.memory_space<vmem>>, vector<1x128xf32>
    %26 = vector.broadcast %25 : vector<1x128xf32> to vector<16x128xf32>
    %27 = arith.addf %24, %26 : vector<16x128xf32>
    %cst = arith.constant 0.000000e+00 : f32
    %28 = vector.broadcast %cst : f32 to vector<16x128xf32>
    %29 = arith.maximumf %27, %28 : vector<16x128xf32>
    %30 = arith.mulf %29, %1 : vector<16x128xf32>
    %c3 = arith.constant 3 : index
    %c0_25 = arith.constant 0 : index
    %c0_26 = arith.constant 0 : index
    %31 = vector.load %arg1[%c3, %c0_25, %c0_26] : memref<9x16x128xf32, #tpu.memory_space<vmem>>, vector<1x16x128xf32>
    %32 = vector.shape_cast %31 : vector<1x16x128xf32> to vector<16x128xf32>
    %c0_27 = arith.constant 0 : index
    %c0_28 = arith.constant 0 : index
    %c0_29 = arith.constant 0 : index
    %33 = vector.load %arg3[%c0_27, %c0_28, %c0_29] : memref<3x1x128xf32, #tpu.memory_space<vmem>>, vector<1x1x128xf32>
    %34 = vector.shape_cast %33 : vector<1x1x128xf32> to vector<1x128xf32>
    %35 = vector.broadcast %34 : vector<1x128xf32> to vector<16x128xf32>
    %36 = arith.mulf %32, %35 : vector<16x128xf32>
    %c4 = arith.constant 4 : index
    %c0_30 = arith.constant 0 : index
    %c0_31 = arith.constant 0 : index
    %37 = vector.load %arg1[%c4, %c0_30, %c0_31] : memref<9x16x128xf32, #tpu.memory_space<vmem>>, vector<1x16x128xf32>
    %38 = vector.shape_cast %37 : vector<1x16x128xf32> to vector<16x128xf32>
    %c1_32 = arith.constant 1 : index
    %c0_33 = arith.constant 0 : index
    %c0_34 = arith.constant 0 : index
    %39 = vector.load %arg3[%c1_32, %c0_33, %c0_34] : memref<3x1x128xf32, #tpu.memory_space<vmem>>, vector<1x1x128xf32>
    %40 = vector.shape_cast %39 : vector<1x1x128xf32> to vector<1x128xf32>
    %41 = vector.broadcast %40 : vector<1x128xf32> to vector<16x128xf32>
    %42 = arith.mulf %38, %41 : vector<16x128xf32>
    %43 = arith.addf %36, %42 : vector<16x128xf32>
    %c5 = arith.constant 5 : index
    %c0_35 = arith.constant 0 : index
    %c0_36 = arith.constant 0 : index
    %44 = vector.load %arg1[%c5, %c0_35, %c0_36] : memref<9x16x128xf32, #tpu.memory_space<vmem>>, vector<1x16x128xf32>
    %45 = vector.shape_cast %44 : vector<1x16x128xf32> to vector<16x128xf32>
    %c2_37 = arith.constant 2 : index
    %c0_38 = arith.constant 0 : index
    %c0_39 = arith.constant 0 : index
    %46 = vector.load %arg3[%c2_37, %c0_38, %c0_39] : memref<3x1x128xf32, #tpu.memory_space<vmem>>, vector<1x1x128xf32>
    %47 = vector.shape_cast %46 : vector<1x1x128xf32> to vector<1x128xf32>
    %48 = vector.broadcast %47 : vector<1x128xf32> to vector<16x128xf32>
    %49 = arith.mulf %45, %48 : vector<16x128xf32>
    %50 = arith.addf %43, %49 : vector<16x128xf32>
    %c0_40 = arith.constant 0 : index
    %c0_41 = arith.constant 0 : index
    %51 = vector.load %arg4[%c0_40, %c0_41] : memref<1x128xf32, #tpu.memory_space<vmem>>, vector<1x128xf32>
    %52 = vector.broadcast %51 : vector<1x128xf32> to vector<16x128xf32>
    %53 = arith.addf %50, %52 : vector<16x128xf32>
    %cst_42 = arith.constant 0.000000e+00 : f32
    %54 = vector.broadcast %cst_42 : f32 to vector<16x128xf32>
    %55 = arith.maximumf %53, %54 : vector<16x128xf32>
    %56 = vector.broadcast %2 : vector<1x128xf32> to vector<16x128xf32>
    %57 = arith.mulf %55, %56 : vector<16x128xf32>
    %58 = arith.addf %30, %57 : vector<16x128xf32>
    %c6 = arith.constant 6 : index
    %c0_43 = arith.constant 0 : index
    %c0_44 = arith.constant 0 : index
    %59 = vector.load %arg1[%c6, %c0_43, %c0_44] : memref<9x16x128xf32, #tpu.memory_space<vmem>>, vector<1x16x128xf32>
    %60 = vector.shape_cast %59 : vector<1x16x128xf32> to vector<16x128xf32>
    %c0_45 = arith.constant 0 : index
    %c0_46 = arith.constant 0 : index
    %c0_47 = arith.constant 0 : index
    %61 = vector.load %arg3[%c0_45, %c0_46, %c0_47] : memref<3x1x128xf32, #tpu.memory_space<vmem>>, vector<1x1x128xf32>
    %62 = vector.shape_cast %61 : vector<1x1x128xf32> to vector<1x128xf32>
    %63 = vector.broadcast %62 : vector<1x128xf32> to vector<16x128xf32>
    %64 = arith.mulf %60, %63 : vector<16x128xf32>
    %c7 = arith.constant 7 : index
    %c0_48 = arith.constant 0 : index
    %c0_49 = arith.constant 0 : index
    %65 = vector.load %arg1[%c7, %c0_48, %c0_49] : memref<9x16x128xf32, #tpu.memory_space<vmem>>, vector<1x16x128xf32>
    %66 = vector.shape_cast %65 : vector<1x16x128xf32> to vector<16x128xf32>
    %c1_50 = arith.constant 1 : index
    %c0_51 = arith.constant 0 : index
    %c0_52 = arith.constant 0 : index
    %67 = vector.load %arg3[%c1_50, %c0_51, %c0_52] : memref<3x1x128xf32, #tpu.memory_space<vmem>>, vector<1x1x128xf32>
    %68 = vector.shape_cast %67 : vector<1x1x128xf32> to vector<1x128xf32>
    %69 = vector.broadcast %68 : vector<1x128xf32> to vector<16x128xf32>
    %70 = arith.mulf %66, %69 : vector<16x128xf32>
    %71 = arith.addf %64, %70 : vector<16x128xf32>
    %c8 = arith.constant 8 : index
    %c0_53 = arith.constant 0 : index
    %c0_54 = arith.constant 0 : index
    %72 = vector.load %arg1[%c8, %c0_53, %c0_54] : memref<9x16x128xf32, #tpu.memory_space<vmem>>, vector<1x16x128xf32>
    %73 = vector.shape_cast %72 : vector<1x16x128xf32> to vector<16x128xf32>
    %c2_55 = arith.constant 2 : index
    %c0_56 = arith.constant 0 : index
    %c0_57 = arith.constant 0 : index
    %74 = vector.load %arg3[%c2_55, %c0_56, %c0_57] : memref<3x1x128xf32, #tpu.memory_space<vmem>>, vector<1x1x128xf32>
    %75 = vector.shape_cast %74 : vector<1x1x128xf32> to vector<1x128xf32>
    %76 = vector.broadcast %75 : vector<1x128xf32> to vector<16x128xf32>
    %77 = arith.mulf %73, %76 : vector<16x128xf32>
    %78 = arith.addf %71, %77 : vector<16x128xf32>
    %c0_58 = arith.constant 0 : index
    %c0_59 = arith.constant 0 : index
    %79 = vector.load %arg4[%c0_58, %c0_59] : memref<1x128xf32, #tpu.memory_space<vmem>>, vector<1x128xf32>
    %80 = vector.broadcast %79 : vector<1x128xf32> to vector<16x128xf32>
    %81 = arith.addf %78, %80 : vector<16x128xf32>
    %cst_60 = arith.constant 0.000000e+00 : f32
    %82 = vector.broadcast %cst_60 : f32 to vector<16x128xf32>
    %83 = arith.maximumf %81, %82 : vector<16x128xf32>
    %84 = arith.mulf %83, %4 : vector<16x128xf32>
    %85 = arith.addf %58, %84 : vector<16x128xf32>
    %c0_61 = arith.constant 0 : index
    %c0_62 = arith.constant 0 : index
    %86 = vector.load %arg6[%c0_61, %c0_62] : memref<1x128xf32, #tpu.memory_space<vmem>>, vector<1x128xf32>
    %87 = vector.broadcast %86 : vector<1x128xf32> to vector<16x128xf32>
    %88 = arith.addf %85, %87 : vector<16x128xf32>
    %cst_63 = arith.constant 0.000000e+00 : f32
    %89 = vector.broadcast %cst_63 : f32 to vector<16x128xf32>
    %90 = arith.maximumf %88, %89 : vector<16x128xf32>
    %91 = arith.truncf %90 : vector<16x128xf32> to vector<16x128xbf16>
    %c0_64 = arith.constant 0 : index
    %c0_65 = arith.constant 0 : index
    %92 = vector.load %arg7[%c0_64, %c0_65] : memref<128x128xbf16, #tpu.memory_space<vmem>>, vector<128x128xbf16>
    %cst_66 = arith.constant dense<0.000000e+00> : vector<16x128xf32>
    %93 = tpu.matmul %91, %92, %cst_66 {dimension_numbers = #tpu.dot_dimension_numbers<[1], [0], [0], [1], [0, 0, 1, 1], [], []>} : vector<16x128xbf16>, vector<128x128xbf16>, vector<16x128xf32> -> vector<16x128xf32>
    %c0_67 = arith.constant 0 : index
    %c0_68 = arith.constant 0 : index
    %94 = vector.load %arg8[%c0_67, %c0_68] : memref<1x128xf32, #tpu.memory_space<vmem>>, vector<1x128xf32>
    %95 = vector.broadcast %94 : vector<1x128xf32> to vector<16x128xf32>
    %96 = arith.addf %93, %95 : vector<16x128xf32>
    %cst_69 = arith.constant 0.000000e+00 : f32
    %97 = vector.broadcast %cst_69 : f32 to vector<16x128xf32>
    %98 = arith.maximumf %96, %97 : vector<16x128xf32>
    %c0_70 = arith.constant 0 : index
    %c0_71 = arith.constant 0 : index
    %99 = vector.load %arg9[%c0_70, %c0_71] : memref<16x128xf32, #tpu.memory_space<vmem>>, vector<16x128xf32>
    tpu.vector_store %arg9[%c0_70, %c0_71], %98 {strides = array<i32>} : memref<16x128xf32, #tpu.memory_space<vmem>>, vector<16x128xf32>,
    return
  }
  func.func @transform_0(%arg0: i32) -> (i32, i32, i32) {
    %c0_i32 = arith.constant 0 : i32
    %c0_i32_0 = arith.constant 0 : i32
    %c0_i32_1 = arith.constant 0 : i32
    return %c0_i32, %arg0, %c0_i32_0 : i32, i32, i32
  }
  func.func @transform_1(%arg0: i32) -> (i32, i32, i32) {
    %c0_i32 = arith.constant 0 : i32
    %c0_i32_0 = arith.constant 0 : i32
    %c0_i32_1 = arith.constant 0 : i32
    return %c0_i32, %arg0, %c0_i32_0 : i32, i32, i32
  }
  func.func @transform_2(%arg0: i32) -> (i32, i32, i32) {
    %c0_i32 = arith.constant 0 : i32
    %c0_i32_0 = arith.constant 0 : i32
    %c0_i32_1 = arith.constant 0 : i32
    %c0_i32_2 = arith.constant 0 : i32
    return %c0_i32, %c0_i32_0, %c0_i32_1 : i32, i32, i32
  }
  func.func @transform_3(%arg0: i32) -> (i32, i32) {
    %c0_i32 = arith.constant 0 : i32
    %c0_i32_0 = arith.constant 0 : i32
    %c0_i32_1 = arith.constant 0 : i32
    return %c0_i32, %c0_i32_0 : i32, i32
  }
  func.func @transform_4(%arg0: i32) -> (i32, i32) {
    %c0_i32 = arith.constant 0 : i32
    %c0_i32_0 = arith.constant 0 : i32
    %c0_i32_1 = arith.constant 0 : i32
    return %c0_i32, %c0_i32_0 : i32, i32
  }
  func.func @transform_5(%arg0: i32) -> (i32, i32) {
    %c0_i32 = arith.constant 0 : i32
    %c0_i32_0 = arith.constant 0 : i32
    %c0_i32_1 = arith.constant 0 : i32
    return %c0_i32, %c0_i32_0 : i32, i32
  }
  func.func @transform_6(%arg0: i32) -> (i32, i32) {
    %c0_i32 = arith.constant 0 : i32
    %c0_i32_0 = arith.constant 0 : i32
    %c0_i32_1 = arith.constant 0 : i32
    return %c0_i32, %c0_i32_0 : i32, i32
  }
  func.func @transform_7(%arg0: i32) -> (i32, i32) {
    %c0_i32 = arith.constant 0 : i32
    %c0_i32_0 = arith.constant 0 : i32
    %c0_i32_1 = arith.constant 0 : i32
    return %c0_i32, %c0_i32_0 : i32, i32
  }
  func.func @transform_8(%arg0: i32) -> (i32, i32) {
    %c0_i32 = arith.constant 0 : i32
    %c0_i32_0 = arith.constant 0 : i32
    return %arg0, %c0_i32 : i32, i32
  }
}

module attributes {stable_mosaic.version = 11 : i64} {
  func.func @_spark_kernel(%arg0: i32, %arg1: memref<4x16x256xbf16, #tpu.memory_space<vmem>>, %arg2: memref<256x128xbf16, #tpu.memory_space<vmem>>, %arg3: memref<1x128xf32, #tpu.memory_space<vmem>>, %arg4: memref<128x256xbf16, #tpu.memory_space<vmem>>, %arg5: memref<1x256xf32, #tpu.memory_space<vmem>>, %arg6: memref<16x128xf32, #tpu.memory_space<vmem>>, %arg7: memref<16x256xf32, #tpu.memory_space<vmem>>) attributes {dimension_semantics = [#tpu.dimension_semantics<parallel>], iteration_bounds = array<i64: 1>, scalar_prefetch = 0 : i64, scratch_operands = 0 : i64, tpu.core_type = #tpu.core_type<tc>, window_params = [{transform_indices = @transform_0, window_bounds = array<i64: 4, 16, 256>}, {pipeline_mode = #tpu.pipeline_mode<synchronous>, transform_indices = @transform_1, window_bounds = array<i64: 256, 128>}, {pipeline_mode = #tpu.pipeline_mode<synchronous>, transform_indices = @transform_2, window_bounds = array<i64: 1, 128>}, {pipeline_mode = #tpu.pipeline_mode<synchronous>, transform_indices = @transform_3, window_bounds = array<i64: 128, 256>}, {pipeline_mode = #tpu.pipeline_mode<synchronous>, transform_indices = @transform_4, window_bounds = array<i64: 1, 256>}, {transform_indices = @transform_5, window_bounds = array<i64: 16, 128>}, {transform_indices = @transform_6, window_bounds = array<i64: 16, 256>}]} {
    %c0 = arith.constant 0 : index
    %c0_0 = arith.constant 0 : index
    %c0_1 = arith.constant 0 : index
    %0 = vector.load %arg1[%c0, %c0_0, %c0_1] : memref<4x16x256xbf16, #tpu.memory_space<vmem>>, vector<1x16x256xbf16>
    %1 = vector.shape_cast %0 : vector<1x16x256xbf16> to vector<16x256xbf16>
    %c1 = arith.constant 1 : index
    %c0_2 = arith.constant 0 : index
    %c0_3 = arith.constant 0 : index
    %2 = vector.load %arg1[%c1, %c0_2, %c0_3] : memref<4x16x256xbf16, #tpu.memory_space<vmem>>, vector<1x16x256xbf16>
    %3 = vector.shape_cast %2 : vector<1x16x256xbf16> to vector<16x256xbf16>
    %4 = arith.addf %1, %3 : vector<16x256xbf16>
    %c2 = arith.constant 2 : index
    %c0_4 = arith.constant 0 : index
    %c0_5 = arith.constant 0 : index
    %5 = vector.load %arg1[%c2, %c0_4, %c0_5] : memref<4x16x256xbf16, #tpu.memory_space<vmem>>, vector<1x16x256xbf16>
    %6 = vector.shape_cast %5 : vector<1x16x256xbf16> to vector<16x256xbf16>
    %7 = arith.addf %4, %6 : vector<16x256xbf16>
    %c3 = arith.constant 3 : index
    %c0_6 = arith.constant 0 : index
    %c0_7 = arith.constant 0 : index
    %8 = vector.load %arg1[%c3, %c0_6, %c0_7] : memref<4x16x256xbf16, #tpu.memory_space<vmem>>, vector<1x16x256xbf16>
    %9 = vector.shape_cast %8 : vector<1x16x256xbf16> to vector<16x256xbf16>
    %10 = arith.addf %7, %9 : vector<16x256xbf16>
    %c0_8 = arith.constant 0 : index
    %c0_9 = arith.constant 0 : index
    %11 = vector.load %arg2[%c0_8, %c0_9] : memref<256x128xbf16, #tpu.memory_space<vmem>>, vector<256x128xbf16>
    %cst = arith.constant dense<0.000000e+00> : vector<16x128xf32>
    %12 = tpu.matmul %10, %11, %cst {dimension_numbers = #tpu.dot_dimension_numbers<[1], [0], [0], [1], [0, 0, 1, 1], [], []>} : vector<16x256xbf16>, vector<256x128xbf16>, vector<16x128xf32> -> vector<16x128xf32>
    %c0_10 = arith.constant 0 : index
    %c0_11 = arith.constant 0 : index
    %13 = vector.load %arg3[%c0_10, %c0_11] : memref<1x128xf32, #tpu.memory_space<vmem>>, vector<1x128xf32>
    %14 = vector.broadcast %13 : vector<1x128xf32> to vector<16x128xf32>
    %15 = arith.addf %12, %14 : vector<16x128xf32>
    %cst_12 = arith.constant 0.000000e+00 : f32
    %16 = vector.broadcast %cst_12 : f32 to vector<16x128xf32>
    %17 = arith.maximumf %15, %16 : vector<16x128xf32>
    %c0_13 = arith.constant 0 : index
    %c0_14 = arith.constant 0 : index
    %18 = vector.load %arg6[%c0_13, %c0_14] : memref<16x128xf32, #tpu.memory_space<vmem>>, vector<16x128xf32>
    tpu.vector_store %arg6[%c0_13, %c0_14], %17 {strides = array<i32>} : memref<16x128xf32, #tpu.memory_space<vmem>>, vector<16x128xf32>,
    %19 = arith.truncf %17 : vector<16x128xf32> to vector<16x128xbf16>
    %c0_15 = arith.constant 0 : index
    %c0_16 = arith.constant 0 : index
    %20 = vector.load %arg4[%c0_15, %c0_16] : memref<128x256xbf16, #tpu.memory_space<vmem>>, vector<128x256xbf16>
    %cst_17 = arith.constant dense<0.000000e+00> : vector<16x256xf32>
    %21 = tpu.matmul %19, %20, %cst_17 {dimension_numbers = #tpu.dot_dimension_numbers<[1], [0], [0], [1], [0, 0, 1, 1], [], []>} : vector<16x128xbf16>, vector<128x256xbf16>, vector<16x256xf32> -> vector<16x256xf32>
    %c0_18 = arith.constant 0 : index
    %c0_19 = arith.constant 0 : index
    %22 = vector.load %arg5[%c0_18, %c0_19] : memref<1x256xf32, #tpu.memory_space<vmem>>, vector<1x256xf32>
    %23 = vector.broadcast %22 : vector<1x256xf32> to vector<16x256xf32>
    %24 = arith.addf %21, %23 : vector<16x256xf32>
    %cst_20 = arith.constant 0.000000e+00 : f32
    %25 = vector.broadcast %cst_20 : f32 to vector<16x256xf32>
    %26 = arith.maximumf %24, %25 : vector<16x256xf32>
    %c0_21 = arith.constant 0 : index
    %c0_22 = arith.constant 0 : index
    %27 = vector.load %arg7[%c0_21, %c0_22] : memref<16x256xf32, #tpu.memory_space<vmem>>, vector<16x256xf32>
    tpu.vector_store %arg7[%c0_21, %c0_22], %26 {strides = array<i32>} : memref<16x256xf32, #tpu.memory_space<vmem>>, vector<16x256xf32>,
    return
  }
  func.func @transform_0(%arg0: i32) -> (i32, i32, i32) {
    %c0_i32 = arith.constant 0 : i32
    %c0_i32_0 = arith.constant 0 : i32
    %c0_i32_1 = arith.constant 0 : i32
    return %c0_i32, %arg0, %c0_i32_0 : i32, i32, i32
  }
  func.func @transform_1(%arg0: i32) -> (i32, i32) {
    %c0_i32 = arith.constant 0 : i32
    %c0_i32_0 = arith.constant 0 : i32
    %c0_i32_1 = arith.constant 0 : i32
    return %c0_i32, %c0_i32_0 : i32, i32
  }
  func.func @transform_2(%arg0: i32) -> (i32, i32) {
    %c0_i32 = arith.constant 0 : i32
    %c0_i32_0 = arith.constant 0 : i32
    %c0_i32_1 = arith.constant 0 : i32
    return %c0_i32, %c0_i32_0 : i32, i32
  }
  func.func @transform_3(%arg0: i32) -> (i32, i32) {
    %c0_i32 = arith.constant 0 : i32
    %c0_i32_0 = arith.constant 0 : i32
    %c0_i32_1 = arith.constant 0 : i32
    return %c0_i32, %c0_i32_0 : i32, i32
  }
  func.func @transform_4(%arg0: i32) -> (i32, i32) {
    %c0_i32 = arith.constant 0 : i32
    %c0_i32_0 = arith.constant 0 : i32
    %c0_i32_1 = arith.constant 0 : i32
    return %c0_i32, %c0_i32_0 : i32, i32
  }
  func.func @transform_5(%arg0: i32) -> (i32, i32) {
    %c0_i32 = arith.constant 0 : i32
    %c0_i32_0 = arith.constant 0 : i32
    return %arg0, %c0_i32 : i32, i32
  }
  func.func @transform_6(%arg0: i32) -> (i32, i32) {
    %c0_i32 = arith.constant 0 : i32
    %c0_i32_0 = arith.constant 0 : i32
    return %arg0, %c0_i32 : i32, i32
  }
}

module attributes {stable_mosaic.version = 11 : i64} {
  func.func @_dwblock_kernel(%arg0: i32, %arg1: memref<9x16x128xf32, #tpu.memory_space<vmem>>, %arg2: memref<2x16x128xf32, #tpu.memory_space<vmem>>, %arg3: memref<3x1x128xf32, #tpu.memory_space<vmem>>, %arg4: memref<1x128xf32, #tpu.memory_space<vmem>>, %arg5: memref<1x128xf32, #tpu.memory_space<vmem>>, %arg6: memref<1x128xf32, #tpu.memory_space<vmem>>, %arg7: memref<128x256xbf16, #tpu.memory_space<vmem>>, %arg8: memref<1x256xf32, #tpu.memory_space<vmem>>, %arg9: memref<16x256xf32, #tpu.memory_space<vmem>>) attributes {dimension_semantics = [#tpu.dimension_semantics<parallel>], iteration_bounds = array<i64: 1>, scalar_prefetch = 0 : i64, scratch_operands = 0 : i64, tpu.core_type = #tpu.core_type<tc>, window_params = [{transform_indices = @transform_0, window_bounds = array<i64: 9, 16, 128>}, {transform_indices = @transform_1, window_bounds = array<i64: 2, 16, 128>}, {pipeline_mode = #tpu.pipeline_mode<synchronous>, transform_indices = @transform_2, window_bounds = array<i64: 3, 1, 128>}, {pipeline_mode = #tpu.pipeline_mode<synchronous>, transform_indices = @transform_3, window_bounds = array<i64: 1, 128>}, {pipeline_mode = #tpu.pipeline_mode<synchronous>, transform_indices = @transform_4, window_bounds = array<i64: 1, 128>}, {pipeline_mode = #tpu.pipeline_mode<synchronous>, transform_indices = @transform_5, window_bounds = array<i64: 1, 128>}, {pipeline_mode = #tpu.pipeline_mode<synchronous>, transform_indices = @transform_6, window_bounds = array<i64: 128, 256>}, {pipeline_mode = #tpu.pipeline_mode<synchronous>, transform_indices = @transform_7, window_bounds = array<i64: 1, 256>}, {transform_indices = @transform_8, window_bounds = array<i64: 16, 256>}]} {
    %c0 = arith.constant 0 : index
    %c0_0 = arith.constant 0 : index
    %c0_1 = arith.constant 0 : index
    %0 = vector.load %arg2[%c0, %c0_0, %c0_1] : memref<2x16x128xf32, #tpu.memory_space<vmem>>, vector<1x16x128xf32>
    %1 = vector.shape_cast %0 : vector<1x16x128xf32> to vector<16x128xf32>
    %c0_2 = arith.constant 0 : index
    %c0_3 = arith.constant 0 : index
    %2 = vector.load %arg5[%c0_2, %c0_3] : memref<1x128xf32, #tpu.memory_space<vmem>>, vector<1x128xf32>
    %c1 = arith.constant 1 : index
    %c0_4 = arith.constant 0 : index
    %c0_5 = arith.constant 0 : index
    %3 = vector.load %arg2[%c1, %c0_4, %c0_5] : memref<2x16x128xf32, #tpu.memory_space<vmem>>, vector<1x16x128xf32>
    %4 = vector.shape_cast %3 : vector<1x16x128xf32> to vector<16x128xf32>
    %c0_6 = arith.constant 0 : index
    %c0_7 = arith.constant 0 : index
    %c0_8 = arith.constant 0 : index
    %5 = vector.load %arg1[%c0_6, %c0_7, %c0_8] : memref<9x16x128xf32, #tpu.memory_space<vmem>>, vector<1x16x128xf32>
    %6 = vector.shape_cast %5 : vector<1x16x128xf32> to vector<16x128xf32>
    %c0_9 = arith.constant 0 : index
    %c0_10 = arith.constant 0 : index
    %c0_11 = arith.constant 0 : index
    %7 = vector.load %arg3[%c0_9, %c0_10, %c0_11] : memref<3x1x128xf32, #tpu.memory_space<vmem>>, vector<1x1x128xf32>
    %8 = vector.shape_cast %7 : vector<1x1x128xf32> to vector<1x128xf32>
    %9 = vector.broadcast %8 : vector<1x128xf32> to vector<16x128xf32>
    %10 = arith.mulf %6, %9 : vector<16x128xf32>
    %c1_12 = arith.constant 1 : index
    %c0_13 = arith.constant 0 : index
    %c0_14 = arith.constant 0 : index
    %11 = vector.load %arg1[%c1_12, %c0_13, %c0_14] : memref<9x16x128xf32, #tpu.memory_space<vmem>>, vector<1x16x128xf32>
    %12 = vector.shape_cast %11 : vector<1x16x128xf32> to vector<16x128xf32>
    %c1_15 = arith.constant 1 : index
    %c0_16 = arith.constant 0 : index
    %c0_17 = arith.constant 0 : index
    %13 = vector.load %arg3[%c1_15, %c0_16, %c0_17] : memref<3x1x128xf32, #tpu.memory_space<vmem>>, vector<1x1x128xf32>
    %14 = vector.shape_cast %13 : vector<1x1x128xf32> to vector<1x128xf32>
    %15 = vector.broadcast %14 : vector<1x128xf32> to vector<16x128xf32>
    %16 = arith.mulf %12, %15 : vector<16x128xf32>
    %17 = arith.addf %10, %16 : vector<16x128xf32>
    %c2 = arith.constant 2 : index
    %c0_18 = arith.constant 0 : index
    %c0_19 = arith.constant 0 : index
    %18 = vector.load %arg1[%c2, %c0_18, %c0_19] : memref<9x16x128xf32, #tpu.memory_space<vmem>>, vector<1x16x128xf32>
    %19 = vector.shape_cast %18 : vector<1x16x128xf32> to vector<16x128xf32>
    %c2_20 = arith.constant 2 : index
    %c0_21 = arith.constant 0 : index
    %c0_22 = arith.constant 0 : index
    %20 = vector.load %arg3[%c2_20, %c0_21, %c0_22] : memref<3x1x128xf32, #tpu.memory_space<vmem>>, vector<1x1x128xf32>
    %21 = vector.shape_cast %20 : vector<1x1x128xf32> to vector<1x128xf32>
    %22 = vector.broadcast %21 : vector<1x128xf32> to vector<16x128xf32>
    %23 = arith.mulf %19, %22 : vector<16x128xf32>
    %24 = arith.addf %17, %23 : vector<16x128xf32>
    %c0_23 = arith.constant 0 : index
    %c0_24 = arith.constant 0 : index
    %25 = vector.load %arg4[%c0_23, %c0_24] : memref<1x128xf32, #tpu.memory_space<vmem>>, vector<1x128xf32>
    %26 = vector.broadcast %25 : vector<1x128xf32> to vector<16x128xf32>
    %27 = arith.addf %24, %26 : vector<16x128xf32>
    %cst = arith.constant 0.000000e+00 : f32
    %28 = vector.broadcast %cst : f32 to vector<16x128xf32>
    %29 = arith.maximumf %27, %28 : vector<16x128xf32>
    %30 = arith.mulf %29, %1 : vector<16x128xf32>
    %c3 = arith.constant 3 : index
    %c0_25 = arith.constant 0 : index
    %c0_26 = arith.constant 0 : index
    %31 = vector.load %arg1[%c3, %c0_25, %c0_26] : memref<9x16x128xf32, #tpu.memory_space<vmem>>, vector<1x16x128xf32>
    %32 = vector.shape_cast %31 : vector<1x16x128xf32> to vector<16x128xf32>
    %c0_27 = arith.constant 0 : index
    %c0_28 = arith.constant 0 : index
    %c0_29 = arith.constant 0 : index
    %33 = vector.load %arg3[%c0_27, %c0_28, %c0_29] : memref<3x1x128xf32, #tpu.memory_space<vmem>>, vector<1x1x128xf32>
    %34 = vector.shape_cast %33 : vector<1x1x128xf32> to vector<1x128xf32>
    %35 = vector.broadcast %34 : vector<1x128xf32> to vector<16x128xf32>
    %36 = arith.mulf %32, %35 : vector<16x128xf32>
    %c4 = arith.constant 4 : index
    %c0_30 = arith.constant 0 : index
    %c0_31 = arith.constant 0 : index
    %37 = vector.load %arg1[%c4, %c0_30, %c0_31] : memref<9x16x128xf32, #tpu.memory_space<vmem>>, vector<1x16x128xf32>
    %38 = vector.shape_cast %37 : vector<1x16x128xf32> to vector<16x128xf32>
    %c1_32 = arith.constant 1 : index
    %c0_33 = arith.constant 0 : index
    %c0_34 = arith.constant 0 : index
    %39 = vector.load %arg3[%c1_32, %c0_33, %c0_34] : memref<3x1x128xf32, #tpu.memory_space<vmem>>, vector<1x1x128xf32>
    %40 = vector.shape_cast %39 : vector<1x1x128xf32> to vector<1x128xf32>
    %41 = vector.broadcast %40 : vector<1x128xf32> to vector<16x128xf32>
    %42 = arith.mulf %38, %41 : vector<16x128xf32>
    %43 = arith.addf %36, %42 : vector<16x128xf32>
    %c5 = arith.constant 5 : index
    %c0_35 = arith.constant 0 : index
    %c0_36 = arith.constant 0 : index
    %44 = vector.load %arg1[%c5, %c0_35, %c0_36] : memref<9x16x128xf32, #tpu.memory_space<vmem>>, vector<1x16x128xf32>
    %45 = vector.shape_cast %44 : vector<1x16x128xf32> to vector<16x128xf32>
    %c2_37 = arith.constant 2 : index
    %c0_38 = arith.constant 0 : index
    %c0_39 = arith.constant 0 : index
    %46 = vector.load %arg3[%c2_37, %c0_38, %c0_39] : memref<3x1x128xf32, #tpu.memory_space<vmem>>, vector<1x1x128xf32>
    %47 = vector.shape_cast %46 : vector<1x1x128xf32> to vector<1x128xf32>
    %48 = vector.broadcast %47 : vector<1x128xf32> to vector<16x128xf32>
    %49 = arith.mulf %45, %48 : vector<16x128xf32>
    %50 = arith.addf %43, %49 : vector<16x128xf32>
    %c0_40 = arith.constant 0 : index
    %c0_41 = arith.constant 0 : index
    %51 = vector.load %arg4[%c0_40, %c0_41] : memref<1x128xf32, #tpu.memory_space<vmem>>, vector<1x128xf32>
    %52 = vector.broadcast %51 : vector<1x128xf32> to vector<16x128xf32>
    %53 = arith.addf %50, %52 : vector<16x128xf32>
    %cst_42 = arith.constant 0.000000e+00 : f32
    %54 = vector.broadcast %cst_42 : f32 to vector<16x128xf32>
    %55 = arith.maximumf %53, %54 : vector<16x128xf32>
    %56 = vector.broadcast %2 : vector<1x128xf32> to vector<16x128xf32>
    %57 = arith.mulf %55, %56 : vector<16x128xf32>
    %58 = arith.addf %30, %57 : vector<16x128xf32>
    %c6 = arith.constant 6 : index
    %c0_43 = arith.constant 0 : index
    %c0_44 = arith.constant 0 : index
    %59 = vector.load %arg1[%c6, %c0_43, %c0_44] : memref<9x16x128xf32, #tpu.memory_space<vmem>>, vector<1x16x128xf32>
    %60 = vector.shape_cast %59 : vector<1x16x128xf32> to vector<16x128xf32>
    %c0_45 = arith.constant 0 : index
    %c0_46 = arith.constant 0 : index
    %c0_47 = arith.constant 0 : index
    %61 = vector.load %arg3[%c0_45, %c0_46, %c0_47] : memref<3x1x128xf32, #tpu.memory_space<vmem>>, vector<1x1x128xf32>
    %62 = vector.shape_cast %61 : vector<1x1x128xf32> to vector<1x128xf32>
    %63 = vector.broadcast %62 : vector<1x128xf32> to vector<16x128xf32>
    %64 = arith.mulf %60, %63 : vector<16x128xf32>
    %c7 = arith.constant 7 : index
    %c0_48 = arith.constant 0 : index
    %c0_49 = arith.constant 0 : index
    %65 = vector.load %arg1[%c7, %c0_48, %c0_49] : memref<9x16x128xf32, #tpu.memory_space<vmem>>, vector<1x16x128xf32>
    %66 = vector.shape_cast %65 : vector<1x16x128xf32> to vector<16x128xf32>
    %c1_50 = arith.constant 1 : index
    %c0_51 = arith.constant 0 : index
    %c0_52 = arith.constant 0 : index
    %67 = vector.load %arg3[%c1_50, %c0_51, %c0_52] : memref<3x1x128xf32, #tpu.memory_space<vmem>>, vector<1x1x128xf32>
    %68 = vector.shape_cast %67 : vector<1x1x128xf32> to vector<1x128xf32>
    %69 = vector.broadcast %68 : vector<1x128xf32> to vector<16x128xf32>
    %70 = arith.mulf %66, %69 : vector<16x128xf32>
    %71 = arith.addf %64, %70 : vector<16x128xf32>
    %c8 = arith.constant 8 : index
    %c0_53 = arith.constant 0 : index
    %c0_54 = arith.constant 0 : index
    %72 = vector.load %arg1[%c8, %c0_53, %c0_54] : memref<9x16x128xf32, #tpu.memory_space<vmem>>, vector<1x16x128xf32>
    %73 = vector.shape_cast %72 : vector<1x16x128xf32> to vector<16x128xf32>
    %c2_55 = arith.constant 2 : index
    %c0_56 = arith.constant 0 : index
    %c0_57 = arith.constant 0 : index
    %74 = vector.load %arg3[%c2_55, %c0_56, %c0_57] : memref<3x1x128xf32, #tpu.memory_space<vmem>>, vector<1x1x128xf32>
    %75 = vector.shape_cast %74 : vector<1x1x128xf32> to vector<1x128xf32>
    %76 = vector.broadcast %75 : vector<1x128xf32> to vector<16x128xf32>
    %77 = arith.mulf %73, %76 : vector<16x128xf32>
    %78 = arith.addf %71, %77 : vector<16x128xf32>
    %c0_58 = arith.constant 0 : index
    %c0_59 = arith.constant 0 : index
    %79 = vector.load %arg4[%c0_58, %c0_59] : memref<1x128xf32, #tpu.memory_space<vmem>>, vector<1x128xf32>
    %80 = vector.broadcast %79 : vector<1x128xf32> to vector<16x128xf32>
    %81 = arith.addf %78, %80 : vector<16x128xf32>
    %cst_60 = arith.constant 0.000000e+00 : f32
    %82 = vector.broadcast %cst_60 : f32 to vector<16x128xf32>
    %83 = arith.maximumf %81, %82 : vector<16x128xf32>
    %84 = arith.mulf %83, %4 : vector<16x128xf32>
    %85 = arith.addf %58, %84 : vector<16x128xf32>
    %c0_61 = arith.constant 0 : index
    %c0_62 = arith.constant 0 : index
    %86 = vector.load %arg6[%c0_61, %c0_62] : memref<1x128xf32, #tpu.memory_space<vmem>>, vector<1x128xf32>
    %87 = vector.broadcast %86 : vector<1x128xf32> to vector<16x128xf32>
    %88 = arith.addf %85, %87 : vector<16x128xf32>
    %cst_63 = arith.constant 0.000000e+00 : f32
    %89 = vector.broadcast %cst_63 : f32 to vector<16x128xf32>
    %90 = arith.maximumf %88, %89 : vector<16x128xf32>
    %91 = arith.truncf %90 : vector<16x128xf32> to vector<16x128xbf16>
    %c0_64 = arith.constant 0 : index
    %c0_65 = arith.constant 0 : index
    %92 = vector.load %arg7[%c0_64, %c0_65] : memref<128x256xbf16, #tpu.memory_space<vmem>>, vector<128x256xbf16>
    %cst_66 = arith.constant dense<0.000000e+00> : vector<16x256xf32>
    %93 = tpu.matmul %91, %92, %cst_66 {dimension_numbers = #tpu.dot_dimension_numbers<[1], [0], [0], [1], [0, 0, 1, 1], [], []>} : vector<16x128xbf16>, vector<128x256xbf16>, vector<16x256xf32> -> vector<16x256xf32>
    %c0_67 = arith.constant 0 : index
    %c0_68 = arith.constant 0 : index
    %94 = vector.load %arg8[%c0_67, %c0_68] : memref<1x256xf32, #tpu.memory_space<vmem>>, vector<1x256xf32>
    %95 = vector.broadcast %94 : vector<1x256xf32> to vector<16x256xf32>
    %96 = arith.addf %93, %95 : vector<16x256xf32>
    %cst_69 = arith.constant 0.000000e+00 : f32
    %97 = vector.broadcast %cst_69 : f32 to vector<16x256xf32>
    %98 = arith.maximumf %96, %97 : vector<16x256xf32>
    %c0_70 = arith.constant 0 : index
    %c0_71 = arith.constant 0 : index
    %99 = vector.load %arg9[%c0_70, %c0_71] : memref<16x256xf32, #tpu.memory_space<vmem>>, vector<16x256xf32>
    tpu.vector_store %arg9[%c0_70, %c0_71], %98 {strides = array<i32>} : memref<16x256xf32, #tpu.memory_space<vmem>>, vector<16x256xf32>,
    return
  }
  func.func @transform_0(%arg0: i32) -> (i32, i32, i32) {
    %c0_i32 = arith.constant 0 : i32
    %c0_i32_0 = arith.constant 0 : i32
    %c0_i32_1 = arith.constant 0 : i32
    return %c0_i32, %arg0, %c0_i32_0 : i32, i32, i32
  }
  func.func @transform_1(%arg0: i32) -> (i32, i32, i32) {
    %c0_i32 = arith.constant 0 : i32
    %c0_i32_0 = arith.constant 0 : i32
    %c0_i32_1 = arith.constant 0 : i32
    return %c0_i32, %arg0, %c0_i32_0 : i32, i32, i32
  }
  func.func @transform_2(%arg0: i32) -> (i32, i32, i32) {
    %c0_i32 = arith.constant 0 : i32
    %c0_i32_0 = arith.constant 0 : i32
    %c0_i32_1 = arith.constant 0 : i32
    %c0_i32_2 = arith.constant 0 : i32
    return %c0_i32, %c0_i32_0, %c0_i32_1 : i32, i32, i32
  }
  func.func @transform_3(%arg0: i32) -> (i32, i32) {
    %c0_i32 = arith.constant 0 : i32
    %c0_i32_0 = arith.constant 0 : i32
    %c0_i32_1 = arith.constant 0 : i32
    return %c0_i32, %c0_i32_0 : i32, i32
  }
  func.func @transform_4(%arg0: i32) -> (i32, i32) {
    %c0_i32 = arith.constant 0 : i32
    %c0_i32_0 = arith.constant 0 : i32
    %c0_i32_1 = arith.constant 0 : i32
    return %c0_i32, %c0_i32_0 : i32, i32
  }
  func.func @transform_5(%arg0: i32) -> (i32, i32) {
    %c0_i32 = arith.constant 0 : i32
    %c0_i32_0 = arith.constant 0 : i32
    %c0_i32_1 = arith.constant 0 : i32
    return %c0_i32, %c0_i32_0 : i32, i32
  }
  func.func @transform_6(%arg0: i32) -> (i32, i32) {
    %c0_i32 = arith.constant 0 : i32
    %c0_i32_0 = arith.constant 0 : i32
    %c0_i32_1 = arith.constant 0 : i32
    return %c0_i32, %c0_i32_0 : i32, i32
  }
  func.func @transform_7(%arg0: i32) -> (i32, i32) {
    %c0_i32 = arith.constant 0 : i32
    %c0_i32_0 = arith.constant 0 : i32
    %c0_i32_1 = arith.constant 0 : i32
    return %c0_i32, %c0_i32_0 : i32, i32
  }
  func.func @transform_8(%arg0: i32) -> (i32, i32) {
    %c0_i32 = arith.constant 0 : i32
    %c0_i32_0 = arith.constant 0 : i32
    return %arg0, %c0_i32 : i32, i32
  }
}

module attributes {stable_mosaic.version = 11 : i64} {
  func.func @_spark_kernel(%arg0: i32, %arg1: memref<1x16x512xbf16, #tpu.memory_space<vmem>>, %arg2: memref<512x128xbf16, #tpu.memory_space<vmem>>, %arg3: memref<1x128xf32, #tpu.memory_space<vmem>>, %arg4: memref<128x256xbf16, #tpu.memory_space<vmem>>, %arg5: memref<1x256xf32, #tpu.memory_space<vmem>>, %arg6: memref<16x128xf32, #tpu.memory_space<vmem>>, %arg7: memref<16x256xf32, #tpu.memory_space<vmem>>) attributes {dimension_semantics = [#tpu.dimension_semantics<parallel>], iteration_bounds = array<i64: 1>, scalar_prefetch = 0 : i64, scratch_operands = 0 : i64, tpu.core_type = #tpu.core_type<tc>, window_params = [{transform_indices = @transform_0, window_bounds = array<i64: 1, 16, 512>}, {pipeline_mode = #tpu.pipeline_mode<synchronous>, transform_indices = @transform_1, window_bounds = array<i64: 512, 128>}, {pipeline_mode = #tpu.pipeline_mode<synchronous>, transform_indices = @transform_2, window_bounds = array<i64: 1, 128>}, {pipeline_mode = #tpu.pipeline_mode<synchronous>, transform_indices = @transform_3, window_bounds = array<i64: 128, 256>}, {pipeline_mode = #tpu.pipeline_mode<synchronous>, transform_indices = @transform_4, window_bounds = array<i64: 1, 256>}, {transform_indices = @transform_5, window_bounds = array<i64: 16, 128>}, {transform_indices = @transform_6, window_bounds = array<i64: 16, 256>}]} {
    %c0 = arith.constant 0 : index
    %c0_0 = arith.constant 0 : index
    %c0_1 = arith.constant 0 : index
    %0 = vector.load %arg1[%c0, %c0_0, %c0_1] : memref<1x16x512xbf16, #tpu.memory_space<vmem>>, vector<1x16x512xbf16>
    %1 = vector.shape_cast %0 : vector<1x16x512xbf16> to vector<16x512xbf16>
    %c0_2 = arith.constant 0 : index
    %c0_3 = arith.constant 0 : index
    %2 = vector.load %arg2[%c0_2, %c0_3] : memref<512x128xbf16, #tpu.memory_space<vmem>>, vector<512x128xbf16>
    %cst = arith.constant dense<0.000000e+00> : vector<16x128xf32>
    %3 = tpu.matmul %1, %2, %cst {dimension_numbers = #tpu.dot_dimension_numbers<[1], [0], [0], [1], [0, 0, 1, 1], [], []>} : vector<16x512xbf16>, vector<512x128xbf16>, vector<16x128xf32> -> vector<16x128xf32>
    %c0_4 = arith.constant 0 : index
    %c0_5 = arith.constant 0 : index
    %4 = vector.load %arg3[%c0_4, %c0_5] : memref<1x128xf32, #tpu.memory_space<vmem>>, vector<1x128xf32>
    %5 = vector.broadcast %4 : vector<1x128xf32> to vector<16x128xf32>
    %6 = arith.addf %3, %5 : vector<16x128xf32>
    %cst_6 = arith.constant 0.000000e+00 : f32
    %7 = vector.broadcast %cst_6 : f32 to vector<16x128xf32>
    %8 = arith.maximumf %6, %7 : vector<16x128xf32>
    %c0_7 = arith.constant 0 : index
    %c0_8 = arith.constant 0 : index
    %9 = vector.load %arg6[%c0_7, %c0_8] : memref<16x128xf32, #tpu.memory_space<vmem>>, vector<16x128xf32>
    tpu.vector_store %arg6[%c0_7, %c0_8], %8 {strides = array<i32>} : memref<16x128xf32, #tpu.memory_space<vmem>>, vector<16x128xf32>,
    %10 = arith.truncf %8 : vector<16x128xf32> to vector<16x128xbf16>
    %c0_9 = arith.constant 0 : index
    %c0_10 = arith.constant 0 : index
    %11 = vector.load %arg4[%c0_9, %c0_10] : memref<128x256xbf16, #tpu.memory_space<vmem>>, vector<128x256xbf16>
    %cst_11 = arith.constant dense<0.000000e+00> : vector<16x256xf32>
    %12 = tpu.matmul %10, %11, %cst_11 {dimension_numbers = #tpu.dot_dimension_numbers<[1], [0], [0], [1], [0, 0, 1, 1], [], []>} : vector<16x128xbf16>, vector<128x256xbf16>, vector<16x256xf32> -> vector<16x256xf32>
    %c0_12 = arith.constant 0 : index
    %c0_13 = arith.constant 0 : index
    %13 = vector.load %arg5[%c0_12, %c0_13] : memref<1x256xf32, #tpu.memory_space<vmem>>, vector<1x256xf32>
    %14 = vector.broadcast %13 : vector<1x256xf32> to vector<16x256xf32>
    %15 = arith.addf %12, %14 : vector<16x256xf32>
    %cst_14 = arith.constant 0.000000e+00 : f32
    %16 = vector.broadcast %cst_14 : f32 to vector<16x256xf32>
    %17 = arith.maximumf %15, %16 : vector<16x256xf32>
    %c0_15 = arith.constant 0 : index
    %c0_16 = arith.constant 0 : index
    %18 = vector.load %arg7[%c0_15, %c0_16] : memref<16x256xf32, #tpu.memory_space<vmem>>, vector<16x256xf32>
    tpu.vector_store %arg7[%c0_15, %c0_16], %17 {strides = array<i32>} : memref<16x256xf32, #tpu.memory_space<vmem>>, vector<16x256xf32>,
    return
  }
  func.func @transform_0(%arg0: i32) -> (i32, i32, i32) {
    %c0_i32 = arith.constant 0 : i32
    %c0_i32_0 = arith.constant 0 : i32
    %c0_i32_1 = arith.constant 0 : i32
    return %c0_i32, %arg0, %c0_i32_0 : i32, i32, i32
  }
  func.func @transform_1(%arg0: i32) -> (i32, i32) {
    %c0_i32 = arith.constant 0 : i32
    %c0_i32_0 = arith.constant 0 : i32
    %c0_i32_1 = arith.constant 0 : i32
    return %c0_i32, %c0_i32_0 : i32, i32
  }
  func.func @transform_2(%arg0: i32) -> (i32, i32) {
    %c0_i32 = arith.constant 0 : i32
    %c0_i32_0 = arith.constant 0 : i32
    %c0_i32_1 = arith.constant 0 : i32
    return %c0_i32, %c0_i32_0 : i32, i32
  }
  func.func @transform_3(%arg0: i32) -> (i32, i32) {
    %c0_i32 = arith.constant 0 : i32
    %c0_i32_0 = arith.constant 0 : i32
    %c0_i32_1 = arith.constant 0 : i32
    return %c0_i32, %c0_i32_0 : i32, i32
  }
  func.func @transform_4(%arg0: i32) -> (i32, i32) {
    %c0_i32 = arith.constant 0 : i32
    %c0_i32_0 = arith.constant 0 : i32
    %c0_i32_1 = arith.constant 0 : i32
    return %c0_i32, %c0_i32_0 : i32, i32
  }
  func.func @transform_5(%arg0: i32) -> (i32, i32) {
    %c0_i32 = arith.constant 0 : i32
    %c0_i32_0 = arith.constant 0 : i32
    return %arg0, %c0_i32 : i32, i32
  }
  func.func @transform_6(%arg0: i32) -> (i32, i32) {
    %c0_i32 = arith.constant 0 : i32
    %c0_i32_0 = arith.constant 0 : i32
    return %arg0, %c0_i32 : i32, i32
  }
}

module attributes {stable_mosaic.version = 11 : i64} {
  func.func @_pw_kernel(%arg0: i32, %arg1: memref<16x256xbf16, #tpu.memory_space<vmem>>, %arg2: memref<256x128xbf16, #tpu.memory_space<vmem>>, %arg3: memref<1x128xf32, #tpu.memory_space<vmem>>, %arg4: memref<16x128xf32, #tpu.memory_space<vmem>>) attributes {dimension_semantics = [#tpu.dimension_semantics<parallel>], iteration_bounds = array<i64: 1>, scalar_prefetch = 0 : i64, scratch_operands = 0 : i64, tpu.core_type = #tpu.core_type<tc>, window_params = [{transform_indices = @transform_0, window_bounds = array<i64: 16, 256>}, {pipeline_mode = #tpu.pipeline_mode<synchronous>, transform_indices = @transform_1, window_bounds = array<i64: 256, 128>}, {pipeline_mode = #tpu.pipeline_mode<synchronous>, transform_indices = @transform_2, window_bounds = array<i64: 1, 128>}, {transform_indices = @transform_3, window_bounds = array<i64: 16, 128>}]} {
    %c0 = arith.constant 0 : index
    %c0_0 = arith.constant 0 : index
    %0 = vector.load %arg1[%c0, %c0_0] : memref<16x256xbf16, #tpu.memory_space<vmem>>, vector<16x256xbf16>
    %c0_1 = arith.constant 0 : index
    %c0_2 = arith.constant 0 : index
    %1 = vector.load %arg2[%c0_1, %c0_2] : memref<256x128xbf16, #tpu.memory_space<vmem>>, vector<256x128xbf16>
    %cst = arith.constant dense<0.000000e+00> : vector<16x128xf32>
    %2 = tpu.matmul %0, %1, %cst {dimension_numbers = #tpu.dot_dimension_numbers<[1], [0], [0], [1], [0, 0, 1, 1], [], []>} : vector<16x256xbf16>, vector<256x128xbf16>, vector<16x128xf32> -> vector<16x128xf32>
    %c0_3 = arith.constant 0 : index
    %c0_4 = arith.constant 0 : index
    %3 = vector.load %arg3[%c0_3, %c0_4] : memref<1x128xf32, #tpu.memory_space<vmem>>, vector<1x128xf32>
    %4 = vector.broadcast %3 : vector<1x128xf32> to vector<16x128xf32>
    %5 = arith.addf %2, %4 : vector<16x128xf32>
    %cst_5 = arith.constant 0.000000e+00 : f32
    %6 = vector.broadcast %cst_5 : f32 to vector<16x128xf32>
    %7 = arith.maximumf %5, %6 : vector<16x128xf32>
    %c0_6 = arith.constant 0 : index
    %c0_7 = arith.constant 0 : index
    %8 = vector.load %arg4[%c0_6, %c0_7] : memref<16x128xf32, #tpu.memory_space<vmem>>, vector<16x128xf32>
    tpu.vector_store %arg4[%c0_6, %c0_7], %7 {strides = array<i32>} : memref<16x128xf32, #tpu.memory_space<vmem>>, vector<16x128xf32>,
    return
  }
  func.func @transform_0(%arg0: i32) -> (i32, i32) {
    %c0_i32 = arith.constant 0 : i32
    %c0_i32_0 = arith.constant 0 : i32
    return %arg0, %c0_i32 : i32, i32
  }
  func.func @transform_1(%arg0: i32) -> (i32, i32) {
    %c0_i32 = arith.constant 0 : i32
    %c0_i32_0 = arith.constant 0 : i32
    %c0_i32_1 = arith.constant 0 : i32
    return %c0_i32, %c0_i32_0 : i32, i32
  }
  func.func @transform_2(%arg0: i32) -> (i32, i32) {
    %c0_i32 = arith.constant 0 : i32
    %c0_i32_0 = arith.constant 0 : i32
    %c0_i32_1 = arith.constant 0 : i32
    return %c0_i32, %c0_i32_0 : i32, i32
  }
  func.func @transform_3(%arg0: i32) -> (i32, i32) {
    %c0_i32 = arith.constant 0 : i32
    %c0_i32_0 = arith.constant 0 : i32
    return %arg0, %c0_i32 : i32, i32
  }
}

module attributes {stable_mosaic.version = 11 : i64} {
  func.func @_dw_kernel(%arg0: i32, %arg1: memref<1x16x128xf32, #tpu.memory_space<vmem>>, %arg2: memref<1x1x128xf32, #tpu.memory_space<vmem>>, %arg3: memref<1x128xf32, #tpu.memory_space<vmem>>, %arg4: memref<16x128xf32, #tpu.memory_space<vmem>>) attributes {dimension_semantics = [#tpu.dimension_semantics<parallel>], iteration_bounds = array<i64: 1>, scalar_prefetch = 0 : i64, scratch_operands = 0 : i64, tpu.core_type = #tpu.core_type<tc>, window_params = [{transform_indices = @transform_0, window_bounds = array<i64: 1, 16, 128>}, {pipeline_mode = #tpu.pipeline_mode<synchronous>, transform_indices = @transform_1, window_bounds = array<i64: 1, 1, 128>}, {pipeline_mode = #tpu.pipeline_mode<synchronous>, transform_indices = @transform_2, window_bounds = array<i64: 1, 128>}, {transform_indices = @transform_3, window_bounds = array<i64: 16, 128>}]} {
    %c0 = arith.constant 0 : index
    %c0_0 = arith.constant 0 : index
    %c0_1 = arith.constant 0 : index
    %0 = vector.load %arg1[%c0, %c0_0, %c0_1] : memref<1x16x128xf32, #tpu.memory_space<vmem>>, vector<1x16x128xf32>
    %1 = vector.shape_cast %0 : vector<1x16x128xf32> to vector<16x128xf32>
    %c0_2 = arith.constant 0 : index
    %c0_3 = arith.constant 0 : index
    %c0_4 = arith.constant 0 : index
    %2 = vector.load %arg2[%c0_2, %c0_3, %c0_4] : memref<1x1x128xf32, #tpu.memory_space<vmem>>, vector<1x1x128xf32>
    %3 = vector.shape_cast %2 : vector<1x1x128xf32> to vector<1x128xf32>
    %4 = vector.broadcast %3 : vector<1x128xf32> to vector<16x128xf32>
    %5 = arith.mulf %1, %4 : vector<16x128xf32>
    %c0_5 = arith.constant 0 : index
    %c0_6 = arith.constant 0 : index
    %6 = vector.load %arg3[%c0_5, %c0_6] : memref<1x128xf32, #tpu.memory_space<vmem>>, vector<1x128xf32>
    %7 = vector.broadcast %6 : vector<1x128xf32> to vector<16x128xf32>
    %8 = arith.addf %5, %7 : vector<16x128xf32>
    %cst = arith.constant 0.000000e+00 : f32
    %9 = vector.broadcast %cst : f32 to vector<16x128xf32>
    %10 = arith.maximumf %8, %9 : vector<16x128xf32>
    %c0_7 = arith.constant 0 : index
    %c0_8 = arith.constant 0 : index
    %11 = vector.load %arg4[%c0_7, %c0_8] : memref<16x128xf32, #tpu.memory_space<vmem>>, vector<16x128xf32>
    tpu.vector_store %arg4[%c0_7, %c0_8], %10 {strides = array<i32>} : memref<16x128xf32, #tpu.memory_space<vmem>>, vector<16x128xf32>,
    return
  }
  func.func @transform_0(%arg0: i32) -> (i32, i32, i32) {
    %c0_i32 = arith.constant 0 : i32
    %c0_i32_0 = arith.constant 0 : i32
    %c0_i32_1 = arith.constant 0 : i32
    return %c0_i32, %arg0, %c0_i32_0 : i32, i32, i32
  }
  func.func @transform_1(%arg0: i32) -> (i32, i32, i32) {
    %c0_i32 = arith.constant 0 : i32
    %c0_i32_0 = arith.constant 0 : i32
    %c0_i32_1 = arith.constant 0 : i32
    %c0_i32_2 = arith.constant 0 : i32
    return %c0_i32, %c0_i32_0, %c0_i32_1 : i32, i32, i32
  }
  func.func @transform_2(%arg0: i32) -> (i32, i32) {
    %c0_i32 = arith.constant 0 : i32
    %c0_i32_0 = arith.constant 0 : i32
    %c0_i32_1 = arith.constant 0 : i32
    return %c0_i32, %c0_i32_0 : i32, i32
  }
  func.func @transform_3(%arg0: i32) -> (i32, i32) {
    %c0_i32 = arith.constant 0 : i32
    %c0_i32_0 = arith.constant 0 : i32
    return %arg0, %c0_i32 : i32, i32
  }
}

module attributes {stable_mosaic.version = 11 : i64} {
  func.func @_spark_kernel(%arg0: i32, %arg1: memref<1x16x512xbf16, #tpu.memory_space<vmem>>, %arg2: memref<512x128xbf16, #tpu.memory_space<vmem>>, %arg3: memref<1x128xf32, #tpu.memory_space<vmem>>, %arg4: memref<128x128xbf16, #tpu.memory_space<vmem>>, %arg5: memref<1x128xf32, #tpu.memory_space<vmem>>, %arg6: memref<16x128xf32, #tpu.memory_space<vmem>>, %arg7: memref<16x128xf32, #tpu.memory_space<vmem>>) attributes {dimension_semantics = [#tpu.dimension_semantics<parallel>], iteration_bounds = array<i64: 1>, scalar_prefetch = 0 : i64, scratch_operands = 0 : i64, tpu.core_type = #tpu.core_type<tc>, window_params = [{transform_indices = @transform_0, window_bounds = array<i64: 1, 16, 512>}, {pipeline_mode = #tpu.pipeline_mode<synchronous>, transform_indices = @transform_1, window_bounds = array<i64: 512, 128>}, {pipeline_mode = #tpu.pipeline_mode<synchronous>, transform_indices = @transform_2, window_bounds = array<i64: 1, 128>}, {pipeline_mode = #tpu.pipeline_mode<synchronous>, transform_indices = @transform_3, window_bounds = array<i64: 128, 128>}, {pipeline_mode = #tpu.pipeline_mode<synchronous>, transform_indices = @transform_4, window_bounds = array<i64: 1, 128>}, {transform_indices = @transform_5, window_bounds = array<i64: 16, 128>}, {transform_indices = @transform_6, window_bounds = array<i64: 16, 128>}]} {
    %c0 = arith.constant 0 : index
    %c0_0 = arith.constant 0 : index
    %c0_1 = arith.constant 0 : index
    %0 = vector.load %arg1[%c0, %c0_0, %c0_1] : memref<1x16x512xbf16, #tpu.memory_space<vmem>>, vector<1x16x512xbf16>
    %1 = vector.shape_cast %0 : vector<1x16x512xbf16> to vector<16x512xbf16>
    %c0_2 = arith.constant 0 : index
    %c0_3 = arith.constant 0 : index
    %2 = vector.load %arg2[%c0_2, %c0_3] : memref<512x128xbf16, #tpu.memory_space<vmem>>, vector<512x128xbf16>
    %cst = arith.constant dense<0.000000e+00> : vector<16x128xf32>
    %3 = tpu.matmul %1, %2, %cst {dimension_numbers = #tpu.dot_dimension_numbers<[1], [0], [0], [1], [0, 0, 1, 1], [], []>} : vector<16x512xbf16>, vector<512x128xbf16>, vector<16x128xf32> -> vector<16x128xf32>
    %c0_4 = arith.constant 0 : index
    %c0_5 = arith.constant 0 : index
    %4 = vector.load %arg3[%c0_4, %c0_5] : memref<1x128xf32, #tpu.memory_space<vmem>>, vector<1x128xf32>
    %5 = vector.broadcast %4 : vector<1x128xf32> to vector<16x128xf32>
    %6 = arith.addf %3, %5 : vector<16x128xf32>
    %cst_6 = arith.constant 0.000000e+00 : f32
    %7 = vector.broadcast %cst_6 : f32 to vector<16x128xf32>
    %8 = arith.maximumf %6, %7 : vector<16x128xf32>
    %c0_7 = arith.constant 0 : index
    %c0_8 = arith.constant 0 : index
    %9 = vector.load %arg6[%c0_7, %c0_8] : memref<16x128xf32, #tpu.memory_space<vmem>>, vector<16x128xf32>
    tpu.vector_store %arg6[%c0_7, %c0_8], %8 {strides = array<i32>} : memref<16x128xf32, #tpu.memory_space<vmem>>, vector<16x128xf32>,
    %10 = arith.truncf %8 : vector<16x128xf32> to vector<16x128xbf16>
    %c0_9 = arith.constant 0 : index
    %c0_10 = arith.constant 0 : index
    %11 = vector.load %arg4[%c0_9, %c0_10] : memref<128x128xbf16, #tpu.memory_space<vmem>>, vector<128x128xbf16>
    %cst_11 = arith.constant dense<0.000000e+00> : vector<16x128xf32>
    %12 = tpu.matmul %10, %11, %cst_11 {dimension_numbers = #tpu.dot_dimension_numbers<[1], [0], [0], [1], [0, 0, 1, 1], [], []>} : vector<16x128xbf16>, vector<128x128xbf16>, vector<16x128xf32> -> vector<16x128xf32>
    %c0_12 = arith.constant 0 : index
    %c0_13 = arith.constant 0 : index
    %13 = vector.load %arg5[%c0_12, %c0_13] : memref<1x128xf32, #tpu.memory_space<vmem>>, vector<1x128xf32>
    %14 = vector.broadcast %13 : vector<1x128xf32> to vector<16x128xf32>
    %15 = arith.addf %12, %14 : vector<16x128xf32>
    %cst_14 = arith.constant 0.000000e+00 : f32
    %16 = vector.broadcast %cst_14 : f32 to vector<16x128xf32>
    %17 = arith.maximumf %15, %16 : vector<16x128xf32>
    %c0_15 = arith.constant 0 : index
    %c0_16 = arith.constant 0 : index
    %18 = vector.load %arg7[%c0_15, %c0_16] : memref<16x128xf32, #tpu.memory_space<vmem>>, vector<16x128xf32>
    tpu.vector_store %arg7[%c0_15, %c0_16], %17 {strides = array<i32>} : memref<16x128xf32, #tpu.memory_space<vmem>>, vector<16x128xf32>,
    return
  }
  func.func @transform_0(%arg0: i32) -> (i32, i32, i32) {
    %c0_i32 = arith.constant 0 : i32
    %c0_i32_0 = arith.constant 0 : i32
    %c0_i32_1 = arith.constant 0 : i32
    return %c0_i32, %arg0, %c0_i32_0 : i32, i32, i32
  }
  func.func @transform_1(%arg0: i32) -> (i32, i32) {
    %c0_i32 = arith.constant 0 : i32
    %c0_i32_0 = arith.constant 0 : i32
    %c0_i32_1 = arith.constant 0 : i32
    return %c0_i32, %c0_i32_0 : i32, i32
  }
  func.func @transform_2(%arg0: i32) -> (i32, i32) {
    %c0_i32 = arith.constant 0 : i32
    %c0_i32_0 = arith.constant 0 : i32
    %c0_i32_1 = arith.constant 0 : i32
    return %c0_i32, %c0_i32_0 : i32, i32
  }
  func.func @transform_3(%arg0: i32) -> (i32, i32) {
    %c0_i32 = arith.constant 0 : i32
    %c0_i32_0 = arith.constant 0 : i32
    %c0_i32_1 = arith.constant 0 : i32
    return %c0_i32, %c0_i32_0 : i32, i32
  }
  func.func @transform_4(%arg0: i32) -> (i32, i32) {
    %c0_i32 = arith.constant 0 : i32
    %c0_i32_0 = arith.constant 0 : i32
    %c0_i32_1 = arith.constant 0 : i32
    return %c0_i32, %c0_i32_0 : i32, i32
  }
  func.func @transform_5(%arg0: i32) -> (i32, i32) {
    %c0_i32 = arith.constant 0 : i32
    %c0_i32_0 = arith.constant 0 : i32
    return %arg0, %c0_i32 : i32, i32
  }
  func.func @transform_6(%arg0: i32) -> (i32, i32) {
    %c0_i32 = arith.constant 0 : i32
    %c0_i32_0 = arith.constant 0 : i32
    return %arg0, %c0_i32 : i32, i32
  }
}

module attributes {stable_mosaic.version = 11 : i64} {
  func.func @_dw_kernel(%arg0: i32, %arg1: memref<2x16x128xf32, #tpu.memory_space<vmem>>, %arg2: memref<2x1x128xf32, #tpu.memory_space<vmem>>, %arg3: memref<1x128xf32, #tpu.memory_space<vmem>>, %arg4: memref<16x128xf32, #tpu.memory_space<vmem>>) attributes {dimension_semantics = [#tpu.dimension_semantics<parallel>], iteration_bounds = array<i64: 1>, scalar_prefetch = 0 : i64, scratch_operands = 0 : i64, tpu.core_type = #tpu.core_type<tc>, window_params = [{transform_indices = @transform_0, window_bounds = array<i64: 2, 16, 128>}, {pipeline_mode = #tpu.pipeline_mode<synchronous>, transform_indices = @transform_1, window_bounds = array<i64: 2, 1, 128>}, {pipeline_mode = #tpu.pipeline_mode<synchronous>, transform_indices = @transform_2, window_bounds = array<i64: 1, 128>}, {transform_indices = @transform_3, window_bounds = array<i64: 16, 128>}]} {
    %c0 = arith.constant 0 : index
    %c0_0 = arith.constant 0 : index
    %c0_1 = arith.constant 0 : index
    %0 = vector.load %arg1[%c0, %c0_0, %c0_1] : memref<2x16x128xf32, #tpu.memory_space<vmem>>, vector<1x16x128xf32>
    %1 = vector.shape_cast %0 : vector<1x16x128xf32> to vector<16x128xf32>
    %c0_2 = arith.constant 0 : index
    %c0_3 = arith.constant 0 : index
    %c0_4 = arith.constant 0 : index
    %2 = vector.load %arg2[%c0_2, %c0_3, %c0_4] : memref<2x1x128xf32, #tpu.memory_space<vmem>>, vector<1x1x128xf32>
    %3 = vector.shape_cast %2 : vector<1x1x128xf32> to vector<1x128xf32>
    %4 = vector.broadcast %3 : vector<1x128xf32> to vector<16x128xf32>
    %5 = arith.mulf %1, %4 : vector<16x128xf32>
    %c1 = arith.constant 1 : index
    %c0_5 = arith.constant 0 : index
    %c0_6 = arith.constant 0 : index
    %6 = vector.load %arg1[%c1, %c0_5, %c0_6] : memref<2x16x128xf32, #tpu.memory_space<vmem>>, vector<1x16x128xf32>
    %7 = vector.shape_cast %6 : vector<1x16x128xf32> to vector<16x128xf32>
    %c1_7 = arith.constant 1 : index
    %c0_8 = arith.constant 0 : index
    %c0_9 = arith.constant 0 : index
    %8 = vector.load %arg2[%c1_7, %c0_8, %c0_9] : memref<2x1x128xf32, #tpu.memory_space<vmem>>, vector<1x1x128xf32>
    %9 = vector.shape_cast %8 : vector<1x1x128xf32> to vector<1x128xf32>
    %10 = vector.broadcast %9 : vector<1x128xf32> to vector<16x128xf32>
    %11 = arith.mulf %7, %10 : vector<16x128xf32>
    %12 = arith.addf %5, %11 : vector<16x128xf32>
    %c0_10 = arith.constant 0 : index
    %c0_11 = arith.constant 0 : index
    %13 = vector.load %arg3[%c0_10, %c0_11] : memref<1x128xf32, #tpu.memory_space<vmem>>, vector<1x128xf32>
    %14 = vector.broadcast %13 : vector<1x128xf32> to vector<16x128xf32>
    %15 = arith.addf %12, %14 : vector<16x128xf32>
    %cst = arith.constant 0.000000e+00 : f32
    %16 = vector.broadcast %cst : f32 to vector<16x128xf32>
    %17 = arith.maximumf %15, %16 : vector<16x128xf32>
    %c0_12 = arith.constant 0 : index
    %c0_13 = arith.constant 0 : index
    %18 = vector.load %arg4[%c0_12, %c0_13] : memref<16x128xf32, #tpu.memory_space<vmem>>, vector<16x128xf32>
    tpu.vector_store %arg4[%c0_12, %c0_13], %17 {strides = array<i32>} : memref<16x128xf32, #tpu.memory_space<vmem>>, vector<16x128xf32>,
    return
  }
  func.func @transform_0(%arg0: i32) -> (i32, i32, i32) {
    %c0_i32 = arith.constant 0 : i32
    %c0_i32_0 = arith.constant 0 : i32
    %c0_i32_1 = arith.constant 0 : i32
    return %c0_i32, %arg0, %c0_i32_0 : i32, i32, i32
  }
  func.func @transform_1(%arg0: i32) -> (i32, i32, i32) {
    %c0_i32 = arith.constant 0 : i32
    %c0_i32_0 = arith.constant 0 : i32
    %c0_i32_1 = arith.constant 0 : i32
    %c0_i32_2 = arith.constant 0 : i32
    return %c0_i32, %c0_i32_0, %c0_i32_1 : i32, i32, i32
  }
  func.func @transform_2(%arg0: i32) -> (i32, i32) {
    %c0_i32 = arith.constant 0 : i32
    %c0_i32_0 = arith.constant 0 : i32
    %c0_i32_1 = arith.constant 0 : i32
    return %c0_i32, %c0_i32_0 : i32, i32
  }
  func.func @transform_3(%arg0: i32) -> (i32, i32) {
    %c0_i32 = arith.constant 0 : i32
    %c0_i32_0 = arith.constant 0 : i32
    return %arg0, %c0_i32 : i32, i32
  }
}

module attributes {stable_mosaic.version = 11 : i64} {
  func.func @_pw_kernel(%arg0: i32, %arg1: memref<16x128xbf16, #tpu.memory_space<vmem>>, %arg2: memref<128x128xbf16, #tpu.memory_space<vmem>>, %arg3: memref<1x128xf32, #tpu.memory_space<vmem>>, %arg4: memref<16x128xf32, #tpu.memory_space<vmem>>) attributes {dimension_semantics = [#tpu.dimension_semantics<parallel>], iteration_bounds = array<i64: 1>, scalar_prefetch = 0 : i64, scratch_operands = 0 : i64, tpu.core_type = #tpu.core_type<tc>, window_params = [{transform_indices = @transform_0, window_bounds = array<i64: 16, 128>}, {pipeline_mode = #tpu.pipeline_mode<synchronous>, transform_indices = @transform_1, window_bounds = array<i64: 128, 128>}, {pipeline_mode = #tpu.pipeline_mode<synchronous>, transform_indices = @transform_2, window_bounds = array<i64: 1, 128>}, {transform_indices = @transform_3, window_bounds = array<i64: 16, 128>}]} {
    %c0 = arith.constant 0 : index
    %c0_0 = arith.constant 0 : index
    %0 = vector.load %arg1[%c0, %c0_0] : memref<16x128xbf16, #tpu.memory_space<vmem>>, vector<16x128xbf16>
    %c0_1 = arith.constant 0 : index
    %c0_2 = arith.constant 0 : index
    %1 = vector.load %arg2[%c0_1, %c0_2] : memref<128x128xbf16, #tpu.memory_space<vmem>>, vector<128x128xbf16>
    %cst = arith.constant dense<0.000000e+00> : vector<16x128xf32>
    %2 = tpu.matmul %0, %1, %cst {dimension_numbers = #tpu.dot_dimension_numbers<[1], [0], [0], [1], [0, 0, 1, 1], [], []>} : vector<16x128xbf16>, vector<128x128xbf16>, vector<16x128xf32> -> vector<16x128xf32>
    %c0_3 = arith.constant 0 : index
    %c0_4 = arith.constant 0 : index
    %3 = vector.load %arg3[%c0_3, %c0_4] : memref<1x128xf32, #tpu.memory_space<vmem>>, vector<1x128xf32>
    %4 = vector.broadcast %3 : vector<1x128xf32> to vector<16x128xf32>
    %5 = arith.addf %2, %4 : vector<16x128xf32>
    %c0_5 = arith.constant 0 : index
    %c0_6 = arith.constant 0 : index
    %6 = vector.load %arg4[%c0_5, %c0_6] : memref<16x128xf32, #tpu.memory_space<vmem>>, vector<16x128xf32>
    tpu.vector_store %arg4[%c0_5, %c0_6], %5 {strides = array<i32>} : memref<16x128xf32, #tpu.memory_space<vmem>>, vector<16x128xf32>,
    return
  }
  func.func @transform_0(%arg0: i32) -> (i32, i32) {
    %c0_i32 = arith.constant 0 : i32
    %c0_i32_0 = arith.constant 0 : i32
    return %arg0, %c0_i32 : i32, i32
  }
  func.func @transform_1(%arg0: i32) -> (i32, i32) {
    %c0_i32 = arith.constant 0 : i32
    %c0_i32_0 = arith.constant 0 : i32
    %c0_i32_1 = arith.constant 0 : i32
    return %c0_i32, %c0_i32_0 : i32, i32
  }
  func.func @transform_2(%arg0: i32) -> (i32, i32) {
    %c0_i32 = arith.constant 0 : i32
    %c0_i32_0 = arith.constant 0 : i32
    %c0_i32_1 = arith.constant 0 : i32
    return %c0_i32, %c0_i32_0 : i32, i32
  }
  func.func @transform_3(%arg0: i32) -> (i32, i32) {
    %c0_i32 = arith.constant 0 : i32
    %c0_i32_0 = arith.constant 0 : i32
    return %arg0, %c0_i32 : i32, i32
  }
}

module attributes {stable_mosaic.version = 11 : i64} {
  func.func @_bilerp_kernel(%arg0: i32, %arg1: memref<16x128xf32, #tpu.memory_space<vmem>>, %arg2: memref<16x128xf32, #tpu.memory_space<vmem>>, %arg3: memref<16x128xf32, #tpu.memory_space<vmem>>, %arg4: memref<16x128xf32, #tpu.memory_space<vmem>>, %arg5: memref<16x128xf32, #tpu.memory_space<vmem>>, %arg6: memref<16x128xf32, #tpu.memory_space<vmem>>, %arg7: memref<16x128xf32, #tpu.memory_space<vmem>>) attributes {dimension_semantics = [#tpu.dimension_semantics<parallel>], iteration_bounds = array<i64: 1>, scalar_prefetch = 0 : i64, scratch_operands = 0 : i64, tpu.core_type = #tpu.core_type<tc>, window_params = [{transform_indices = @transform_0, window_bounds = array<i64: 16, 128>}, {transform_indices = @transform_1, window_bounds = array<i64: 16, 128>}, {transform_indices = @transform_2, window_bounds = array<i64: 16, 128>}, {transform_indices = @transform_3, window_bounds = array<i64: 16, 128>}, {transform_indices = @transform_4, window_bounds = array<i64: 16, 128>}, {transform_indices = @transform_5, window_bounds = array<i64: 16, 128>}, {transform_indices = @transform_6, window_bounds = array<i64: 16, 128>}]} {
    %c0 = arith.constant 0 : index
    %c0_0 = arith.constant 0 : index
    %0 = vector.load %arg6[%c0, %c0_0] : memref<16x128xf32, #tpu.memory_space<vmem>>, vector<16x128xf32>
    %c0_1 = arith.constant 0 : index
    %c0_2 = arith.constant 0 : index
    %1 = vector.load %arg1[%c0_1, %c0_2] : memref<16x128xf32, #tpu.memory_space<vmem>>, vector<16x128xf32>
    %c0_3 = arith.constant 0 : index
    %c0_4 = arith.constant 0 : index
    %2 = vector.load %arg2[%c0_3, %c0_4] : memref<16x128xf32, #tpu.memory_space<vmem>>, vector<16x128xf32>
    %c0_5 = arith.constant 0 : index
    %c0_6 = arith.constant 0 : index
    %3 = vector.load %arg1[%c0_5, %c0_6] : memref<16x128xf32, #tpu.memory_space<vmem>>, vector<16x128xf32>
    %4 = arith.subf %2, %3 : vector<16x128xf32>
    %5 = arith.mulf %0, %4 : vector<16x128xf32>
    %6 = arith.addf %1, %5 : vector<16x128xf32>
    %c0_7 = arith.constant 0 : index
    %c0_8 = arith.constant 0 : index
    %7 = vector.load %arg3[%c0_7, %c0_8] : memref<16x128xf32, #tpu.memory_space<vmem>>, vector<16x128xf32>
    %c0_9 = arith.constant 0 : index
    %c0_10 = arith.constant 0 : index
    %8 = vector.load %arg4[%c0_9, %c0_10] : memref<16x128xf32, #tpu.memory_space<vmem>>, vector<16x128xf32>
    %c0_11 = arith.constant 0 : index
    %c0_12 = arith.constant 0 : index
    %9 = vector.load %arg3[%c0_11, %c0_12] : memref<16x128xf32, #tpu.memory_space<vmem>>, vector<16x128xf32>
    %10 = arith.subf %8, %9 : vector<16x128xf32>
    %11 = arith.mulf %0, %10 : vector<16x128xf32>
    %12 = arith.addf %7, %11 : vector<16x128xf32>
    %c0_13 = arith.constant 0 : index
    %c0_14 = arith.constant 0 : index
    %13 = vector.load %arg5[%c0_13, %c0_14] : memref<16x128xf32, #tpu.memory_space<vmem>>, vector<16x128xf32>
    %14 = arith.subf %12, %6 : vector<16x128xf32>
    %15 = arith.mulf %13, %14 : vector<16x128xf32>
    %16 = arith.addf %6, %15 : vector<16x128xf32>
    %c0_15 = arith.constant 0 : index
    %c0_16 = arith.constant 0 : index
    %17 = vector.load %arg7[%c0_15, %c0_16] : memref<16x128xf32, #tpu.memory_space<vmem>>, vector<16x128xf32>
    tpu.vector_store %arg7[%c0_15, %c0_16], %16 {strides = array<i32>} : memref<16x128xf32, #tpu.memory_space<vmem>>, vector<16x128xf32>,
    return
  }
  func.func @transform_0(%arg0: i32) -> (i32, i32) {
    %c0_i32 = arith.constant 0 : i32
    %c0_i32_0 = arith.constant 0 : i32
    return %arg0, %c0_i32 : i32, i32
  }
  func.func @transform_1(%arg0: i32) -> (i32, i32) {
    %c0_i32 = arith.constant 0 : i32
    %c0_i32_0 = arith.constant 0 : i32
    return %arg0, %c0_i32 : i32, i32
  }
  func.func @transform_2(%arg0: i32) -> (i32, i32) {
    %c0_i32 = arith.constant 0 : i32
    %c0_i32_0 = arith.constant 0 : i32
    return %arg0, %c0_i32 : i32, i32
  }
  func.func @transform_3(%arg0: i32) -> (i32, i32) {
    %c0_i32 = arith.constant 0 : i32
    %c0_i32_0 = arith.constant 0 : i32
    return %arg0, %c0_i32 : i32, i32
  }
  func.func @transform_4(%arg0: i32) -> (i32, i32) {
    %c0_i32 = arith.constant 0 : i32
    %c0_i32_0 = arith.constant 0 : i32
    return %arg0, %c0_i32 : i32, i32
  }
  func.func @transform_5(%arg0: i32) -> (i32, i32) {
    %c0_i32 = arith.constant 0 : i32
    %c0_i32_0 = arith.constant 0 : i32
    return %arg0, %c0_i32 : i32, i32
  }
  func.func @transform_6(%arg0: i32) -> (i32, i32) {
    %c0_i32 = arith.constant 0 : i32
    %c0_i32_0 = arith.constant 0 : i32
    return %arg0, %c0_i32 : i32, i32
  }
}

</mosaic_0001>

<bundles_post_ra>
// kernel: segfast_forward.34
= control target key start
LH: loop header
LB: loop body
LE: loop exit
PB: predicated region body
PF: predicated region fallthrough
CT: control target
= control target key end

     0   :  { %s462_s6 = inlined_call_operand.vmem [shape: bf16[128,128], index: 6, kind: input, shape index: {}]   ;;  %s463_s0 = inlined_call_operand.vmem [shape: f32[9,16,128], index: 0, kind: input, shape index: {}]   ;;  %s464_s2 = inlined_call_operand.vmem [shape: f32[3,1,128], index: 2, kind: input, shape index: {}]   ;;  %s465_s4 = inlined_call_operand.vmem [shape: f32[1,128], index: 4, kind: input, shape index: {}]   ;;  %s466_s3 = inlined_call_operand.vmem [shape: f32[1,128], index: 3, kind: input, shape index: {}]   ;;  %s467_s5 = inlined_call_operand.vmem [shape: f32[1,128], index: 5, kind: input, shape index: {}]   ;;  %s468_s1 = inlined_call_operand.vmem [shape: f32[2,16,128], index: 1, kind: input, shape index: {}]   ;;  %s469_s7 = inlined_call_operand.vmem [shape: f32[1,128], index: 7, kind: input, shape index: {}]   ;;  %s470_s8 = inlined_call_operand.vmem [shape: f32[16,128], index: 8, kind: output, shape index: {}]  }
   0x1   :  { %v292_v0 = vld [vmem:[%s462_s6 + $0x38] sm:$0xff]  ;;  %v291_v1 = vld [vmem:[%s462_s6 + $0x30] sm:$0xff]  ;;  %v290_v2 = vld [vmem:[%s462_s6 + $0x28] sm:$0xff] }
   0x2   :  { %211 = vmatpush.bf16.msra.mxu0 %v292_v0  ;;  %v35_v3 = vld [vmem:[%s463_s0] sm:$0xff]  ;;  %v36_v4 = vld [vmem:[%s463_s0 + $0x8] sm:$0xff]  ;;  %v235_v6 = vld [vmem:[%s463_s0 + $0x10] sm:$0xff] }
   0x3   :  { %v293_v5 = vld [vmem:[%s464_s2] ss:$0 sm:$0xff]  ;;  %v236_v7 = vld [vmem:[%s463_s0 + $0x18] sm:$0xff]  ;;  %v294_v8 = vld [vmem:[%s464_s2 + $0x1] ss:$0 sm:$0xff] }
   0x4   :  { %v41_v9 = vmul.f32 %v293_v5, %v35_v3  ;;  %v42_v10 = vmul.f32 %v293_v5, %v36_v4  ;;  %v238_v11 = vld [vmem:[%s463_s0 + $0x20] sm:$0xff]  ;;  %v239_v12 = vld [vmem:[%s463_s0 + $0x28] sm:$0xff]  ;;  %v51_v14 = vmul.f32 %v294_v8, %v235_v6  ;;  %v52_v15 = vmul.f32 %v294_v8, %v236_v7  ;;  %v241_v18 = vld [vmem:[%s463_s0 + $0x30] sm:$0xff] }
   0x5   :  { %v289_v13 = vld [vmem:[%s462_s6 + $0x20] sm:$0xff]  ;;  %v242_v19 = vld [vmem:[%s463_s0 + $0x38] sm:$0xff]  ;;  %v244_v25 = vld [vmem:[%s463_s0 + $0x48] sm:$0xff]  ;;  %v80_v28 = vmul.f32 %v293_v5, %v241_v18 }
   0x6   :  { %212 = vmatpush.bf16.msra.mxu0 %v291_v1  ;;  %v295_v16 = vld [vmem:[%s464_s2 + $0x2] ss:$0 sm:$0xff]  ;;  %v296_v17 = vld [vmem:[%s466_s3] ss:$0 sm:$0xff]  ;;  %v53_v21 = vadd.f32 %v51_v14, %v41_v9  ;;  %v54_v22 = vadd.f32 %v52_v15, %v42_v10  ;;  %v245_v26 = vld [vmem:[%s463_s0 + $0x50] sm:$0xff]  ;;  %v81_v29 = vmul.f32 %v293_v5, %v242_v19  ;;  %v86_v31 = vmul.f32 %v294_v8, %v244_v25 }
   0x7   :  { %v243_v20 = vld [vmem:[%s463_s0 + $0x40] sm:$0xff]  ;;  %v63_v23 = vmul.f32 %v295_v16, %v238_v11  ;;  %v64_v24 = vmul.f32 %v295_v16, %v239_v12  ;;  %v246_v27 = vld [vmem:[%s463_s0 + $0x58] sm:$0xff]  ;;  %v248_v33 = vld [vmem:[%s463_s0 + $0x68] sm:$0xff]  ;;  %v92_v36 = vmul.f32 %v295_v16, %v245_v26 }
   0x8   :  { %v85_v30 = vmul.f32 %v294_v8, %v243_v20  ;;  %v247_v32 = vld [vmem:[%s463_s0 + $0x60] sm:$0xff]  ;;  %v93_v37 = vmul.f32 %v295_v16, %v246_v27  ;;  %v249_v38 = vld [vmem:[%s463_s0 + $0x70] sm:$0xff]  ;;  %v250_v39 = vld [vmem:[%s463_s0 + $0x78] sm:$0xff]  ;;  %v88_v42 = vadd.f32 %v86_v31, %v81_v29  ;;  %v111_v44 = vmul.f32 %v293_v5, %v248_v33 }
   0x9   :  { %v65_v34 = vadd.f32 %v63_v23, %v53_v21  ;;  %v66_v35 = vadd.f32 %v64_v24, %v54_v22  ;;  %v251_v40 = vld [vmem:[%s463_s0 + $0x80] sm:$0xff]  ;;  %v110_v43 = vmul.f32 %v293_v5, %v247_v32  ;;  %v252_v45 = vld [vmem:[%s463_s0 + $0x88] sm:$0xff]  ;;  %v288_v46 = vld [vmem:[%s462_s6 + $0x18] sm:$0xff]  ;;  %v115_v49 = vmul.f32 %v294_v8, %v249_v38 }
   0xa   :  { %213 = vmatpush.bf16.msra.mxu0 %v290_v2  ;;  %v87_v41 = vadd.f32 %v85_v30, %v80_v28  ;;  %v116_v50 = vmul.f32 %v294_v8, %v250_v39  ;;  %v95_v52 = vadd.f32 %v93_v37, %v88_v42  ;;  %v122_v53 = vmul.f32 %v295_v16, %v251_v40  ;;  %v29_v55 = vld [vmem:[%s468_s1] sm:$0xff]  ;;  %v30_v56 = vld [vmem:[%s468_s1 + $0x8] sm:$0xff]  ;;  %v287_v0 = vld [vmem:[%s462_s6 + $0x10] sm:$0xff] }
   0xb   :  { %v71_v47 = vadd.f32 %v296_v17, %v65_v34  ;;  %v72_v48 = vadd.f32 %v296_v17, %v66_v35  ;;  %v123_v54 = vmul.f32 %v295_v16, %v252_v45  ;;  %v117_v59 = vadd.f32 %v115_v49, %v110_v43  ;;  %v297_v63 = vld [vmem:[%s465_s4] ss:$0 sm:$0xff]  ;;  %v233_v9 = vld [vmem:[%s468_s1 + $0x10] sm:$0xff]  ;;  %v234_v10 = vld [vmem:[%s468_s1 + $0x18] sm:$0xff] }
   0xc   :  { %v94_v51 = vadd.f32 %v92_v36, %v87_v41  ;;  %v118_v60 = vadd.f32 %v116_v50, %v111_v44  ;;  %v97_v62 = vadd.f32 %v296_v17, %v95_v52  ;;  %v298_v20 = vld [vmem:[%s467_s5] ss:$0 sm:$0xff] }
   0xd   :  { %v73_v57 = vmax.f32 %v71_v47, 0.0  ;;  %v74_v58 = vmax.f32 %v72_v48, 0.0  ;;  %v124_v1 = vadd.f32 %v122_v53, %v117_v59  ;;  %v285_v21 = vld [vmem:[%s462_s6] sm:$0xff] }
   0xe   :  { %214 = vmatpush.bf16.msra.mxu0 %v289_v13  ;;  %v96_v61 = vadd.f32 %v296_v17, %v94_v51  ;;  %v125_v2 = vadd.f32 %v123_v54, %v118_v60  ;;  %v99_v6 = vmax.f32 %v97_v62, 0.0  ;;  %v286_v13 = vld [vmem:[%s462_s6 + $0x8] sm:$0xff]  ;;  %v299_v29 = vld [vmem:[%s469_s7] ss:$0 sm:$0xff] }
   0xf   :  { %v75_v3 = vmul.f32 %v73_v57, %v29_v55  ;;  %v76_v4 = vmul.f32 %v74_v58, %v30_v56  ;;  %v126_v7 = vadd.f32 %v296_v17, %v124_v1 }
  0x10   :  { %v98_v5 = vmax.f32 %v96_v61, 0.0  ;;  %v127_v8 = vadd.f32 %v296_v17, %v125_v2  ;;  %v104_v12 = vmul.f32 %v297_v63, %v99_v6 }
  0x11   :  { %v128_v14 = vmax.f32 %v126_v7, 0.0 }
  0x12   :  { %215 = vmatpush.bf16.msra.mxu0 %v288_v46  ;;  %v103_v11 = vmul.f32 %v297_v63, %v98_v5  ;;  %v129_v15 = vmax.f32 %v127_v8, 0.0  ;;  %v106_v18 = vadd.f32 %v104_v12, %v76_v4 }
  0x13   :  { %v130_v17 = vmul.f32 %v233_v9, %v128_v14 }
  0x14   :  { %v105_v16 = vadd.f32 %v103_v11, %v75_v3  ;;  %v131_v19 = vmul.f32 %v234_v10, %v129_v15 }
  0x16   :  { %216 = vmatpush.bf16.msra.mxu0 %v287_v0  ;;  %v132_v22 = vadd.f32 %v130_v17, %v105_v16  ;;  %v133_v23 = vadd.f32 %v131_v19, %v106_v18 }
  0x18   :  { %v138_v24 = vadd.f32 %v298_v20, %v132_v22  ;;  %v139_v25 = vadd.f32 %v298_v20, %v133_v23 }
  0x1a   :  { %217 = vmatpush.bf16.msra.mxu0 %v286_v13  ;;  %v140_v26 = vmax.f32 %v138_v24, 0.0  ;;  %v141_v27 = vmax.f32 %v139_v25, 0.0 }
  0x1c   :  { %v142_v28 = vpack.c.bf16 %v141_v27, %v140_v26 }
  0x1e   :  { %218 = vmatpush.bf16.msra.mxu0 %v285_v21 }
  0x21   :  { %219 = vmatmul.bf16.vlgmr.msra.gmra.mxu0 %v142_v28 }
  0x9e   :  { %v220_v30 = vpop.f32.mrf.mxu0 }
  0x9f   :  { %v221_v31 = vadd.f32 %v299_v29, %v220_v30 }
  0xa1   :  { %v225_v32 = vmax.f32 %v221_v31, 0.0 }
  0xa3   :  { %227 = vst [vmem:[%s470_s8] sm:$0xff] %v225_v32 }
  0xa6   :  { %v222_v33 = vpop.f32.mrf.mxu0 }
  0xa7   :  { %v223_v34 = vadd.f32 %v299_v29, %v222_v33 }
  0xa9   :  { %v226_v35 = vmax.f32 %v223_v34, 0.0 }
  0xab   :  { %228 = vst [vmem:[%s470_s8 + $0x8] sm:$0xff] %v226_v35 }

// kernel: segfast_forward.35
= control target key start
LH: loop header
LB: loop body
LE: loop exit
PB: predicated region body
PF: predicated region fallthrough
CT: control target
= control target key end

     0   :  { %s780_s1 = inlined_call_operand.vmem [shape: bf16[256,128], index: 1, kind: input, shape index: {}]   ;;  %s781_s0 = inlined_call_operand.vmem [shape: bf16[4,16,256], index: 0, kind: input, shape index: {}]   ;;  %s782_s3 = inlined_call_operand.vmem [shape: bf16[128,256], index: 3, kind: input, shape index: {}]   ;;  %s783_s2 = inlined_call_operand.vmem [shape: f32[1,128], index: 2, kind: input, shape index: {}]   ;;  %s784_s5 = inlined_call_operand.vmem [shape: f32[16,128], index: 5, kind: output, shape index: {0}]   ;;  %s785_s4 = inlined_call_operand.vmem [shape: f32[1,256], index: 4, kind: input, shape index: {}]   ;;  %s786_s6 = inlined_call_operand.vmem [shape: f32[16,256], index: 6, kind: output, shape index: {1}]  }
   0x1   :  { %v527_v0 = vld [vmem:[%s780_s1 + $0x38] sm:$0xff]  ;;  %v526_v2 = vld [vmem:[%s780_s1 + $0x30] sm:$0xff]  ;;  %v525_v4 = vld [vmem:[%s780_s1 + $0x28] sm:$0xff] }
   0x2   :  { %v535_v1 = vld [vmem:[%s780_s1 + $0x78] sm:$0xff]  ;;  %207 = vmatpush.bf16.msra.mxu0 %v527_v0  ;;  %v534_v3 = vld [vmem:[%s780_s1 + $0x70] sm:$0xff]  ;;  %v22_v5 = vld [vmem:[%s781_s0] sm:$0xff] }
   0x3   :  { %221 = vmatpush.bf16.msra.mxu1 %v535_v1  ;;  %v23_v6 = vld [vmem:[%s781_s0 + $0x8] sm:$0xff]  ;;  %v386_v8 = vld [vmem:[%s781_s0 + $0x10] sm:$0xff]  ;;  %v387_v9 = vld [vmem:[%s781_s0 + $0x18] sm:$0xff]  ;;  %v27_v10 = vunpack.c.l.bf16 %v22_v5  ;;  %v28_v11 = vunpack.c.h.bf16 %v22_v5 }
   0x4   :  { %v533_v7 = vld [vmem:[%s780_s1 + $0x68] sm:$0xff]  ;;  %v29_v12 = vunpack.c.l.bf16 %v23_v6  ;;  %v30_v13 = vunpack.c.h.bf16 %v23_v6  ;;  %v31_v14 = vunpack.c.l.bf16 %v386_v8  ;;  %v32_v15 = vunpack.c.h.bf16 %v386_v8  ;;  %v388_v18 = vld [vmem:[%s781_s0 + $0x20] sm:$0xff]  ;;  %v514_v21 = vld [vmem:[%s782_s3 + $0x70] sm:$0xf] }
   0x5   :  { %v33_v16 = vunpack.c.l.bf16 %v387_v9  ;;  %v34_v17 = vunpack.c.h.bf16 %v387_v9  ;;  %v389_v19 = vld [vmem:[%s781_s0 + $0x28] sm:$0xff]  ;;  %v524_v20 = vld [vmem:[%s780_s1 + $0x20] sm:$0xff]  ;;  %v551_v22 = vld [vmem:[%s782_s3 + $0x74] sm:$0xf0]  ;;  %v48_v32 = vunpack.c.l.bf16 %v388_v18  ;;  %v49_v33 = vunpack.c.h.bf16 %v388_v18 }
   0x6   :  { %208 = vmatpush.bf16.msra.mxu0 %v526_v2  ;;  %v550_v23 = vld [vmem:[%s782_s3 + $0x74] sm:$0xf]  ;;  %v35_v24 = vadd.f32 %v31_v14, %v27_v10  ;;  %v36_v25 = vadd.f32 %v32_v15, %v28_v11  ;;  %v516_v28 = vld [vmem:[%s782_s3 + $0x78] sm:$0xf0]  ;;  %v506_v29 = vld [vmem:[%s782_s3 + $0x60] sm:$0xf]  ;;  %v50_v34 = vunpack.c.l.bf16 %v389_v19  ;;  %v51_v35 = vunpack.c.h.bf16 %v389_v19 }
   0x7   :  { %222 = vmatpush.bf16.msra.mxu1 %v534_v3  ;;  %v37_v26 = vadd.f32 %v33_v16, %v29_v12  ;;  %v38_v27 = vadd.f32 %v34_v17, %v30_v13  ;;  %v549_v30 = vld [vmem:[%s782_s3 + $0x64] sm:$0xf0]  ;;  %v532_v31 = vld [vmem:[%s780_s1 + $0x60] sm:$0xff]  ;;  %v508_v37 = vld [vmem:[%s782_s3 + $0x68] sm:$0xf0]  ;;  %v515_v40 = vor.u32 %v551_v22, %v514_v21  ;;  %v519_v41 = vor.u32 %v550_v23, %v516_v28 }
   0x8   :  { %v548_v36 = vld [vmem:[%s782_s3 + $0x64] sm:$0xf]  ;;  %v39_v38 = vpack.c.bf16 %v36_v25, %v35_v24  ;;  %v507_v42 = vor.u32 %v549_v30, %v506_v29  ;;  %v523_v44 = vld [vmem:[%s780_s1 + $0x18] sm:$0xff]  ;;  %v498_v50 = vld [vmem:[%s782_s3 + $0x50] sm:$0xf] }
   0x9   :  { %v40_v39 = vpack.c.bf16 %v38_v27, %v37_v26  ;;  %v511_v43 = vor.u32 %v548_v36, %v508_v37  ;;  %342 = vmatpush.bf16.msra.mxu2 %v515_v40  ;;  %356 = vmatpush.bf16.msra.mxu3 %v519_v41  ;;  %v531_v49 = vld [vmem:[%s780_s1 + $0x58] sm:$0xff]  ;;  %v390_v56 = vld [vmem:[%s781_s0 + $0x30] sm:$0xff]  ;;  %v490_v63 = vld [vmem:[%s782_s3 + $0x40] sm:$0xf] }
   0xa   :  { %209 = vmatpush.bf16.msra.mxu0 %v525_v4  ;;  %v44_v45 = vunpack.c.l.bf16 %v39_v38  ;;  %v45_v46 = vunpack.c.h.bf16 %v39_v38  ;;  %v547_v51 = vld [vmem:[%s782_s3 + $0x54] sm:$0xf0]  ;;  %v546_v57 = vld [vmem:[%s782_s3 + $0x54] sm:$0xf]  ;;  %v500_v58 = vld [vmem:[%s782_s3 + $0x58] sm:$0xf0]  ;;  %v65_v3 = vunpack.c.l.bf16 %v390_v56  ;;  %v66_v6 = vunpack.c.h.bf16 %v390_v56 }
   0xb   :  { %223 = vmatpush.bf16.msra.mxu1 %v533_v7  ;;  %v46_v47 = vunpack.c.l.bf16 %v40_v39  ;;  %v47_v48 = vunpack.c.h.bf16 %v40_v39  ;;  %v391_v61 = vld [vmem:[%s781_s0 + $0x38] sm:$0xff]  ;;  %v499_v62 = vor.u32 %v547_v51, %v498_v50  ;;  %v545_v0 = vld [vmem:[%s782_s3 + $0x44] sm:$0xf0]  ;;  %v522_v1 = vld [vmem:[%s780_s1 + $0x10] sm:$0xff]  ;;  %v503_v4 = vor.u32 %v546_v57, %v500_v58 }
   0xc   :  { %v52_v52 = vadd.f32 %v48_v32, %v44_v45  ;;  %v53_v53 = vadd.f32 %v49_v33, %v45_v46  ;;  %v530_v2 = vld [vmem:[%s780_s1 + $0x50] sm:$0xff]  ;;  %v67_v5 = vunpack.c.l.bf16 %v391_v61  ;;  %v68_v7 = vunpack.c.h.bf16 %v391_v61  ;;  %v544_v9 = vld [vmem:[%s782_s3 + $0x44] sm:$0xf]  ;;  %v492_v10 = vld [vmem:[%s782_s3 + $0x48] sm:$0xf0] }
   0xd   :  { %v54_v54 = vadd.f32 %v50_v34, %v46_v47  ;;  %v55_v55 = vadd.f32 %v51_v35, %v47_v48  ;;  %343 = vmatpush.bf16.msra.mxu2 %v507_v42  ;;  %357 = vmatpush.bf16.msra.mxu3 %v511_v43  ;;  %v491_v8 = vor.u32 %v545_v0, %v490_v63  ;;  %v521_v15 = vld [vmem:[%s780_s1 + $0x8] sm:$0xff]  ;;  %v520_v22 = vld [vmem:[%s780_s1] sm:$0xff]  ;;  %v482_v26 = vld [vmem:[%s782_s3 + $0x30] sm:$0xf] }
   0xe   :  { %210 = vmatpush.bf16.msra.mxu0 %v524_v20  ;;  %v56_v59 = vpack.c.bf16 %v53_v53, %v52_v52  ;;  %v529_v16 = vld [vmem:[%s780_s1 + $0x48] sm:$0xff]  ;;  %v495_v17 = vor.u32 %v544_v9, %v492_v10  ;;  %v528_v23 = vld [vmem:[%s780_s1 + $0x40] sm:$0xff]  ;;  %v543_v27 = vld [vmem:[%s782_s3 + $0x34] sm:$0xf0] }
   0xf   :  { %224 = vmatpush.bf16.msra.mxu1 %v532_v31  ;;  %v57_v60 = vpack.c.bf16 %v55_v55, %v54_v54  ;;  %v542_v28 = vld [vmem:[%s782_s3 + $0x34] sm:$0xf]  ;;  %v483_v29 = vor.u32 %v543_v27, %v482_v26  ;;  %v484_v30 = vld [vmem:[%s782_s3 + $0x38] sm:$0xf0]  ;;  %v474_v32 = vld [vmem:[%s782_s3 + $0x20] sm:$0xf] }
  0x10   :  { %v61_v11 = vunpack.c.l.bf16 %v56_v59  ;;  %v62_v13 = vunpack.c.h.bf16 %v56_v59  ;;  %v487_v31 = vor.u32 %v542_v28, %v484_v30  ;;  %v541_v33 = vld [vmem:[%s782_s3 + $0x24] sm:$0xf0]  ;;  %v540_v34 = vld [vmem:[%s782_s3 + $0x24] sm:$0xf]  ;;  %v476_v36 = vld [vmem:[%s782_s3 + $0x28] sm:$0xf0] }
  0x11   :  { %v63_v12 = vunpack.c.l.bf16 %v57_v60  ;;  %v64_v14 = vunpack.c.h.bf16 %v57_v60  ;;  %344 = vmatpush.bf16.msra.mxu2 %v499_v62  ;;  %358 = vmatpush.bf16.msra.mxu3 %v503_v4  ;;  %v475_v35 = vor.u32 %v541_v33, %v474_v32  ;;  %v479_v37 = vor.u32 %v540_v34, %v476_v36  ;;  %v466_v38 = vld [vmem:[%s782_s3 + $0x10] sm:$0xf]  ;;  %v539_v39 = vld [vmem:[%s782_s3 + $0x14] sm:$0xf0]  ;;  %v538_v40 = vld [vmem:[%s782_s3 + $0x14] sm:$0xf] }
  0x12   :  { %211 = vmatpush.bf16.msra.mxu0 %v523_v44  ;;  %v69_v18 = vadd.f32 %v65_v3, %v61_v11  ;;  %v70_v20 = vadd.f32 %v66_v6, %v62_v13  ;;  %v467_v41 = vor.u32 %v539_v39, %v466_v38  ;;  %v468_v42 = vld [vmem:[%s782_s3 + $0x18] sm:$0xf0]  ;;  %v458_v44 = vld [vmem:[%s782_s3] sm:$0xf]  ;;  %v537_v45 = vld [vmem:[%s782_s3 + $0x4] sm:$0xf0] }
  0x13   :  { %225 = vmatpush.bf16.msra.mxu1 %v531_v49  ;;  %v71_v19 = vadd.f32 %v67_v5, %v63_v12  ;;  %v72_v21 = vadd.f32 %v68_v7, %v64_v14  ;;  %v471_v43 = vor.u32 %v538_v40, %v468_v42  ;;  %v536_v46 = vld [vmem:[%s782_s3 + $0x4] sm:$0xf]  ;;  %v459_v47 = vor.u32 %v537_v45, %v458_v44  ;;  %v460_v48 = vld [vmem:[%s782_s3 + $0x8] sm:$0xf0]  ;;  %v552_v50 = vld [vmem:[%s783_s2] ss:$0 sm:$0xff] }
  0x14   :  { %v463_v49 = vor.u32 %v536_v46, %v460_v48  ;;  %v256_v62 = vld [vmem:[%s785_s4] sm:$0x3] }
  0x15   :  { %345 = vmatpush.bf16.msra.mxu2 %v491_v8  ;;  %359 = vmatpush.bf16.msra.mxu3 %v495_v17  ;;  %v73_v24 = vpack.c.bf16 %v71_v19, %v69_v18  ;;  %v74_v25 = vpack.c.bf16 %v72_v21, %v70_v20  ;;  %v258_v63 = vperm.slane %v256_v62, 0  ;;  %v259_v0 = vperm.slane %v256_v62, 1 }
  0x16   :  { %212 = vmatpush.bf16.msra.mxu0 %v522_v1 }
  0x17   :  { %226 = vmatpush.bf16.msra.mxu1 %v530_v2 }
  0x19   :  { %346 = vmatpush.bf16.msra.mxu2 %v483_v29  ;;  %360 = vmatpush.bf16.msra.mxu3 %v487_v31 }
  0x1a   :  { %213 = vmatpush.bf16.msra.mxu0 %v521_v15 }
  0x1b   :  { %227 = vmatpush.bf16.msra.mxu1 %v529_v16 }
  0x1d   :  { %347 = vmatpush.bf16.msra.mxu2 %v475_v35  ;;  %361 = vmatpush.bf16.msra.mxu3 %v479_v37 }
  0x1e   :  { %214 = vmatpush.bf16.msra.mxu0 %v520_v22 }
  0x1f   :  { %228 = vmatpush.bf16.msra.mxu1 %v528_v23 }
  0x21   :  { %215 = vmatmul.bf16.vlgmr.msra.gmra.mxu0 %v73_v24  ;;  %348 = vmatpush.bf16.msra.mxu2 %v467_v41 }
  0x22   :  { %229 = vmatmul.bf16.vlgmr.msra.gmra.mxu1 %v74_v25  ;;  %362 = vmatpush.bf16.msra.mxu3 %v471_v43 }
  0x25   :  { %349 = vmatpush.bf16.msra.mxu2 %v459_v47 }
  0x26   :  { %363 = vmatpush.bf16.msra.mxu3 %v463_v49 }
  0x9e   :  { %v216_v51 = vpop.f32.mrf.mxu0 }
  0x9f   :  { %v230_v52 = vpop.f32.mrf.mxu1  ;;  %v217_v53 = vadd.f32 %v552_v50, %v216_v51 }
  0xa1   :  { %v231_v54 = vadd.f32 %v230_v52, %v217_v53 }
  0xa3   :  { %v235_v55 = vmax.f32 %v231_v54, 0.0 }
  0xa5   :  { %237 = vst [vmem:[%s784_s5] sm:$0xff] %v235_v55 }
  0xa6   :  { %v218_v56 = vpop.f32.mrf.mxu0 }
  0xa7   :  { %v219_v57 = vadd.f32 %v552_v50, %v218_v56  ;;  %v232_v58 = vpop.f32.mrf.mxu1 }
  0xa9   :  { %v233_v59 = vadd.f32 %v232_v58, %v219_v57 }
  0xab   :  { %v236_v60 = vmax.f32 %v233_v59, 0.0 }
  0xad   :  { %238 = vst [vmem:[%s784_s5 + $0x8] sm:$0xff] %v236_v60  ;;  %v239_v61 = vpack.c.bf16 %v236_v60, %v235_v55 }
  0xaf   :  { %350 = vmatmul.bf16.vlgmr.msra.gmra.mxu2 %v239_v61  ;;  %364 = vmatmul.bf16.vlgmr.msra.gmra.mxu3 %v239_v61 }
 0x132   :  { %v351_v1 = vpop.f32.mrf.mxu2  ;;  %v365_v2 = vpop.f32.mrf.mxu3 }
 0x133   :  { %v352_v3 = vadd.f32 %v351_v1, %v258_v63  ;;  %v366_v4 = vadd.f32 %v365_v2, %v259_v0 }
 0x135   :  { %v370_v5 = vmax.f32 %v352_v3, 0.0  ;;  %v371_v6 = vmax.f32 %v366_v4, 0.0 }
 0x137   :  { %374 = vst [vmem:[%s786_s6] sm:$0xff] %v370_v5 }
 0x138   :  { %375 = vst [vmem:[%s786_s6 + $0x8] sm:$0xff] %v371_v6 }
 0x13a   :  { %v353_v7 = vpop.f32.mrf.mxu2  ;;  %v367_v8 = vpop.f32.mrf.mxu3 }
 0x13b   :  { %v354_v9 = vadd.f32 %v353_v7, %v258_v63  ;;  %v368_v10 = vadd.f32 %v367_v8, %v259_v0 }
 0x13d   :  { %v372_v11 = vmax.f32 %v354_v9, 0.0  ;;  %v373_v12 = vmax.f32 %v368_v10, 0.0 }
 0x13f   :  { %376 = vst [vmem:[%s786_s6 + $0x10] sm:$0xff] %v372_v11 }
 0x140   :  { %377 = vst [vmem:[%s786_s6 + $0x18] sm:$0xff] %v373_v12 }

// kernel: mul.172
= control target key start
LH: loop header
LB: loop body
LE: loop exit
PB: predicated region body
PF: predicated region fallthrough
CT: control target
= control target key end

     0   :  { %vm11_vm0 = vcmask 31744   ;;  %s70_s10 = smov 20   ;;  %s71_s11 = smov 12   ;;  %vm17_vm1 = vcmask 261344   ;;  %vm23_vm2 = vcmask 228544   ;;  %vm29_vm3 = vcmask 195744   ;;  %s95_s0 = inlined_call_operand.vmem [shape: f32[2,4,4], index: 0, kind: input, shape index: {}]   ;;  %s96_s1 = inlined_call_operand.vmem [shape: f32[32], index: 1, kind: output, shape index: {}]  }
   0x1   :  { %v61_v0 = vld [vmem:[%s95_s0 + $0x4] sm:$0xf]  ;;  %v8_v1 = vld [vmem:[%s95_s0] sm:$0xf]  ;;  %s69_s0 = smov 28   ;;  %s72_s12 = smov 24  }
   0x2   :  { %7 = vst [vmem:[#allocation1 + $0x8] sm:$0xf] %v61_v0  ;;  %s73_s13 = smov 16   ;;  %s74_s14 = smov 8   ;;  %vm35_vm4 = vcmask 162944   ;;  %vm41_vm5 = vcmask 130144  }
   0x3   :  { %9 = vst [vmem:[#allocation1] sm:$0xf] %v8_v1  ;;  %s75_s15 = smov 4   ;;  %vm47_vm6 = vcmask 97344   ;;  %vm53_vm7 = vcmask 64544  }
   0x9   :  { %v14_v2 = vld [vmem:[#allocation1 + $0xb] sm:$0x1]   ;;  %v26_v3 = vld [vmem:[#allocation1 + $0x9] sm:$0x1]   ;;  %v20_v6 = vld [vmem:[#allocation1 + $0xa] sm:$0x1]  }
   0xa   :  { %15 = vrot.lane.b32.xlu0 %v14_v2, %s69_s0  ;;  %27 = vrot.lane.b32.xlu1 %v26_v3, %s70_s10  ;;  %v38_v4 = vld [vmem:[#allocation1 + $0x3] sm:$0x1]   ;;  %v10_v5 = vld [vmem:[#allocation1] sm:$0x1]   ;;  %v32_v7 = vld [vmem:[#allocation1 + $0x8] sm:$0x1]  }
   0xb   :  { %39 = vrot.lane.b32.xlu2 %v38_v4, %s71_s11  ;;  %12 = vst.msk [vmem:[#allocation0] sm:$0x1] %vm11_vm0, %v10_v5   ;;  %v44_v8 = vld [vmem:[#allocation1 + $0x2] sm:$0x1]   ;;  %v50_v9 = vld [vmem:[#allocation1 + $0x1] sm:$0x1]  }
  0x12   :  { %21 = vrot.lane.b32.xlu0 %v20_v6, %s72_s12  ;;  %33 = vrot.lane.b32.xlu1 %v32_v7, %s73_s13 }
  0x13   :  { %45 = vrot.lane.b32.xlu2 %v44_v8, %s74_s14 }
  0x1a   :  { %51 = vrot.lane.b32.xlu0 %v50_v9, %s75_s15 }
  0x65   :  { %v40_v10 = vpop.permute.xlu2 %39  }
  0x6d   :  { %v46_v11 = vpop.permute.xlu2 %45  }
  0x7c   :  { %v16_v12 = vpop.permute.xlu0 %15   ;;  %v28_v13 = vpop.permute.xlu1 %27  }
  0x7d   :  { %18 = vst.msk [vmem:[#allocation0] sm:$0x1] %vm17_vm1, %v16_v12  }
  0x84   :  { %v22_v14 = vpop.permute.xlu0 %21   ;;  %v34_v15 = vpop.permute.xlu1 %33  }
  0x85   :  { %24 = vst.msk [vmem:[#allocation0] sm:$0x1] %vm23_vm2, %v22_v14  }
  0x86   :  { %30 = vst.msk [vmem:[#allocation0] sm:$0x1] %vm29_vm3, %v28_v13  }
  0x87   :  { %36 = vst.msk [vmem:[#allocation0] sm:$0x1] %vm35_vm4, %v34_v15  }
  0x88   :  { %42 = vst.msk [vmem:[#allocation0] sm:$0x1] %vm41_vm5, %v40_v10  }
  0x89   :  { %48 = vst.msk [vmem:[#allocation0] sm:$0x1] %vm47_vm6, %v46_v11  }
  0x8c   :  { %v52_v16 = vpop.permute.xlu0 %51  }
  0x8d   :  { %54 = vst.msk [vmem:[#allocation0] sm:$0x1] %vm53_vm7, %v52_v16  }
  0x94   :  { %v57_v17 = vld [vmem:[#allocation0] sm:$0x1] }
  0x95   :  { %60 = vst [vmem:[%s96_s1] sm:$0x1] %v57_v17 }

// kernel: segfast_forward.36
= control target key start
LH: loop header
LB: loop body
LE: loop exit
PB: predicated region body
PF: predicated region fallthrough
CT: control target
= control target key end

     0   :  { %s666_s6 = inlined_call_operand.vmem [shape: bf16[128,256], index: 6, kind: input, shape index: {}]   ;;  %s667_s0 = inlined_call_operand.vmem [shape: f32[9,16,128], index: 0, kind: input, shape index: {}]   ;;  %s668_s2 = inlined_call_operand.vmem [shape: f32[3,1,128], index: 2, kind: input, shape index: {}]   ;;  %s669_s4 = inlined_call_operand.vmem [shape: f32[1,128], index: 4, kind: input, shape index: {}]   ;;  %s670_s3 = inlined_call_operand.vmem [shape: f32[1,128], index: 3, kind: input, shape index: {}]   ;;  %s671_s5 = inlined_call_operand.vmem [shape: f32[1,128], index: 5, kind: input, shape index: {}]   ;;  %s672_s1 = inlined_call_operand.vmem [shape: f32[2,16,128], index: 1, kind: input, shape index: {}]   ;;  %s673_s7 = inlined_call_operand.vmem [shape: f32[1,256], index: 7, kind: input, shape index: {}]   ;;  %s674_s8 = inlined_call_operand.vmem [shape: f32[16,256], index: 8, kind: output, shape index: {}]  }
   0x1   :  { %v363_v0 = vld [vmem:[%s666_s6 + $0x70] sm:$0xf]  ;;  %v384_v1 = vld [vmem:[%s666_s6 + $0x74] sm:$0xf0]  ;;  %v383_v2 = vld [vmem:[%s666_s6 + $0x74] sm:$0xf] }
   0x2   :  { %v364_v3 = vor.u32 %v384_v1, %v363_v0  ;;  %v365_v4 = vld [vmem:[%s666_s6 + $0x78] sm:$0xf0]  ;;  %v355_v5 = vld [vmem:[%s666_s6 + $0x60] sm:$0xf]  ;;  %v382_v6 = vld [vmem:[%s666_s6 + $0x64] sm:$0xf0] }
   0x3   :  { %v368_v7 = vor.u32 %v383_v2, %v365_v4  ;;  %v381_v8 = vld [vmem:[%s666_s6 + $0x64] sm:$0xf]  ;;  %v357_v9 = vld [vmem:[%s666_s6 + $0x68] sm:$0xf0]  ;;  %v356_v10 = vor.u32 %v382_v6, %v355_v5  ;;  %v347_v12 = vld [vmem:[%s666_s6 + $0x50] sm:$0xf] }
   0x4   :  { %245 = vmatpush.bf16.msra.mxu0 %v364_v3  ;;  %v360_v11 = vor.u32 %v381_v8, %v357_v9  ;;  %v380_v13 = vld [vmem:[%s666_s6 + $0x54] sm:$0xf0]  ;;  %v379_v14 = vld [vmem:[%s666_s6 + $0x54] sm:$0xf]  ;;  %v349_v15 = vld [vmem:[%s666_s6 + $0x58] sm:$0xf0] }
   0x5   :  { %259 = vmatpush.bf16.msra.mxu1 %v368_v7  ;;  %v348_v16 = vor.u32 %v380_v13, %v347_v12  ;;  %v352_v17 = vor.u32 %v379_v14, %v349_v15  ;;  %v339_v18 = vld [vmem:[%s666_s6 + $0x40] sm:$0xf]  ;;  %v378_v19 = vld [vmem:[%s666_s6 + $0x44] sm:$0xf0]  ;;  %v377_v20 = vld [vmem:[%s666_s6 + $0x44] sm:$0xf] }
   0x6   :  { %v341_v21 = vld [vmem:[%s666_s6 + $0x48] sm:$0xf0]  ;;  %v331_v22 = vld [vmem:[%s666_s6 + $0x30] sm:$0xf]  ;;  %v376_v23 = vld [vmem:[%s666_s6 + $0x34] sm:$0xf0]  ;;  %v340_v24 = vor.u32 %v378_v19, %v339_v18 }
   0x7   :  { %v375_v25 = vld [vmem:[%s666_s6 + $0x34] sm:$0xf]  ;;  %v333_v26 = vld [vmem:[%s666_s6 + $0x38] sm:$0xf0]  ;;  %v344_v27 = vor.u32 %v377_v20, %v341_v21  ;;  %v499_v28 = vld [vmem:[%s666_s6 + $0x20] sm:$0xf]  ;;  %v332_v42 = vor.u32 %v376_v23, %v331_v22 }
   0x8   :  { %246 = vmatpush.bf16.msra.mxu0 %v356_v10  ;;  %v504_v29 = vld [vmem:[%s666_s6 + $0x24] sm:$0xf0]  ;;  %v509_v30 = vld [vmem:[%s666_s6 + $0x24] sm:$0xf]  ;;  %v514_v31 = vld [vmem:[%s666_s6 + $0x28] sm:$0xf0]  ;;  %v336_v47 = vor.u32 %v375_v25, %v333_v26 }
   0x9   :  { %260 = vmatpush.bf16.msra.mxu1 %v360_v11  ;;  %v519_v32 = vld [vmem:[%s666_s6 + $0x10] sm:$0xf]  ;;  %v524_v33 = vld [vmem:[%s666_s6 + $0x14] sm:$0xf0]  ;;  %v529_v34 = vld [vmem:[%s666_s6 + $0x14] sm:$0xf]  ;;  %v324_v52 = vor.u32 %v504_v29, %v499_v28  ;;  %v328_v53 = vor.u32 %v509_v30, %v514_v31 }
   0xa   :  { %v534_v35 = vld [vmem:[%s666_s6 + $0x18] sm:$0xf0]  ;;  %v35_v36 = vld [vmem:[%s667_s0] sm:$0xff]  ;;  %v36_v37 = vld [vmem:[%s667_s0 + $0x8] sm:$0xff]  ;;  %v316_v54 = vor.u32 %v524_v33, %v519_v32 }
   0xb   :  { %v385_v38 = vld [vmem:[%s668_s2] ss:$0 sm:$0xff]  ;;  %v287_v39 = vld [vmem:[%s667_s0 + $0x10] sm:$0xff]  ;;  %v288_v40 = vld [vmem:[%s667_s0 + $0x18] sm:$0xff]  ;;  %v320_v55 = vor.u32 %v529_v34, %v534_v35 }
   0xc   :  { %247 = vmatpush.bf16.msra.mxu0 %v348_v16  ;;  %v386_v41 = vld [vmem:[%s668_s2 + $0x1] ss:$0 sm:$0xff]  ;;  %v41_v43 = vmul.f32 %v385_v38, %v35_v36  ;;  %v42_v44 = vmul.f32 %v385_v38, %v36_v37  ;;  %v291_v46 = vld [vmem:[%s667_s0 + $0x28] sm:$0xff]  ;;  %v387_v50 = vld [vmem:[%s668_s2 + $0x2] ss:$0 sm:$0xff] }
   0xd   :  { %261 = vmatpush.bf16.msra.mxu1 %v352_v17  ;;  %v290_v45 = vld [vmem:[%s667_s0 + $0x20] sm:$0xff]  ;;  %v51_v48 = vmul.f32 %v386_v41, %v287_v39  ;;  %v52_v49 = vmul.f32 %v386_v41, %v288_v40  ;;  %v293_v56 = vld [vmem:[%s667_s0 + $0x30] sm:$0xff]  ;;  %v294_v57 = vld [vmem:[%s667_s0 + $0x38] sm:$0xff]  ;;  %v64_v62 = vmul.f32 %v387_v50, %v291_v46 }
   0xe   :  { %v566_v51 = vld [vmem:[%s670_s3] ss:$0 sm:$0xff]  ;;  %v63_v61 = vmul.f32 %v387_v50, %v290_v45  ;;  %v296_v63 = vld [vmem:[%s667_s0 + $0x48] sm:$0xff]  ;;  %v297_v0 = vld [vmem:[%s667_s0 + $0x50] sm:$0xff]  ;;  %v80_v2 = vmul.f32 %v385_v38, %v293_v56  ;;  %v81_v3 = vmul.f32 %v385_v38, %v294_v57 }
   0xf   :  { %v295_v58 = vld [vmem:[%s667_s0 + $0x40] sm:$0xff]  ;;  %v53_v59 = vadd.f32 %v51_v48, %v41_v43  ;;  %v54_v60 = vadd.f32 %v52_v49, %v42_v44  ;;  %v298_v1 = vld [vmem:[%s667_s0 + $0x58] sm:$0xff]  ;;  %v86_v5 = vmul.f32 %v386_v41, %v296_v63  ;;  %v300_v7 = vld [vmem:[%s667_s0 + $0x68] sm:$0xff]  ;;  %v92_v10 = vmul.f32 %v387_v50, %v297_v0 }
  0x10   :  { %248 = vmatpush.bf16.msra.mxu0 %v340_v24  ;;  %v85_v4 = vmul.f32 %v386_v41, %v295_v58  ;;  %v299_v6 = vld [vmem:[%s667_s0 + $0x60] sm:$0xff]  ;;  %v93_v11 = vmul.f32 %v387_v50, %v298_v1  ;;  %v301_v12 = vld [vmem:[%s667_s0 + $0x70] sm:$0xff]  ;;  %v302_v13 = vld [vmem:[%s667_s0 + $0x78] sm:$0xff]  ;;  %v111_v18 = vmul.f32 %v385_v38, %v300_v7 }
  0x11   :  { %262 = vmatpush.bf16.msra.mxu1 %v344_v27  ;;  %v65_v8 = vadd.f32 %v63_v61, %v53_v59  ;;  %v66_v9 = vadd.f32 %v64_v62, %v54_v60  ;;  %v303_v14 = vld [vmem:[%s667_s0 + $0x80] sm:$0xff]  ;;  %v88_v16 = vadd.f32 %v86_v5, %v81_v3  ;;  %v110_v17 = vmul.f32 %v385_v38, %v299_v6  ;;  %v304_v19 = vld [vmem:[%s667_s0 + $0x88] sm:$0xff]  ;;  %v285_v56 = vld [vmem:[%s672_s1 + $0x10] sm:$0xff] }
  0x12   :  { %v87_v15 = vadd.f32 %v85_v4, %v80_v2  ;;  %v115_v22 = vmul.f32 %v386_v41, %v301_v12  ;;  %v116_v23 = vmul.f32 %v386_v41, %v302_v13  ;;  %v307_v24 = vld [vmem:[%s666_s6] sm:$0xf]  ;;  %v370_v25 = vld [vmem:[%s666_s6 + $0x4] sm:$0xf0]  ;;  %v122_v28 = vmul.f32 %v387_v50, %v303_v14  ;;  %v369_v38 = vld [vmem:[%s666_s6 + $0x4] sm:$0xf] }
  0x13   :  { %v71_v20 = vadd.f32 %v566_v51, %v65_v8  ;;  %v72_v21 = vadd.f32 %v566_v51, %v66_v9  ;;  %v95_v27 = vadd.f32 %v93_v11, %v88_v16  ;;  %v123_v29 = vmul.f32 %v387_v50, %v304_v19  ;;  %v29_v30 = vld [vmem:[%s672_s1] sm:$0xff]  ;;  %v30_v31 = vld [vmem:[%s672_s1 + $0x8] sm:$0xff] }
  0x14   :  { %249 = vmatpush.bf16.msra.mxu0 %v332_v42  ;;  %v94_v26 = vadd.f32 %v92_v10, %v87_v15  ;;  %v117_v36 = vadd.f32 %v115_v22, %v110_v17  ;;  %v118_v37 = vadd.f32 %v116_v23, %v111_v18  ;;  %v309_v39 = vld [vmem:[%s666_s6 + $0x8] sm:$0xf0]  ;;  %v389_v42 = vld [vmem:[%s669_s4] ss:$0 sm:$0xff]  ;;  %v308_v43 = vor.u32 %v370_v25, %v307_v24 }
  0x15   :  { %263 = vmatpush.bf16.msra.mxu1 %v336_v47  ;;  %v73_v32 = vmax.f32 %v71_v20, 0.0  ;;  %v74_v33 = vmax.f32 %v72_v21, 0.0  ;;  %v97_v41 = vadd.f32 %v566_v51, %v95_v27  ;;  %v312_v50 = vor.u32 %v369_v38, %v309_v39  ;;  %v159_v5 = vld [vmem:[%s673_s7] sm:$0x3] }
  0x16   :  { %v96_v40 = vadd.f32 %v566_v51, %v94_v26  ;;  %v124_v44 = vadd.f32 %v122_v28, %v117_v36  ;;  %v125_v45 = vadd.f32 %v123_v29, %v118_v37  ;;  %v161_v6 = vperm.slane %v159_v5, 0 }
  0x17   :  { %v75_v46 = vmul.f32 %v73_v32, %v29_v30  ;;  %v76_v47 = vmul.f32 %v74_v33, %v30_v31  ;;  %v99_v49 = vmax.f32 %v97_v41, 0.0  ;;  %v162_v7 = vperm.slane %v159_v5, 1 }
  0x18   :  { %250 = vmatpush.bf16.msra.mxu0 %v324_v52  ;;  %v98_v48 = vmax.f32 %v96_v40, 0.0  ;;  %v126_v52 = vadd.f32 %v566_v51, %v124_v44 }
  0x19   :  { %264 = vmatpush.bf16.msra.mxu1 %v328_v53  ;;  %v127_v53 = vadd.f32 %v566_v51, %v125_v45  ;;  %v104_v58 = vmul.f32 %v389_v42, %v99_v49  ;;  %v390_v51 = vld [vmem:[%s671_s5] ss:$0 sm:$0xff] }
  0x1a   :  { %v103_v57 = vmul.f32 %v389_v42, %v98_v48  ;;  %v128_v59 = vmax.f32 %v126_v52, 0.0 }
  0x1b   :  { %v129_v60 = vmax.f32 %v127_v53, 0.0  ;;  %v106_v35 = vadd.f32 %v104_v58, %v76_v47 }
  0x1c   :  { %251 = vmatpush.bf16.msra.mxu0 %v316_v54  ;;  %v286_v54 = vld [vmem:[%s672_s1 + $0x18] sm:$0xff]  ;;  %v105_v34 = vadd.f32 %v103_v57, %v75_v46 }
  0x1d   :  { %265 = vmatpush.bf16.msra.mxu1 %v320_v55  ;;  %v130_v55 = vmul.f32 %v285_v56, %v128_v59  ;;  %v131_v61 = vmul.f32 %v286_v54, %v129_v60 }
  0x1f   :  { %v132_v62 = vadd.f32 %v130_v55, %v105_v34  ;;  %v133_v63 = vadd.f32 %v131_v61, %v106_v35 }
  0x20   :  { %252 = vmatpush.bf16.msra.mxu0 %v308_v43 }
  0x21   :  { %266 = vmatpush.bf16.msra.mxu1 %v312_v50  ;;  %v138_v0 = vadd.f32 %v390_v51, %v132_v62  ;;  %v139_v1 = vadd.f32 %v390_v51, %v133_v63 }
  0x23   :  { %v140_v2 = vmax.f32 %v138_v0, 0.0  ;;  %v141_v3 = vmax.f32 %v139_v1, 0.0 }
  0x25   :  { %v142_v4 = vpack.c.bf16 %v141_v3, %v140_v2 }
  0x27   :  { %253 = vmatmul.bf16.vlgmr.msra.gmra.mxu0 %v142_v4  ;;  %267 = vmatmul.bf16.vlgmr.msra.gmra.mxu1 %v142_v4 }
  0xa4   :  { %v254_v8 = vpop.f32.mrf.mxu0  ;;  %v268_v9 = vpop.f32.mrf.mxu1 }
  0xa5   :  { %v255_v10 = vadd.f32 %v254_v8, %v161_v6  ;;  %v269_v11 = vadd.f32 %v268_v9, %v162_v7 }
  0xa7   :  { %v273_v12 = vmax.f32 %v255_v10, 0.0  ;;  %v274_v13 = vmax.f32 %v269_v11, 0.0 }
  0xa9   :  { %277 = vst [vmem:[%s674_s8] sm:$0xff] %v273_v12 }
  0xaa   :  { %278 = vst [vmem:[%s674_s8 + $0x8] sm:$0xff] %v274_v13 }
  0xac   :  { %v256_v14 = vpop.f32.mrf.mxu0  ;;  %v270_v15 = vpop.f32.mrf.mxu1 }
  0xad   :  { %v257_v16 = vadd.f32 %v256_v14, %v161_v6  ;;  %v271_v17 = vadd.f32 %v270_v15, %v162_v7 }
  0xaf   :  { %v275_v18 = vmax.f32 %v257_v16, 0.0  ;;  %v276_v19 = vmax.f32 %v271_v17, 0.0 }
  0xb1   :  { %279 = vst [vmem:[%s674_s8 + $0x10] sm:$0xff] %v275_v18 }
  0xb2   :  { %280 = vst [vmem:[%s674_s8 + $0x18] sm:$0xff] %v276_v19 }

// kernel: segfast_forward.37
= control target key start
LH: loop header
LB: loop body
LE: loop exit
PB: predicated region body
PF: predicated region fallthrough
CT: control target
= control target key end

     0   :  { %s1049_s1 = inlined_call_operand.vmem [shape: bf16[512,128], index: 1, kind: input, shape index: {}]   ;;  %s1050_s2 = inlined_call_operand.vmem [shape: f32[1,128], index: 2, kind: input, shape index: {}]   ;;  %s1051_s0 = inlined_call_operand.vmem [shape: bf16[1,16,512], index: 0, kind: input, shape index: {}]   ;;  %s1052_s3 = inlined_call_operand.vmem [shape: bf16[128,256], index: 3, kind: input, shape index: {}]   ;;  %s1053_s5 = inlined_call_operand.vmem [shape: f32[16,128], index: 5, kind: output, shape index: {0}]   ;;  %s1054_s4 = inlined_call_operand.vmem [shape: f32[1,256], index: 4, kind: input, shape index: {}]   ;;  %s1055_s6 = inlined_call_operand.vmem [shape: f32[16,256], index: 6, kind: output, shape index: {1}]  }
   0x1   :  { %v732_v0 = vld [vmem:[%s1049_s1 + $0x38] sm:$0xff]  ;;  %v731_v4 = vld [vmem:[%s1049_s1 + $0x30] sm:$0xff]  ;;  %v730_v8 = vld [vmem:[%s1049_s1 + $0x28] sm:$0xff] }
   0x2   :  { %v740_v1 = vld [vmem:[%s1049_s1 + $0x78] sm:$0xff]  ;;  %306 = vmatpush.bf16.msra.mxu0 %v732_v0  ;;  %v739_v5 = vld [vmem:[%s1049_s1 + $0x70] sm:$0xff]  ;;  %v738_v9 = vld [vmem:[%s1049_s1 + $0x68] sm:$0xff] }
   0x3   :  { %v748_v2 = vld [vmem:[%s1049_s1 + $0xb8] sm:$0xff]  ;;  %320 = vmatpush.bf16.msra.mxu1 %v740_v1  ;;  %v747_v6 = vld [vmem:[%s1049_s1 + $0xb0] sm:$0xff]  ;;  %v746_v10 = vld [vmem:[%s1049_s1 + $0xa8] sm:$0xff] }
   0x4   :  { %v756_v3 = vld [vmem:[%s1049_s1 + $0xf8] sm:$0xff]  ;;  %334 = vmatpush.bf16.msra.mxu2 %v748_v2  ;;  %v755_v7 = vld [vmem:[%s1049_s1 + $0xf0] sm:$0xff]  ;;  %v754_v11 = vld [vmem:[%s1049_s1 + $0xe8] sm:$0xff] }
   0x5   :  { %348 = vmatpush.bf16.msra.mxu3 %v756_v3  ;;  %v729_v12 = vld [vmem:[%s1049_s1 + $0x20] sm:$0xff]  ;;  %v728_v16 = vld [vmem:[%s1049_s1 + $0x18] sm:$0xff]  ;;  %v727_v20 = vld [vmem:[%s1049_s1 + $0x10] sm:$0xff] }
   0x6   :  { %307 = vmatpush.bf16.msra.mxu0 %v731_v4  ;;  %v737_v13 = vld [vmem:[%s1049_s1 + $0x60] sm:$0xff]  ;;  %v736_v17 = vld [vmem:[%s1049_s1 + $0x58] sm:$0xff]  ;;  %v735_v21 = vld [vmem:[%s1049_s1 + $0x50] sm:$0xff] }
   0x7   :  { %321 = vmatpush.bf16.msra.mxu1 %v739_v5  ;;  %v745_v14 = vld [vmem:[%s1049_s1 + $0xa0] sm:$0xff]  ;;  %v744_v18 = vld [vmem:[%s1049_s1 + $0x98] sm:$0xff]  ;;  %v743_v22 = vld [vmem:[%s1049_s1 + $0x90] sm:$0xff] }
   0x8   :  { %335 = vmatpush.bf16.msra.mxu2 %v747_v6  ;;  %v753_v15 = vld [vmem:[%s1049_s1 + $0xe0] sm:$0xff]  ;;  %v752_v19 = vld [vmem:[%s1049_s1 + $0xd8] sm:$0xff]  ;;  %v751_v23 = vld [vmem:[%s1049_s1 + $0xd0] sm:$0xff] }
   0x9   :  { %349 = vmatpush.bf16.msra.mxu3 %v755_v7  ;;  %v726_v24 = vld [vmem:[%s1049_s1 + $0x8] sm:$0xff]  ;;  %v725_v28 = vld [vmem:[%s1049_s1] sm:$0xff]  ;;  %v723_v31 = vld [vmem:[%s1051_s0 + $0xc] sm:$0xf0] }
   0xa   :  { %308 = vmatpush.bf16.msra.mxu0 %v730_v8  ;;  %v734_v25 = vld [vmem:[%s1049_s1 + $0x48] sm:$0xff]  ;;  %v733_v29 = vld [vmem:[%s1049_s1 + $0x40] sm:$0xff]  ;;  %v715_v32 = vld [vmem:[%s1052_s3 + $0x70] sm:$0xf] }
   0xb   :  { %322 = vmatpush.bf16.msra.mxu1 %v738_v9  ;;  %v742_v26 = vld [vmem:[%s1049_s1 + $0x88] sm:$0xff]  ;;  %v515_v30 = vld [vmem:[%s1051_s0] sm:$0xf]  ;;  %v772_v35 = vld [vmem:[%s1052_s3 + $0x74] sm:$0xf0] }
   0xc   :  { %336 = vmatpush.bf16.msra.mxu2 %v746_v10  ;;  %v750_v27 = vld [vmem:[%s1049_s1 + $0xc8] sm:$0xff]  ;;  %v741_v33 = vld [vmem:[%s1049_s1 + $0x80] sm:$0xff]  ;;  %v771_v36 = vld [vmem:[%s1052_s3 + $0x74] sm:$0xf]  ;;  %v716_v44 = vor.u32 %v772_v35, %v715_v32  ;;  %v516_v47 = vor.u32 %v723_v31, %v515_v30 }
   0xd   :  { %350 = vmatpush.bf16.msra.mxu3 %v754_v11  ;;  %v749_v34 = vld [vmem:[%s1049_s1 + $0xc0] sm:$0xff]  ;;  %v717_v37 = vld [vmem:[%s1052_s3 + $0x78] sm:$0xf0]  ;;  %v517_v39 = vld [vmem:[%s1051_s0 + $0x10] sm:$0xf0] }
   0xe   :  { %309 = vmatpush.bf16.msra.mxu0 %v729_v12  ;;  %v721_v38 = vld [vmem:[%s1051_s0 + $0x4] sm:$0xf]  ;;  %v523_v40 = vld [vmem:[%s1051_s0 + $0x8] sm:$0xf]  ;;  %v724_v41 = vld [vmem:[%s1051_s0 + $0x14] sm:$0xf0]  ;;  %v720_v45 = vor.u32 %v771_v36, %v717_v37 }
   0xf   :  { %323 = vmatpush.bf16.msra.mxu1 %v737_v13  ;;  %v722_v42 = vld [vmem:[%s1051_s0 + $0xc] sm:$0xf]  ;;  %v525_v43 = vld [vmem:[%s1051_s0 + $0x18] sm:$0xf0]  ;;  %v707_v46 = vld [vmem:[%s1052_s3 + $0x60] sm:$0xf]  ;;  %v520_v48 = vor.u32 %v721_v38, %v517_v39  ;;  %v524_v52 = vor.u32 %v724_v41, %v523_v40 }
  0x10   :  { %337 = vmatpush.bf16.msra.mxu2 %v745_v14  ;;  %v770_v49 = vld [vmem:[%s1052_s3 + $0x64] sm:$0xf0]  ;;  %v769_v50 = vld [vmem:[%s1052_s3 + $0x64] sm:$0xf]  ;;  %v709_v51 = vld [vmem:[%s1052_s3 + $0x68] sm:$0xf0]  ;;  %v528_v53 = vor.u32 %v722_v42, %v525_v43 }
  0x11   :  { %351 = vmatpush.bf16.msra.mxu3 %v753_v15  ;;  %v708_v54 = vor.u32 %v770_v49, %v707_v46  ;;  %v712_v55 = vor.u32 %v769_v50, %v709_v51  ;;  %v699_v56 = vld [vmem:[%s1052_s3 + $0x50] sm:$0xf]  ;;  %v768_v57 = vld [vmem:[%s1052_s3 + $0x54] sm:$0xf0]  ;;  %v767_v58 = vld [vmem:[%s1052_s3 + $0x54] sm:$0xf] }
  0x12   :  { %310 = vmatpush.bf16.msra.mxu0 %v728_v16  ;;  %v700_v59 = vor.u32 %v768_v57, %v699_v56  ;;  %v701_v60 = vld [vmem:[%s1052_s3 + $0x58] sm:$0xf0]  ;;  %v691_v62 = vld [vmem:[%s1052_s3 + $0x40] sm:$0xf]  ;;  %v766_v63 = vld [vmem:[%s1052_s3 + $0x44] sm:$0xf0] }
  0x13   :  { %324 = vmatpush.bf16.msra.mxu1 %v736_v17  ;;  %v704_v61 = vor.u32 %v767_v58, %v701_v60  ;;  %v765_v0 = vld [vmem:[%s1052_s3 + $0x44] sm:$0xf]  ;;  %v692_v1 = vor.u32 %v766_v63, %v691_v62  ;;  %v693_v2 = vld [vmem:[%s1052_s3 + $0x48] sm:$0xf0]  ;;  %v683_v4 = vld [vmem:[%s1052_s3 + $0x30] sm:$0xf] }
  0x14   :  { %338 = vmatpush.bf16.msra.mxu2 %v744_v18  ;;  %v696_v3 = vor.u32 %v765_v0, %v693_v2  ;;  %v764_v5 = vld [vmem:[%s1052_s3 + $0x34] sm:$0xf0]  ;;  %v763_v6 = vld [vmem:[%s1052_s3 + $0x34] sm:$0xf]  ;;  %v685_v8 = vld [vmem:[%s1052_s3 + $0x38] sm:$0xf0] }
  0x15   :  { %352 = vmatpush.bf16.msra.mxu3 %v752_v19  ;;  %v684_v7 = vor.u32 %v764_v5, %v683_v4  ;;  %v688_v9 = vor.u32 %v763_v6, %v685_v8  ;;  %v675_v10 = vld [vmem:[%s1052_s3 + $0x20] sm:$0xf]  ;;  %v762_v11 = vld [vmem:[%s1052_s3 + $0x24] sm:$0xf0]  ;;  %v761_v12 = vld [vmem:[%s1052_s3 + $0x24] sm:$0xf] }
  0x16   :  { %311 = vmatpush.bf16.msra.mxu0 %v727_v20  ;;  %v676_v13 = vor.u32 %v762_v11, %v675_v10  ;;  %v677_v14 = vld [vmem:[%s1052_s3 + $0x28] sm:$0xf0]  ;;  %v667_v16 = vld [vmem:[%s1052_s3 + $0x10] sm:$0xf]  ;;  %v760_v17 = vld [vmem:[%s1052_s3 + $0x14] sm:$0xf0] }
  0x17   :  { %325 = vmatpush.bf16.msra.mxu1 %v735_v21  ;;  %v680_v15 = vor.u32 %v761_v12, %v677_v14  ;;  %v759_v18 = vld [vmem:[%s1052_s3 + $0x14] sm:$0xf]  ;;  %v668_v19 = vor.u32 %v760_v17, %v667_v16  ;;  %v669_v20 = vld [vmem:[%s1052_s3 + $0x18] sm:$0xf0] }
  0x18   :  { %339 = vmatpush.bf16.msra.mxu2 %v743_v22  ;;  %v672_v21 = vor.u32 %v759_v18, %v669_v20  ;;  %v659_v22 = vld [vmem:[%s1052_s3] sm:$0xf] }
  0x19   :  { %353 = vmatpush.bf16.msra.mxu3 %v751_v23  ;;  %v758_v23 = vld [vmem:[%s1052_s3 + $0x4] sm:$0xf0] }
  0x1a   :  { %312 = vmatpush.bf16.msra.mxu0 %v726_v24  ;;  %v757_v24 = vld [vmem:[%s1052_s3 + $0x4] sm:$0xf] }
  0x1b   :  { %326 = vmatpush.bf16.msra.mxu1 %v734_v25  ;;  %v660_v25 = vor.u32 %v758_v23, %v659_v22 }
  0x1c   :  { %340 = vmatpush.bf16.msra.mxu2 %v742_v26  ;;  %v661_v26 = vld [vmem:[%s1052_s3 + $0x8] sm:$0xf0] }
  0x1d   :  { %354 = vmatpush.bf16.msra.mxu3 %v750_v27  ;;  %v664_v27 = vor.u32 %v757_v24, %v661_v26 }
  0x1e   :  { %313 = vmatpush.bf16.msra.mxu0 %v725_v28  ;;  %v773_v28 = vld [vmem:[%s1050_s2] ss:$0 sm:$0xff] }
  0x1f   :  { %327 = vmatpush.bf16.msra.mxu1 %v733_v29 }
  0x20   :  { %341 = vmatpush.bf16.msra.mxu2 %v741_v33 }
  0x21   :  { %355 = vmatpush.bf16.msra.mxu3 %v749_v34  ;;  %314 = vmatmul.bf16.vlgmr.msra.gmra.mxu0 %v516_v47 }
  0x22   :  { %469 = vmatpush.bf16.msrb.mxu0 %v716_v44  ;;  %328 = vmatmul.bf16.vlgmr.msra.gmra.mxu1 %v520_v48  ;;  %v383_v48 = vld [vmem:[%s1054_s4] sm:$0x3] }
  0x23   :  { %483 = vmatpush.bf16.msrb.mxu1 %v720_v45  ;;  %342 = vmatmul.bf16.vlgmr.msra.gmra.mxu2 %v524_v52  ;;  %v385_v49 = vperm.slane %v383_v48, 0  ;;  %v386_v50 = vperm.slane %v383_v48, 1 }
  0x24   :  { %356 = vmatmul.bf16.vlgmr.msra.gmra.mxu3 %v528_v53 }
  0x26   :  { %470 = vmatpush.bf16.msrb.mxu0 %v708_v54 }
  0x27   :  { %484 = vmatpush.bf16.msrb.mxu1 %v712_v55 }
  0x2a   :  { %471 = vmatpush.bf16.msrb.mxu0 %v700_v59 }
  0x2b   :  { %485 = vmatpush.bf16.msrb.mxu1 %v704_v61 }
  0x2e   :  { %472 = vmatpush.bf16.msrb.mxu0 %v692_v1 }
  0x2f   :  { %486 = vmatpush.bf16.msrb.mxu1 %v696_v3 }
  0x32   :  { %473 = vmatpush.bf16.msrb.mxu0 %v684_v7 }
  0x33   :  { %487 = vmatpush.bf16.msrb.mxu1 %v688_v9 }
  0x36   :  { %474 = vmatpush.bf16.msrb.mxu0 %v676_v13 }
  0x37   :  { %488 = vmatpush.bf16.msrb.mxu1 %v680_v15 }
  0x3a   :  { %475 = vmatpush.bf16.msrb.mxu0 %v668_v19 }
  0x3b   :  { %489 = vmatpush.bf16.msrb.mxu1 %v672_v21 }
  0x3e   :  { %476 = vmatpush.bf16.msrb.mxu0 %v660_v25 }
  0x3f   :  { %490 = vmatpush.bf16.msrb.mxu1 %v664_v27 }
  0x9e   :  { %v315_v29 = vpop.f32.mrf.mxu0 }
  0x9f   :  { %v316_v30 = vadd.f32 %v773_v28, %v315_v29  ;;  %v329_v31 = vpop.f32.mrf.mxu1 }
  0xa1   :  { %v330_v32 = vadd.f32 %v329_v31, %v316_v30 }
  0xa6   :  { %v343_v33 = vpop.f32.mrf.mxu2  ;;  %v317_v36 = vpop.f32.mrf.mxu0 }
  0xa7   :  { %v357_v34 = vpop.f32.mrf.mxu3  ;;  %v344_v35 = vadd.f32 %v343_v33, %v330_v32  ;;  %v318_v38 = vadd.f32 %v773_v28, %v317_v36  ;;  %v331_v40 = vpop.f32.mrf.mxu1 }
  0xa9   :  { %v358_v37 = vadd.f32 %v357_v34, %v344_v35  ;;  %v332_v41 = vadd.f32 %v331_v40, %v318_v38 }
  0xab   :  { %v362_v39 = vmax.f32 %v358_v37, 0.0 }
  0xad   :  { %364 = vst [vmem:[%s1053_s5] sm:$0xff] %v362_v39 }
  0xae   :  { %v345_v42 = vpop.f32.mrf.mxu2 }
  0xaf   :  { %v346_v43 = vadd.f32 %v345_v42, %v332_v41  ;;  %v359_v44 = vpop.f32.mrf.mxu3 }
  0xb1   :  { %v360_v45 = vadd.f32 %v359_v44, %v346_v43 }
  0xb3   :  { %v363_v46 = vmax.f32 %v360_v45, 0.0 }
  0xb5   :  { %365 = vst [vmem:[%s1053_s5 + $0x8] sm:$0xff] %v363_v46  ;;  %v366_v47 = vpack.c.bf16 %v363_v46, %v362_v39 }
  0xb7   :  { %477 = vmatmul.bf16.vlgmr.msrb.gmra.mxu0 %v366_v47  ;;  %491 = vmatmul.bf16.vlgmr.msrb.gmra.mxu1 %v366_v47 }
 0x134   :  { %v478_v51 = vpop.f32.mrf.mxu0  ;;  %v492_v52 = vpop.f32.mrf.mxu1 }
 0x135   :  { %v479_v53 = vadd.f32 %v478_v51, %v385_v49  ;;  %v493_v54 = vadd.f32 %v492_v52, %v386_v50 }
 0x137   :  { %v497_v55 = vmax.f32 %v479_v53, 0.0  ;;  %v498_v56 = vmax.f32 %v493_v54, 0.0 }
 0x139   :  { %501 = vst [vmem:[%s1055_s6] sm:$0xff] %v497_v55 }
 0x13a   :  { %502 = vst [vmem:[%s1055_s6 + $0x8] sm:$0xff] %v498_v56 }
 0x13c   :  { %v480_v57 = vpop.f32.mrf.mxu0  ;;  %v494_v58 = vpop.f32.mrf.mxu1 }
 0x13d   :  { %v481_v59 = vadd.f32 %v480_v57, %v385_v49  ;;  %v495_v60 = vadd.f32 %v494_v58, %v386_v50 }
 0x13f   :  { %v499_v61 = vmax.f32 %v481_v59, 0.0  ;;  %v500_v62 = vmax.f32 %v495_v60, 0.0 }
 0x141   :  { %503 = vst [vmem:[%s1055_s6 + $0x10] sm:$0xff] %v499_v61 }
 0x142   :  { %504 = vst [vmem:[%s1055_s6 + $0x18] sm:$0xff] %v500_v62 }

// kernel: mul.200
= control target key start
LH: loop header
LB: loop body
LE: loop exit
PB: predicated region body
PF: predicated region fallthrough
CT: control target
= control target key end

     0   :  { %vm11_vm0 = vcmask 15360   ;;  %s42_s10 = smov 2   ;;  %s43_s11 = smov 4   ;;  %vm17_vm1 = vcmask 64560   ;;  %vm23_vm2 = vcmask 48160   ;;  %vm29_vm3 = vcmask 31760   ;;  %s63_s0 = inlined_call_operand.vmem [shape: f32[2,2,2], index: 0, kind: input, shape index: {}]   ;;  %s64_s1 = inlined_call_operand.vmem [shape: f32[8], index: 1, kind: output, shape index: {}]  }
   0x1   :  { %v37_v0 = vld [vmem:[%s63_s0 + $0x2] sm:$0x3]  ;;  %v8_v1 = vld [vmem:[%s63_s0] sm:$0x3]  ;;  %s41_s0 = smov 6  }
   0x2   :  { %7 = vst [vmem:[#allocation1 + $0x8] sm:$0x3] %v37_v0 }
   0x3   :  { %9 = vst [vmem:[#allocation1] sm:$0x3] %v8_v1 }
   0x9   :  { %v14_v2 = vld [vmem:[#allocation1 + $0x9] sm:$0x1]   ;;  %v20_v5 = vld [vmem:[#allocation1 + $0x8] sm:$0x1]  }
   0xa   :  { %15 = vrot.lane.b32.xlu0 %v14_v2, %s41_s0  ;;  %v26_v3 = vld [vmem:[#allocation1 + $0x1] sm:$0x1]   ;;  %v10_v4 = vld [vmem:[#allocation1] sm:$0x1]  }
   0xb   :  { %27 = vrot.lane.b32.xlu1 %v26_v3, %s42_s10  ;;  %12 = vst.msk [vmem:[#allocation0] sm:$0x1] %vm11_vm0, %v10_v4  }
  0x12   :  { %21 = vrot.lane.b32.xlu0 %v20_v5, %s43_s11 }
  0x7c   :  { %v16_v6 = vpop.permute.xlu0 %15  }
  0x7d   :  { %18 = vst.msk [vmem:[#allocation0] sm:$0x1] %vm17_vm1, %v16_v6   ;;  %v28_v7 = vpop.permute.xlu1 %27  }
  0x84   :  { %v22_v8 = vpop.permute.xlu0 %21  }
  0x85   :  { %24 = vst.msk [vmem:[#allocation0] sm:$0x1] %vm23_vm2, %v22_v8  }
  0x86   :  { %30 = vst.msk [vmem:[#allocation0] sm:$0x1] %vm29_vm3, %v28_v7  }
  0x8d   :  { %v33_v9 = vld [vmem:[#allocation0] sm:$0x1] }
  0x8e   :  { %36 = vst [vmem:[%s64_s1] sm:$0x1] %v33_v9 }

// kernel: tile.109
= control target key start
LH: loop header
LB: loop body
LE: loop exit
PB: predicated region body
PF: predicated region fallthrough
CT: control target
= control target key end

     0   :  { %s67_s10 = smov 112   ;;  %s68_s11 = smov 80   ;;  %vm3_vm0 = vcmask 130048   ;;  %vm9_vm1 = vcmask 1048448   ;;  %vm15_vm2 = vcmask 917248   ;;  %vm21_vm3 = vcmask 786048   ;;  %s111_s0 = inlined_call_operand.vmem [shape: f32[8,16], index: 0, kind: input, shape index: {}]   ;;  %s112_s1 = inlined_call_operand.vmem [shape: f32[1,128], index: 1, kind: output, shape index: {}]  }
   0x1   :  { %v53_v0 = vld [vmem:[%s111_s0 + $0x7] sm:$0x1]   ;;  %v55_v1 = vld [vmem:[%s111_s0 + $0x5] sm:$0x1]   ;;  %v57_v2 = vld [vmem:[%s111_s0 + $0x3] sm:$0x1]  }
   0x2   :  { %7 = vrot.lane.b32.xlu0 %v53_v0, %s67_s10  ;;  %19 = vrot.lane.b32.xlu1 %v55_v1, %s68_s11  ;;  %s69_s14 = smov 48   ;;  %v54_v3 = vld [vmem:[%s111_s0 + $0x6] sm:$0x1]   ;;  %v56_v4 = vld [vmem:[%s111_s0 + $0x4] sm:$0x1]   ;;  %s70_s21 = smov 96  }
   0x3   :  { %31 = vrot.lane.b32.xlu2 %v57_v2, %s69_s14  ;;  %v58_v5 = vld [vmem:[%s111_s0 + $0x2] sm:$0x1]   ;;  %s71_s22 = smov 64   ;;  %s72_s23 = smov 32   ;;  %v59_v6 = vld [vmem:[%s111_s0 + $0x1] sm:$0x1]  }
   0x4   :  { %s73_s26 = smov 16   ;;  %v2_v7 = vld [vmem:[%s111_s0] sm:$0x1]   ;;  %vm27_vm4 = vcmask 654848   ;;  %vm33_vm5 = vcmask 523648   ;;  %vm39_vm6 = vcmask 392448  }
   0x5   :  { %4 = vst.msk [vmem:[#allocation0] sm:$0x1] %vm3_vm0, %v2_v7   ;;  %vm45_vm7 = vcmask 261248  }
   0xa   :  { %13 = vrot.lane.b32.xlu0 %v54_v3, %s70_s21  ;;  %25 = vrot.lane.b32.xlu1 %v56_v4, %s71_s22 }
   0xb   :  { %37 = vrot.lane.b32.xlu2 %v58_v5, %s72_s23 }
  0x12   :  { %43 = vrot.lane.b32.xlu0 %v59_v6, %s73_s26 }
  0x5d   :  { %v32_v8 = vpop.permute.xlu2 %31  }
  0x65   :  { %v38_v9 = vpop.permute.xlu2 %37  }
  0x74   :  { %v8_v10 = vpop.permute.xlu0 %7   ;;  %v20_v11 = vpop.permute.xlu1 %19  }
  0x75   :  { %10 = vst.msk [vmem:[#allocation0] sm:$0x1] %vm9_vm1, %v8_v10  }
  0x7c   :  { %v14_v12 = vpop.permute.xlu0 %13   ;;  %v26_v13 = vpop.permute.xlu1 %25  }
  0x7d   :  { %16 = vst.msk [vmem:[#allocation0] sm:$0x1] %vm15_vm2, %v14_v12  }
  0x7e   :  { %22 = vst.msk [vmem:[#allocation0] sm:$0x1] %vm21_vm3, %v20_v11  }
  0x7f   :  { %28 = vst.msk [vmem:[#allocation0] sm:$0x1] %vm27_vm4, %v26_v13  }
  0x80   :  { %34 = vst.msk [vmem:[#allocation0] sm:$0x1] %vm33_vm5, %v32_v8  }
  0x81   :  { %40 = vst.msk [vmem:[#allocation0] sm:$0x1] %vm39_vm6, %v38_v9  }
  0x84   :  { %v44_v14 = vpop.permute.xlu0 %43  }
  0x85   :  { %46 = vst.msk [vmem:[#allocation0] sm:$0x1] %vm45_vm7, %v44_v14  }
  0x8c   :  { %v49_v15 = vld [vmem:[#allocation0] sm:$0x1] }
  0x8d   :  { %52 = vst [vmem:[%s112_s1] sm:$0x1] %v49_v15 }

// kernel: segfast_forward.47
= control target key start
LH: loop header
LB: loop body
LE: loop exit
PB: predicated region body
PF: predicated region fallthrough
CT: control target
= control target key end

     0   :  { %s374_s1 = inlined_call_operand.vmem [shape: bf16[256,128], index: 1, kind: input, shape index: {}]   ;;  %s375_s2 = inlined_call_operand.vmem [shape: f32[1,128], index: 2, kind: input, shape index: {}]   ;;  %s376_s0 = inlined_call_operand.vmem [shape: bf16[16,256], index: 0, kind: input, shape index: {}]   ;;  %s377_s3 = inlined_call_operand.vmem [shape: f32[16,128], index: 3, kind: output, shape index: {}]  }
   0x1   :  { %v275_v0 = vld [vmem:[%s374_s1 + $0x38] sm:$0xff]  ;;  %v274_v2 = vld [vmem:[%s374_s1 + $0x30] sm:$0xff]  ;;  %v273_v4 = vld [vmem:[%s374_s1 + $0x28] sm:$0xff] }
   0x2   :  { %v283_v1 = vld [vmem:[%s374_s1 + $0x78] sm:$0xff]  ;;  %158 = vmatpush.bf16.msra.mxu0 %v275_v0  ;;  %v282_v3 = vld [vmem:[%s374_s1 + $0x70] sm:$0xff]  ;;  %v281_v5 = vld [vmem:[%s374_s1 + $0x68] sm:$0xff] }
   0x3   :  { %172 = vmatpush.bf16.msra.mxu1 %v283_v1  ;;  %v272_v6 = vld [vmem:[%s374_s1 + $0x20] sm:$0xff]  ;;  %v271_v8 = vld [vmem:[%s374_s1 + $0x18] sm:$0xff]  ;;  %v270_v10 = vld [vmem:[%s374_s1 + $0x10] sm:$0xff] }
   0x4   :  { %v280_v7 = vld [vmem:[%s374_s1 + $0x60] sm:$0xff]  ;;  %v279_v9 = vld [vmem:[%s374_s1 + $0x58] sm:$0xff]  ;;  %v278_v11 = vld [vmem:[%s374_s1 + $0x50] sm:$0xff] }
   0x5   :  { %v269_v12 = vld [vmem:[%s374_s1 + $0x8] sm:$0xff]  ;;  %v268_v14 = vld [vmem:[%s374_s1] sm:$0xff] }
   0x6   :  { %159 = vmatpush.bf16.msra.mxu0 %v274_v2  ;;  %v277_v13 = vld [vmem:[%s374_s1 + $0x48] sm:$0xff]  ;;  %v276_v15 = vld [vmem:[%s374_s1 + $0x40] sm:$0xff] }
   0x7   :  { %173 = vmatpush.bf16.msra.mxu1 %v282_v3  ;;  %v196_v16 = vld [vmem:[%s376_s0] sm:$0xf]  ;;  %v267_v17 = vld [vmem:[%s376_s0 + $0x4] sm:$0xf0]  ;;  %v266_v18 = vld [vmem:[%s376_s0 + $0x4] sm:$0xf] }
   0x8   :  { %v198_v19 = vld [vmem:[%s376_s0 + $0x8] sm:$0xf0]  ;;  %v197_v20 = vor.u32 %v267_v17, %v196_v16  ;;  %v284_v22 = vld [vmem:[%s375_s2] ss:$0 sm:$0xff] }
   0x9   :  { %v201_v21 = vor.u32 %v266_v18, %v198_v19 }
   0xa   :  { %160 = vmatpush.bf16.msra.mxu0 %v273_v4 }
   0xb   :  { %174 = vmatpush.bf16.msra.mxu1 %v281_v5 }
   0xe   :  { %161 = vmatpush.bf16.msra.mxu0 %v272_v6 }
   0xf   :  { %175 = vmatpush.bf16.msra.mxu1 %v280_v7 }
  0x12   :  { %162 = vmatpush.bf16.msra.mxu0 %v271_v8 }
  0x13   :  { %176 = vmatpush.bf16.msra.mxu1 %v279_v9 }
  0x16   :  { %163 = vmatpush.bf16.msra.mxu0 %v270_v10 }
  0x17   :  { %177 = vmatpush.bf16.msra.mxu1 %v278_v11 }
  0x1a   :  { %164 = vmatpush.bf16.msra.mxu0 %v269_v12 }
  0x1b   :  { %178 = vmatpush.bf16.msra.mxu1 %v277_v13 }
  0x1e   :  { %165 = vmatpush.bf16.msra.mxu0 %v268_v14 }
  0x1f   :  { %179 = vmatpush.bf16.msra.mxu1 %v276_v15 }
  0x21   :  { %166 = vmatmul.bf16.vlgmr.msra.gmra.mxu0 %v197_v20 }
  0x22   :  { %180 = vmatmul.bf16.vlgmr.msra.gmra.mxu1 %v201_v21 }
  0x9e   :  { %v167_v23 = vpop.f32.mrf.mxu0 }
  0x9f   :  { %v181_v24 = vpop.f32.mrf.mxu1  ;;  %v168_v25 = vadd.f32 %v284_v22, %v167_v23 }
  0xa1   :  { %v182_v26 = vadd.f32 %v181_v24, %v168_v25 }
  0xa3   :  { %v186_v27 = vmax.f32 %v182_v26, 0.0 }
  0xa5   :  { %188 = vst [vmem:[%s377_s3] sm:$0xff] %v186_v27 }
  0xa6   :  { %v169_v28 = vpop.f32.mrf.mxu0 }
  0xa7   :  { %v170_v29 = vadd.f32 %v284_v22, %v169_v28  ;;  %v183_v30 = vpop.f32.mrf.mxu1 }
  0xa9   :  { %v184_v31 = vadd.f32 %v183_v30, %v170_v29 }
  0xab   :  { %v187_v32 = vmax.f32 %v184_v31, 0.0 }
  0xad   :  { %189 = vst [vmem:[%s377_s3 + $0x8] sm:$0xff] %v187_v32 }

// kernel: segfast_forward.48
= control target key start
LH: loop header
LB: loop body
LE: loop exit
PB: predicated region body
PF: predicated region fallthrough
CT: control target
= control target key end

     0   :  { %s76_s0 = inlined_call_operand.vmem [shape: f32[1,16,128], index: 0, kind: input, shape index: {}]   ;;  %s77_s1 = inlined_call_operand.vmem [shape: f32[1,1,128], index: 1, kind: input, shape index: {}]   ;;  %s78_s2 = inlined_call_operand.vmem [shape: f32[1,128], index: 2, kind: input, shape index: {}]   ;;  %s79_s3 = inlined_call_operand.vmem [shape: f32[16,128], index: 3, kind: output, shape index: {}]  }
   0x1   :  { %v14_v0 = vld [vmem:[%s76_s0] sm:$0xff]  ;;  %v15_v3 = vld [vmem:[%s76_s0 + $0x8] sm:$0xff] }
   0x2   :  { %v36_v1 = vld [vmem:[%s77_s1] ss:$0 sm:$0xff] }
   0x3   :  { %v37_v2 = vld [vmem:[%s78_s2] ss:$0 sm:$0xff]  ;;  %v20_v4 = vmul.f32 %v36_v1, %v14_v0  ;;  %v21_v5 = vmul.f32 %v36_v1, %v15_v3 }
   0x5   :  { %v26_v6 = vadd.f32 %v37_v2, %v20_v4  ;;  %v27_v7 = vadd.f32 %v37_v2, %v21_v5 }
   0x7   :  { %v28_v8 = vmax.f32 %v26_v6, 0.0  ;;  %v29_v9 = vmax.f32 %v27_v7, 0.0 }
   0x9   :  { %30 = vst [vmem:[%s79_s3] sm:$0xff] %v28_v8 }
   0xa   :  { %31 = vst [vmem:[%s79_s3 + $0x8] sm:$0xff] %v29_v9 }

// kernel: tile.128
= control target key start
LH: loop header
LB: loop body
LE: loop exit
PB: predicated region body
PF: predicated region fallthrough
CT: control target
= control target key end

     0   :  { %s28_s0 = inlined_call_operand.vmem [shape: f32[8], index: 0, kind: input, shape index: {}]   ;;  %s29_s1 = inlined_call_operand.vmem [shape: f32[16,8], index: 1, kind: output, shape index: {}]  }
   0x1   :  { %v4_v0 = vld [vmem:[%s28_s0] ss:$0 sm:$0xff] }
   0x2   :  { %5 = vst [vmem:[%s29_s1] sm:$0xff] %v4_v0 }
   0x3   :  { %8 = vst [vmem:[%s29_s1 + $0x8] sm:$0xff] %v4_v0 }

// kernel: tile.129
= control target key start
LH: loop header
LB: loop body
LE: loop exit
PB: predicated region body
PF: predicated region fallthrough
CT: control target
= control target key end

     0   :  { %s131_s10 = smov 120   ;;  %s132_s11 = smov 104   ;;  %vm3_vm0 = vcmask 64512   ;;  %vm9_vm1 = vcmask 1048512   ;;  %vm15_vm2 = vcmask 982912   ;;  %vm21_vm3 = vcmask 917312   ;;  %s207_s0 = inlined_call_operand.vmem [shape: f32[16,8], index: 0, kind: input, shape index: {}]   ;;  %s208_s1 = inlined_call_operand.vmem [shape: f32[1,128], index: 1, kind: output, shape index: {}]  }
   0x1   :  { %v101_v0 = vld [vmem:[%s207_s0 + $0xf] sm:$0x1]   ;;  %v103_v1 = vld [vmem:[%s207_s0 + $0xd] sm:$0x1]   ;;  %v105_v2 = vld [vmem:[%s207_s0 + $0xb] sm:$0x1]  }
   0x2   :  { %7 = vrot.lane.b32.xlu0 %v101_v0, %s131_s10  ;;  %19 = vrot.lane.b32.xlu1 %v103_v1, %s132_s11  ;;  %s133_s14 = smov 88   ;;  %v102_v3 = vld [vmem:[%s207_s0 + $0xe] sm:$0x1]   ;;  %v104_v4 = vld [vmem:[%s207_s0 + $0xc] sm:$0x1]   ;;  %s134_s19 = smov 112  }
   0x3   :  { %31 = vrot.lane.b32.xlu2 %v105_v2, %s133_s14  ;;  %s135_s20 = smov 96   ;;  %v106_v5 = vld [vmem:[%s207_s0 + $0xa] sm:$0x1]   ;;  %s136_s23 = smov 80   ;;  %v107_v6 = vld [vmem:[%s207_s0 + $0x9] sm:$0x1]  }
   0x4   :  { %v108_v7 = vld [vmem:[%s207_s0 + $0x8] sm:$0x1]   ;;  %s137_s28 = smov 72   ;;  %s138_s29 = smov 64   ;;  %v109_v8 = vld [vmem:[%s207_s0 + $0x7] sm:$0x1]  }
   0x5   :  { %s139_s3 = smov 56   ;;  %v110_v9 = vld [vmem:[%s207_s0 + $0x6] sm:$0x1]   ;;  %v111_v10 = vld [vmem:[%s207_s0 + $0x5] sm:$0x1]   ;;  %s140_s8 = smov 48  }
   0x6   :  { %s141_s9 = smov 40   ;;  %v112_v11 = vld [vmem:[%s207_s0 + $0x4] sm:$0x1]   ;;  %s142_s12 = smov 32   ;;  %v113_v12 = vld [vmem:[%s207_s0 + $0x3] sm:$0x1]  }
   0x7   :  { %v114_v13 = vld [vmem:[%s207_s0 + $0x2] sm:$0x1]   ;;  %s143_s17 = smov 24   ;;  %s144_s18 = smov 16   ;;  %v115_v14 = vld [vmem:[%s207_s0 + $0x1] sm:$0x1]  }
   0x8   :  { %s145_s21 = smov 8   ;;  %v2_v15 = vld [vmem:[%s207_s0] sm:$0x1]   ;;  %vm27_vm4 = vcmask 851712   ;;  %vm33_vm5 = vcmask 786112   ;;  %vm39_vm6 = vcmask 720512  }
   0x9   :  { %4 = vst.msk [vmem:[#allocation0] sm:$0x1] %vm3_vm0, %v2_v15   ;;  %vm45_vm7 = vcmask 654912   ;;  %vm51_vm8 = vcmask 589312   ;;  %vm57_vm9 = vcmask 523712   ;;  %vm63_vm10 = vcmask 458112  }
   0xa   :  { %13 = vrot.lane.b32.xlu0 %v102_v3, %s134_s19  ;;  %25 = vrot.lane.b32.xlu1 %v104_v4, %s135_s20  ;;  %vm69_vm11 = vcmask 392512   ;;  %vm75_vm12 = vcmask 326912   ;;  %vm81_vm13 = vcmask 261312   ;;  %vm87_vm14 = vcmask 195712  }
   0xb   :  { %37 = vrot.lane.b32.xlu2 %v106_v5, %s136_s23  ;;  %vm93_vm15 = vcmask 130112  }
  0x12   :  { %43 = vrot.lane.b32.xlu0 %v107_v6, %s137_s28  ;;  %49 = vrot.lane.b32.xlu1 %v108_v7, %s138_s29 }
  0x13   :  { %55 = vrot.lane.b32.xlu2 %v109_v8, %s139_s3 }
  0x1a   :  { %61 = vrot.lane.b32.xlu0 %v110_v9, %s140_s8  ;;  %67 = vrot.lane.b32.xlu1 %v111_v10, %s141_s9 }
  0x1b   :  { %73 = vrot.lane.b32.xlu2 %v112_v11, %s142_s12 }
  0x22   :  { %79 = vrot.lane.b32.xlu0 %v113_v12, %s143_s17  ;;  %85 = vrot.lane.b32.xlu1 %v114_v13, %s144_s18 }
  0x23   :  { %91 = vrot.lane.b32.xlu2 %v115_v14, %s145_s21 }
  0x5d   :  { %v32_v16 = vpop.permute.xlu2 %31  }
  0x65   :  { %v38_v17 = vpop.permute.xlu2 %37  }
  0x6d   :  { %v56_v18 = vpop.permute.xlu2 %55  }
  0x74   :  { %v8_v19 = vpop.permute.xlu0 %7   ;;  %v20_v20 = vpop.permute.xlu1 %19  }
  0x75   :  { %10 = vst.msk [vmem:[#allocation0] sm:$0x1] %vm9_vm1, %v8_v19   ;;  %v74_v21 = vpop.permute.xlu2 %73  }
  0x7c   :  { %v14_v22 = vpop.permute.xlu0 %13   ;;  %v26_v23 = vpop.permute.xlu1 %25  }
  0x7d   :  { %16 = vst.msk [vmem:[#allocation0] sm:$0x1] %vm15_vm2, %v14_v22   ;;  %v92_v24 = vpop.permute.xlu2 %91  }
  0x7e   :  { %22 = vst.msk [vmem:[#allocation0] sm:$0x1] %vm21_vm3, %v20_v20  }
  0x7f   :  { %28 = vst.msk [vmem:[#allocation0] sm:$0x1] %vm27_vm4, %v26_v23  }
  0x80   :  { %34 = vst.msk [vmem:[#allocation0] sm:$0x1] %vm33_vm5, %v32_v16  }
  0x81   :  { %40 = vst.msk [vmem:[#allocation0] sm:$0x1] %vm39_vm6, %v38_v17  }
  0x84   :  { %v44_v25 = vpop.permute.xlu0 %43   ;;  %v50_v26 = vpop.permute.xlu1 %49  }
  0x85   :  { %46 = vst.msk [vmem:[#allocation0] sm:$0x1] %vm45_vm7, %v44_v25  }
  0x86   :  { %52 = vst.msk [vmem:[#allocation0] sm:$0x1] %vm51_vm8, %v50_v26  }
  0x87   :  { %58 = vst.msk [vmem:[#allocation0] sm:$0x1] %vm57_vm9, %v56_v18  }
  0x8c   :  { %v62_v27 = vpop.permute.xlu0 %61   ;;  %v68_v28 = vpop.permute.xlu1 %67  }
  0x8d   :  { %64 = vst.msk [vmem:[#allocation0] sm:$0x1] %vm63_vm10, %v62_v27  }
  0x8e   :  { %70 = vst.msk [vmem:[#allocation0] sm:$0x1] %vm69_vm11, %v68_v28  }
  0x8f   :  { %76 = vst.msk [vmem:[#allocation0] sm:$0x1] %vm75_vm12, %v74_v21  }
  0x94   :  { %v80_v29 = vpop.permute.xlu0 %79   ;;  %v86_v30 = vpop.permute.xlu1 %85  }
  0x95   :  { %82 = vst.msk [vmem:[#allocation0] sm:$0x1] %vm81_vm13, %v80_v29  }
  0x96   :  { %88 = vst.msk [vmem:[#allocation0] sm:$0x1] %vm87_vm14, %v86_v30  }
  0x97   :  { %94 = vst.msk [vmem:[#allocation0] sm:$0x1] %vm93_vm15, %v92_v24  }
  0x9e   :  { %v97_v31 = vld [vmem:[#allocation0] sm:$0x1] }
  0x9f   :  { %100 = vst [vmem:[%s208_s1] sm:$0x1] %v97_v31 }

// kernel: segfast_forward.50
= control target key start
LH: loop header
LB: loop body
LE: loop exit
PB: predicated region body
PF: predicated region fallthrough
CT: control target
= control target key end

     0   :  { %s880_s1 = inlined_call_operand.vmem [shape: bf16[512,128], index: 1, kind: input, shape index: {}]   ;;  %s881_s2 = inlined_call_operand.vmem [shape: f32[1,128], index: 2, kind: input, shape index: {}]   ;;  %s882_s0 = inlined_call_operand.vmem [shape: bf16[1,16,512], index: 0, kind: input, shape index: {}]   ;;  %s883_s3 = inlined_call_operand.vmem [shape: bf16[128,128], index: 3, kind: input, shape index: {}]   ;;  %s884_s4 = inlined_call_operand.vmem [shape: f32[1,128], index: 4, kind: input, shape index: {}]   ;;  %s885_s5 = inlined_call_operand.vmem [shape: f32[16,128], index: 5, kind: output, shape index: {0}]   ;;  %s886_s6 = inlined_call_operand.vmem [shape: f32[16,128], index: 6, kind: output, shape index: {1}]  }
   0x1   :  { %v648_v0 = vld [vmem:[%s880_s1 + $0x38] sm:$0xff]  ;;  %v647_v4 = vld [vmem:[%s880_s1 + $0x30] sm:$0xff]  ;;  %v646_v8 = vld [vmem:[%s880_s1 + $0x28] sm:$0xff] }
   0x2   :  { %v656_v1 = vld [vmem:[%s880_s1 + $0x78] sm:$0xff]  ;;  %306 = vmatpush.bf16.msra.mxu0 %v648_v0  ;;  %v655_v5 = vld [vmem:[%s880_s1 + $0x70] sm:$0xff]  ;;  %v654_v9 = vld [vmem:[%s880_s1 + $0x68] sm:$0xff] }
   0x3   :  { %v664_v2 = vld [vmem:[%s880_s1 + $0xb8] sm:$0xff]  ;;  %320 = vmatpush.bf16.msra.mxu1 %v656_v1  ;;  %v663_v6 = vld [vmem:[%s880_s1 + $0xb0] sm:$0xff]  ;;  %v662_v10 = vld [vmem:[%s880_s1 + $0xa8] sm:$0xff] }
   0x4   :  { %v672_v3 = vld [vmem:[%s880_s1 + $0xf8] sm:$0xff]  ;;  %334 = vmatpush.bf16.msra.mxu2 %v664_v2  ;;  %v671_v7 = vld [vmem:[%s880_s1 + $0xf0] sm:$0xff]  ;;  %v670_v11 = vld [vmem:[%s880_s1 + $0xe8] sm:$0xff] }
   0x5   :  { %348 = vmatpush.bf16.msra.mxu3 %v672_v3  ;;  %v645_v12 = vld [vmem:[%s880_s1 + $0x20] sm:$0xff]  ;;  %v644_v16 = vld [vmem:[%s880_s1 + $0x18] sm:$0xff]  ;;  %v643_v20 = vld [vmem:[%s880_s1 + $0x10] sm:$0xff] }
   0x6   :  { %307 = vmatpush.bf16.msra.mxu0 %v647_v4  ;;  %v653_v13 = vld [vmem:[%s880_s1 + $0x60] sm:$0xff]  ;;  %v652_v17 = vld [vmem:[%s880_s1 + $0x58] sm:$0xff]  ;;  %v651_v21 = vld [vmem:[%s880_s1 + $0x50] sm:$0xff] }
   0x7   :  { %321 = vmatpush.bf16.msra.mxu1 %v655_v5  ;;  %v661_v14 = vld [vmem:[%s880_s1 + $0xa0] sm:$0xff]  ;;  %v660_v18 = vld [vmem:[%s880_s1 + $0x98] sm:$0xff]  ;;  %v659_v22 = vld [vmem:[%s880_s1 + $0x90] sm:$0xff] }
   0x8   :  { %335 = vmatpush.bf16.msra.mxu2 %v663_v6  ;;  %v669_v15 = vld [vmem:[%s880_s1 + $0xe0] sm:$0xff]  ;;  %v668_v19 = vld [vmem:[%s880_s1 + $0xd8] sm:$0xff]  ;;  %v667_v23 = vld [vmem:[%s880_s1 + $0xd0] sm:$0xff] }
   0x9   :  { %349 = vmatpush.bf16.msra.mxu3 %v671_v7  ;;  %v642_v24 = vld [vmem:[%s880_s1 + $0x8] sm:$0xff]  ;;  %v641_v28 = vld [vmem:[%s880_s1] sm:$0xff]  ;;  %v639_v33 = vld [vmem:[%s882_s0 + $0xc] sm:$0xf0] }
   0xa   :  { %308 = vmatpush.bf16.msra.mxu0 %v646_v8  ;;  %v650_v25 = vld [vmem:[%s880_s1 + $0x48] sm:$0xff]  ;;  %v649_v29 = vld [vmem:[%s880_s1 + $0x40] sm:$0xff]  ;;  %v465_v35 = vld [vmem:[%s882_s0 + $0x10] sm:$0xf0] }
   0xb   :  { %322 = vmatpush.bf16.msra.mxu1 %v654_v9  ;;  %v658_v26 = vld [vmem:[%s880_s1 + $0x88] sm:$0xff]  ;;  %v657_v30 = vld [vmem:[%s880_s1 + $0x80] sm:$0xff]  ;;  %v640_v37 = vld [vmem:[%s882_s0 + $0x14] sm:$0xf0] }
   0xc   :  { %336 = vmatpush.bf16.msra.mxu2 %v662_v10  ;;  %v666_v27 = vld [vmem:[%s880_s1 + $0xc8] sm:$0xff]  ;;  %v665_v31 = vld [vmem:[%s880_s1 + $0xc0] sm:$0xff]  ;;  %v473_v39 = vld [vmem:[%s882_s0 + $0x18] sm:$0xf0] }
   0xd   :  { %350 = vmatpush.bf16.msra.mxu3 %v670_v11  ;;  %v463_v32 = vld [vmem:[%s882_s0] sm:$0xf]  ;;  %v637_v34 = vld [vmem:[%s882_s0 + $0x4] sm:$0xf]  ;;  %v471_v36 = vld [vmem:[%s882_s0 + $0x8] sm:$0xf] }
   0xe   :  { %309 = vmatpush.bf16.msra.mxu0 %v645_v12  ;;  %v638_v38 = vld [vmem:[%s882_s0 + $0xc] sm:$0xf]  ;;  %v680_v40 = vld [vmem:[%s883_s3 + $0x38] sm:$0xff]  ;;  %v464_v41 = vor.u32 %v639_v33, %v463_v32  ;;  %v468_v42 = vor.u32 %v637_v34, %v465_v35  ;;  %v472_v43 = vor.u32 %v640_v37, %v471_v36  ;;  %v679_v45 = vld [vmem:[%s883_s3 + $0x30] sm:$0xff] }
   0xf   :  { %323 = vmatpush.bf16.msra.mxu1 %v653_v13  ;;  %v476_v44 = vor.u32 %v638_v38, %v473_v39  ;;  %v678_v46 = vld [vmem:[%s883_s3 + $0x28] sm:$0xff]  ;;  %v677_v47 = vld [vmem:[%s883_s3 + $0x20] sm:$0xff]  ;;  %v676_v48 = vld [vmem:[%s883_s3 + $0x18] sm:$0xff] }
  0x10   :  { %337 = vmatpush.bf16.msra.mxu2 %v661_v14  ;;  %v675_v49 = vld [vmem:[%s883_s3 + $0x10] sm:$0xff]  ;;  %v674_v50 = vld [vmem:[%s883_s3 + $0x8] sm:$0xff]  ;;  %v673_v51 = vld [vmem:[%s883_s3] sm:$0xff] }
  0x11   :  { %351 = vmatpush.bf16.msra.mxu3 %v669_v15  ;;  %v681_v52 = vld [vmem:[%s881_s2] ss:$0 sm:$0xff] }
  0x12   :  { %310 = vmatpush.bf16.msra.mxu0 %v644_v16  ;;  %v682_v8 = vld [vmem:[%s884_s4] ss:$0 sm:$0xff] }
  0x13   :  { %324 = vmatpush.bf16.msra.mxu1 %v652_v17 }
  0x14   :  { %338 = vmatpush.bf16.msra.mxu2 %v660_v18 }
  0x15   :  { %352 = vmatpush.bf16.msra.mxu3 %v668_v19 }
  0x16   :  { %311 = vmatpush.bf16.msra.mxu0 %v643_v20 }
  0x17   :  { %325 = vmatpush.bf16.msra.mxu1 %v651_v21 }
  0x18   :  { %339 = vmatpush.bf16.msra.mxu2 %v659_v22 }
  0x19   :  { %353 = vmatpush.bf16.msra.mxu3 %v667_v23 }
  0x1a   :  { %312 = vmatpush.bf16.msra.mxu0 %v642_v24 }
  0x1b   :  { %326 = vmatpush.bf16.msra.mxu1 %v650_v25 }
  0x1c   :  { %340 = vmatpush.bf16.msra.mxu2 %v658_v26 }
  0x1d   :  { %354 = vmatpush.bf16.msra.mxu3 %v666_v27 }
  0x1e   :  { %313 = vmatpush.bf16.msra.mxu0 %v641_v28 }
  0x1f   :  { %327 = vmatpush.bf16.msra.mxu1 %v649_v29 }
  0x20   :  { %341 = vmatpush.bf16.msra.mxu2 %v657_v30 }
  0x21   :  { %355 = vmatpush.bf16.msra.mxu3 %v665_v31  ;;  %314 = vmatmul.bf16.vlgmr.msra.gmra.mxu0 %v464_v41 }
  0x22   :  { %435 = vmatpush.bf16.msrb.mxu0 %v680_v40  ;;  %328 = vmatmul.bf16.vlgmr.msra.gmra.mxu1 %v468_v42 }
  0x23   :  { %342 = vmatmul.bf16.vlgmr.msra.gmra.mxu2 %v472_v43 }
  0x24   :  { %356 = vmatmul.bf16.vlgmr.msra.gmra.mxu3 %v476_v44 }
  0x26   :  { %436 = vmatpush.bf16.msrb.mxu0 %v679_v45 }
  0x2a   :  { %437 = vmatpush.bf16.msrb.mxu0 %v678_v46 }
  0x2e   :  { %438 = vmatpush.bf16.msrb.mxu0 %v677_v47 }
  0x32   :  { %439 = vmatpush.bf16.msrb.mxu0 %v676_v48 }
  0x36   :  { %440 = vmatpush.bf16.msrb.mxu0 %v675_v49 }
  0x3a   :  { %441 = vmatpush.bf16.msrb.mxu0 %v674_v50 }
  0x3e   :  { %442 = vmatpush.bf16.msrb.mxu0 %v673_v51 }
  0x9e   :  { %v315_v53 = vpop.f32.mrf.mxu0 }
  0x9f   :  { %v316_v54 = vadd.f32 %v681_v52, %v315_v53  ;;  %v329_v55 = vpop.f32.mrf.mxu1 }
  0xa1   :  { %v330_v56 = vadd.f32 %v329_v55, %v316_v54 }
  0xa6   :  { %v343_v57 = vpop.f32.mrf.mxu2  ;;  %v317_v60 = vpop.f32.mrf.mxu0 }
  0xa7   :  { %v357_v58 = vpop.f32.mrf.mxu3  ;;  %v344_v59 = vadd.f32 %v343_v57, %v330_v56  ;;  %v318_v62 = vadd.f32 %v681_v52, %v317_v60  ;;  %v331_v0 = vpop.f32.mrf.mxu1 }
  0xa9   :  { %v358_v61 = vadd.f32 %v357_v58, %v344_v59  ;;  %v332_v1 = vadd.f32 %v331_v0, %v318_v62 }
  0xab   :  { %v362_v63 = vmax.f32 %v358_v61, 0.0 }
  0xad   :  { %364 = vst [vmem:[%s885_s5] sm:$0xff] %v362_v63 }
  0xae   :  { %v345_v2 = vpop.f32.mrf.mxu2 }
  0xaf   :  { %v346_v3 = vadd.f32 %v345_v2, %v332_v1  ;;  %v359_v4 = vpop.f32.mrf.mxu3 }
  0xb1   :  { %v360_v5 = vadd.f32 %v359_v4, %v346_v3 }
  0xb3   :  { %v363_v6 = vmax.f32 %v360_v5, 0.0 }
  0xb5   :  { %365 = vst [vmem:[%s885_s5 + $0x8] sm:$0xff] %v363_v6  ;;  %v366_v7 = vpack.c.bf16 %v363_v6, %v362_v63 }
  0xb7   :  { %443 = vmatmul.bf16.vlgmr.msrb.gmra.mxu0 %v366_v7 }
 0x134   :  { %v444_v9 = vpop.f32.mrf.mxu0 }
 0x135   :  { %v445_v10 = vadd.f32 %v682_v8, %v444_v9 }
 0x137   :  { %v449_v11 = vmax.f32 %v445_v10, 0.0 }
 0x139   :  { %451 = vst [vmem:[%s886_s6] sm:$0xff] %v449_v11 }
 0x13c   :  { %v446_v12 = vpop.f32.mrf.mxu0 }
 0x13d   :  { %v447_v13 = vadd.f32 %v682_v8, %v446_v12 }
 0x13f   :  { %v450_v14 = vmax.f32 %v447_v13, 0.0 }
 0x141   :  { %452 = vst [vmem:[%s886_s6 + $0x8] sm:$0xff] %v450_v14 }

// kernel: segfast_forward.54
= control target key start
LH: loop header
LB: loop body
LE: loop exit
PB: predicated region body
PF: predicated region fallthrough
CT: control target
= control target key end

     0   :  { %s101_s0 = inlined_call_operand.vmem [shape: f32[2,16,128], index: 0, kind: input, shape index: {}]   ;;  %s102_s1 = inlined_call_operand.vmem [shape: f32[2,1,128], index: 1, kind: input, shape index: {}]   ;;  %s103_s2 = inlined_call_operand.vmem [shape: f32[1,128], index: 2, kind: input, shape index: {}]   ;;  %s104_s3 = inlined_call_operand.vmem [shape: f32[16,128], index: 3, kind: output, shape index: {}]  }
   0x1   :  { %v14_v0 = vld [vmem:[%s101_s0] sm:$0xff]  ;;  %v48_v2 = vld [vmem:[%s101_s0 + $0x10] sm:$0xff]  ;;  %v15_v5 = vld [vmem:[%s101_s0 + $0x8] sm:$0xff] }
   0x2   :  { %v51_v1 = vld [vmem:[%s102_s1] ss:$0 sm:$0xff]  ;;  %v52_v3 = vld [vmem:[%s102_s1 + $0x1] ss:$0 sm:$0xff]  ;;  %v49_v9 = vld [vmem:[%s101_s0 + $0x18] sm:$0xff] }
   0x3   :  { %v20_v4 = vmul.f32 %v51_v1, %v14_v0  ;;  %v30_v6 = vmul.f32 %v52_v3, %v48_v2  ;;  %v53_v7 = vld [vmem:[%s103_s2] ss:$0 sm:$0xff]  ;;  %v21_v8 = vmul.f32 %v51_v1, %v15_v5  ;;  %v31_v10 = vmul.f32 %v52_v3, %v49_v9 }
   0x5   :  { %v32_v11 = vadd.f32 %v30_v6, %v20_v4  ;;  %v33_v12 = vadd.f32 %v31_v10, %v21_v8 }
   0x7   :  { %v38_v13 = vadd.f32 %v53_v7, %v32_v11  ;;  %v39_v14 = vadd.f32 %v53_v7, %v33_v12 }
   0x9   :  { %v40_v15 = vmax.f32 %v38_v13, 0.0  ;;  %v41_v16 = vmax.f32 %v39_v14, 0.0 }
   0xb   :  { %42 = vst [vmem:[%s104_s3] sm:$0xff] %v40_v15 }
   0xc   :  { %43 = vst [vmem:[%s104_s3 + $0x8] sm:$0xff] %v41_v16 }

// kernel: tile.168
= control target key start
LH: loop header
LB: loop body
LE: loop exit
PB: predicated region body
PF: predicated region fallthrough
CT: control target
= control target key end

     0   :  { %s40_s0 = inlined_call_operand.vmem [shape: f32[4], index: 0, kind: input, shape index: {}]   ;;  %s41_s1 = inlined_call_operand.vmem [shape: f32[32,4], index: 1, kind: output, shape index: {}]  }
   0x1   :  { %v4_v0 = vld [vmem:[%s40_s0] ss:$0 sm:$0xff] }
   0x2   :  { %5 = vst [vmem:[%s41_s1] sm:$0xff] %v4_v0 }
   0x3   :  { %12 = vst [vmem:[%s41_s1 + $0x8] sm:$0xff] %v4_v0 }
   0x4   :  { %13 = vst [vmem:[%s41_s1 + $0x10] sm:$0xff] %v4_v0 }
   0x5   :  { %14 = vst [vmem:[%s41_s1 + $0x18] sm:$0xff] %v4_v0 }

// kernel: tile.169
= control target key start
LH: loop header
LB: loop body
LE: loop exit
PB: predicated region body
PF: predicated region fallthrough
CT: control target
= control target key end

     0   :  { %s259_s10 = smov 124   ;;  %s260_s11 = smov 116   ;;  %vm3_vm0 = vcmask 31744   ;;  %vm9_vm1 = vcmask 1048544   ;;  %vm15_vm2 = vcmask 1015744   ;;  %vm21_vm3 = vcmask 982944   ;;  %s399_s0 = inlined_call_operand.vmem [shape: f32[32,4], index: 0, kind: input, shape index: {}]   ;;  %s400_s1 = inlined_call_operand.vmem [shape: f32[1,128], index: 1, kind: output, shape index: {}]  }
   0x1   :  { %v197_v0 = vld [vmem:[%s399_s0 + $0x1f] sm:$0x1]   ;;  %v199_v1 = vld [vmem:[%s399_s0 + $0x1d] sm:$0x1]   ;;  %v201_v2 = vld [vmem:[%s399_s0 + $0x1b] sm:$0x1]  }
   0x2   :  { %7 = vrot.lane.b32.xlu0 %v197_v0, %s259_s10  ;;  %19 = vrot.lane.b32.xlu1 %v199_v1, %s260_s11  ;;  %s261_s14 = smov 108   ;;  %v198_v3 = vld [vmem:[%s399_s0 + $0x1e] sm:$0x1]   ;;  %v200_v4 = vld [vmem:[%s399_s0 + $0x1c] sm:$0x1]   ;;  %s262_s19 = smov 120  }
   0x3   :  { %31 = vrot.lane.b32.xlu2 %v201_v2, %s261_s14  ;;  %s263_s20 = smov 112   ;;  %v202_v5 = vld [vmem:[%s399_s0 + $0x1a] sm:$0x1]   ;;  %s264_s23 = smov 104   ;;  %v203_v6 = vld [vmem:[%s399_s0 + $0x19] sm:$0x1]  }
   0x4   :  { %v204_v7 = vld [vmem:[%s399_s0 + $0x18] sm:$0x1]   ;;  %s265_s28 = smov 100   ;;  %s266_s29 = smov 96   ;;  %v205_v8 = vld [vmem:[%s399_s0 + $0x17] sm:$0x1]  }
   0x5   :  { %s267_s3 = smov 92   ;;  %v206_v9 = vld [vmem:[%s399_s0 + $0x16] sm:$0x1]   ;;  %v207_v10 = vld [vmem:[%s399_s0 + $0x15] sm:$0x1]   ;;  %s268_s8 = smov 88  }
   0x6   :  { %s269_s9 = smov 84   ;;  %v208_v11 = vld [vmem:[%s399_s0 + $0x14] sm:$0x1]   ;;  %s270_s12 = smov 80   ;;  %v209_v12 = vld [vmem:[%s399_s0 + $0x13] sm:$0x1]  }
   0x7   :  { %v210_v13 = vld [vmem:[%s399_s0 + $0x12] sm:$0x1]   ;;  %s271_s17 = smov 76   ;;  %s272_s18 = smov 72   ;;  %v211_v14 = vld [vmem:[%s399_s0 + $0x11] sm:$0x1]  }
   0x8   :  { %s273_s21 = smov 68   ;;  %v212_v15 = vld [vmem:[%s399_s0 + $0x10] sm:$0x1]   ;;  %v213_v16 = vld [vmem:[%s399_s0 + $0xf] sm:$0x1]   ;;  %s274_s26 = smov 64  }
   0x9   :  { %s275_s27 = smov 60   ;;  %v214_v17 = vld [vmem:[%s399_s0 + $0xe] sm:$0x1]   ;;  %s276_s30 = smov 56   ;;  %v215_v18 = vld [vmem:[%s399_s0 + $0xd] sm:$0x1]  }
   0xa   :  { %13 = vrot.lane.b32.xlu0 %v198_v3, %s262_s19  ;;  %25 = vrot.lane.b32.xlu1 %v200_v4, %s263_s20  ;;  %v216_v19 = vld [vmem:[%s399_s0 + $0xc] sm:$0x1]   ;;  %s277_s6 = smov 52   ;;  %s278_s7 = smov 48   ;;  %v217_v20 = vld [vmem:[%s399_s0 + $0xb] sm:$0x1]  }
   0xb   :  { %37 = vrot.lane.b32.xlu2 %v202_v5, %s264_s23  ;;  %s279_s10 = smov 44   ;;  %v218_v21 = vld [vmem:[%s399_s0 + $0xa] sm:$0x1]   ;;  %v219_v22 = vld [vmem:[%s399_s0 + $0x9] sm:$0x1]   ;;  %s280_s15 = smov 40  }
   0xc   :  { %s281_s16 = smov 36   ;;  %v220_v23 = vld [vmem:[%s399_s0 + $0x8] sm:$0x1]   ;;  %s282_s19 = smov 32   ;;  %v221_v24 = vld [vmem:[%s399_s0 + $0x7] sm:$0x1]  }
   0xd   :  { %v222_v25 = vld [vmem:[%s399_s0 + $0x6] sm:$0x1]   ;;  %s283_s24 = smov 28   ;;  %s284_s25 = smov 24   ;;  %v223_v26 = vld [vmem:[%s399_s0 + $0x5] sm:$0x1]  }
   0xe   :  { %v224_v27 = vld [vmem:[%s399_s0 + $0x4] sm:$0x1]   ;;  %v225_v28 = vld [vmem:[%s399_s0 + $0x3] sm:$0x1]   ;;  %s286_s4 = smov 16   ;;  %s287_s5 = smov 12  }
   0xf   :  { %v226_v29 = vld [vmem:[%s399_s0 + $0x2] sm:$0x1]   ;;  %v227_v30 = vld [vmem:[%s399_s0 + $0x1] sm:$0x1]   ;;  %s289_s11 = smov 4   ;;  %vm27_vm4 = vcmask 950144  }
  0x10   :  { %v2_v31 = vld [vmem:[%s399_s0] sm:$0x1]   ;;  %vm33_vm5 = vcmask 917344   ;;  %vm39_vm6 = vcmask 884544   ;;  %vm45_vm7 = vcmask 851744   ;;  %vm51_vm8 = vcmask 818944  }
  0x11   :  { %4 = vst.msk [vmem:[#allocation0] sm:$0x1] %vm3_vm0, %v2_v31   ;;  %vm57_vm9 = vcmask 786144   ;;  %vm63_vm10 = vcmask 753344   ;;  %vm69_vm11 = vcmask 720544   ;;  %vm75_vm12 = vcmask 687744  }
  0x12   :  { %43 = vrot.lane.b32.xlu0 %v203_v6, %s265_s28  ;;  %49 = vrot.lane.b32.xlu1 %v204_v7, %s266_s29  ;;  %s285_s28 = smov 20   ;;  %vm81_vm13 = vcmask 654944   ;;  %vm87_vm14 = vcmask 622144   ;;  %vm93_vm15 = vcmask 589344   ;;  %vm99_vm0 = vcmask 556544  }
  0x13   :  { %55 = vrot.lane.b32.xlu2 %v205_v8, %s267_s3 }
  0x1a   :  { %61 = vrot.lane.b32.xlu0 %v206_v9, %s268_s8  ;;  %67 = vrot.lane.b32.xlu1 %v207_v10, %s269_s9  ;;  %s288_s8 = smov 8  }
  0x1b   :  { %73 = vrot.lane.b32.xlu2 %v208_v11, %s270_s12 }
  0x22   :  { %79 = vrot.lane.b32.xlu0 %v209_v12, %s271_s17  ;;  %85 = vrot.lane.b32.xlu1 %v210_v13, %s272_s18 }
  0x23   :  { %91 = vrot.lane.b32.xlu2 %v211_v14, %s273_s21 }
  0x2a   :  { %97 = vrot.lane.b32.xlu0 %v212_v15, %s274_s26  ;;  %103 = vrot.lane.b32.xlu1 %v213_v16, %s275_s27 }
  0x2b   :  { %109 = vrot.lane.b32.xlu2 %v214_v17, %s276_s30 }
  0x32   :  { %115 = vrot.lane.b32.xlu0 %v215_v18, %s277_s6  ;;  %121 = vrot.lane.b32.xlu1 %v216_v19, %s278_s7 }
  0x33   :  { %127 = vrot.lane.b32.xlu2 %v217_v20, %s279_s10 }
  0x3a   :  { %133 = vrot.lane.b32.xlu0 %v218_v21, %s280_s15  ;;  %139 = vrot.lane.b32.xlu1 %v219_v22, %s281_s16 }
  0x3b   :  { %145 = vrot.lane.b32.xlu2 %v220_v23, %s282_s19 }
  0x42   :  { %151 = vrot.lane.b32.xlu0 %v221_v24, %s283_s24  ;;  %157 = vrot.lane.b32.xlu1 %v222_v25, %s284_s25 }
  0x43   :  { %163 = vrot.lane.b32.xlu2 %v223_v26, %s285_s28 }
  0x4a   :  { %169 = vrot.lane.b32.xlu0 %v224_v27, %s286_s4  ;;  %175 = vrot.lane.b32.xlu1 %v225_v28, %s287_s5 }
  0x4b   :  { %181 = vrot.lane.b32.xlu2 %v226_v29, %s288_s8 }
  0x52   :  { %187 = vrot.lane.b32.xlu0 %v227_v30, %s289_s11 }
  0x5d   :  { %v32_v32 = vpop.permute.xlu2 %31  }
  0x65   :  { %v38_v33 = vpop.permute.xlu2 %37  }
  0x6d   :  { %v56_v34 = vpop.permute.xlu2 %55  }
  0x74   :  { %v8_v35 = vpop.permute.xlu0 %7   ;;  %v20_v36 = vpop.permute.xlu1 %19  }
  0x75   :  { %10 = vst.msk [vmem:[#allocation0] sm:$0x1] %vm9_vm1, %v8_v35   ;;  %v74_v37 = vpop.permute.xlu2 %73   ;;  %vm105_vm1 = vcmask 523744  }
  0x7c   :  { %v14_v38 = vpop.permute.xlu0 %13   ;;  %v26_v39 = vpop.permute.xlu1 %25  }
  0x7d   :  { %16 = vst.msk [vmem:[#allocation0] sm:$0x1] %vm15_vm2, %v14_v38   ;;  %v92_v40 = vpop.permute.xlu2 %91   ;;  %vm111_vm2 = vcmask 490944  }
  0x7e   :  { %22 = vst.msk [vmem:[#allocation0] sm:$0x1] %vm21_vm3, %v20_v36   ;;  %vm117_vm3 = vcmask 458144  }
  0x7f   :  { %28 = vst.msk [vmem:[#allocation0] sm:$0x1] %vm27_vm4, %v26_v39   ;;  %vm123_vm4 = vcmask 425344  }
  0x80   :  { %34 = vst.msk [vmem:[#allocation0] sm:$0x1] %vm33_vm5, %v32_v32   ;;  %vm129_vm5 = vcmask 392544  }
  0x81   :  { %40 = vst.msk [vmem:[#allocation0] sm:$0x1] %vm39_vm6, %v38_v33   ;;  %vm135_vm6 = vcmask 359744  }
  0x84   :  { %v44_v41 = vpop.permute.xlu0 %43   ;;  %v50_v42 = vpop.permute.xlu1 %49  }
  0x85   :  { %46 = vst.msk [vmem:[#allocation0] sm:$0x1] %vm45_vm7, %v44_v41   ;;  %v110_v43 = vpop.permute.xlu2 %109   ;;  %vm141_vm7 = vcmask 326944  }
  0x86   :  { %52 = vst.msk [vmem:[#allocation0] sm:$0x1] %vm51_vm8, %v50_v42   ;;  %vm147_vm8 = vcmask 294144  }
  0x87   :  { %58 = vst.msk [vmem:[#allocation0] sm:$0x1] %vm57_vm9, %v56_v34   ;;  %vm153_vm9 = vcmask 261344  }
  0x8c   :  { %v62_v44 = vpop.permute.xlu0 %61   ;;  %v68_v45 = vpop.permute.xlu1 %67  }
  0x8d   :  { %64 = vst.msk [vmem:[#allocation0] sm:$0x1] %vm63_vm10, %v62_v44   ;;  %v128_v46 = vpop.permute.xlu2 %127   ;;  %vm159_vm10 = vcmask 228544  }
  0x8e   :  { %70 = vst.msk [vmem:[#allocation0] sm:$0x1] %vm69_vm11, %v68_v45   ;;  %vm165_vm11 = vcmask 195744  }
  0x8f   :  { %76 = vst.msk [vmem:[#allocation0] sm:$0x1] %vm75_vm12, %v74_v37   ;;  %vm171_vm12 = vcmask 162944  }
  0x94   :  { %v80_v47 = vpop.permute.xlu0 %79   ;;  %v86_v48 = vpop.permute.xlu1 %85  }
  0x95   :  { %82 = vst.msk [vmem:[#allocation0] sm:$0x1] %vm81_vm13, %v80_v47   ;;  %v146_v49 = vpop.permute.xlu2 %145   ;;  %vm177_vm13 = vcmask 130144  }
  0x96   :  { %88 = vst.msk [vmem:[#allocation0] sm:$0x1] %vm87_vm14, %v86_v48   ;;  %vm183_vm14 = vcmask 97344  }
  0x97   :  { %94 = vst.msk [vmem:[#allocation0] sm:$0x1] %vm93_vm15, %v92_v40   ;;  %vm189_vm15 = vcmask 64544  }
  0x9c   :  { %v98_v50 = vpop.permute.xlu0 %97   ;;  %v104_v51 = vpop.permute.xlu1 %103  }
  0x9d   :  { %100 = vst.msk [vmem:[#allocation0] sm:$0x1] %vm99_vm0, %v98_v50   ;;  %v164_v52 = vpop.permute.xlu2 %163  }
  0x9e   :  { %106 = vst.msk [vmem:[#allocation0] sm:$0x1] %vm105_vm1, %v104_v51  }
  0x9f   :  { %112 = vst.msk [vmem:[#allocation0] sm:$0x1] %vm111_vm2, %v110_v43  }
  0xa4   :  { %v116_v53 = vpop.permute.xlu0 %115   ;;  %v122_v54 = vpop.permute.xlu1 %121  }
  0xa5   :  { %118 = vst.msk [vmem:[#allocation0] sm:$0x1] %vm117_vm3, %v116_v53   ;;  %v182_v55 = vpop.permute.xlu2 %181  }
  0xa6   :  { %124 = vst.msk [vmem:[#allocation0] sm:$0x1] %vm123_vm4, %v122_v54  }
  0xa7   :  { %130 = vst.msk [vmem:[#allocation0] sm:$0x1] %vm129_vm5, %v128_v46  }
  0xac   :  { %v134_v56 = vpop.permute.xlu0 %133   ;;  %v140_v57 = vpop.permute.xlu1 %139  }
  0xad   :  { %136 = vst.msk [vmem:[#allocation0] sm:$0x1] %vm135_vm6, %v134_v56  }
  0xae   :  { %142 = vst.msk [vmem:[#allocation0] sm:$0x1] %vm141_vm7, %v140_v57  }
  0xaf   :  { %148 = vst.msk [vmem:[#allocation0] sm:$0x1] %vm147_vm8, %v146_v49  }
  0xb4   :  { %v152_v58 = vpop.permute.xlu0 %151   ;;  %v158_v59 = vpop.permute.xlu1 %157  }
  0xb5   :  { %154 = vst.msk [vmem:[#allocation0] sm:$0x1] %vm153_vm9, %v152_v58  }
  0xb6   :  { %160 = vst.msk [vmem:[#allocation0] sm:$0x1] %vm159_vm10, %v158_v59  }
  0xb7   :  { %166 = vst.msk [vmem:[#allocation0] sm:$0x1] %vm165_vm11, %v164_v52  }
  0xbc   :  { %v170_v60 = vpop.permute.xlu0 %169   ;;  %v176_v61 = vpop.permute.xlu1 %175  }
  0xbd   :  { %172 = vst.msk [vmem:[#allocation0] sm:$0x1] %vm171_vm12, %v170_v60  }
  0xbe   :  { %178 = vst.msk [vmem:[#allocation0] sm:$0x1] %vm177_vm13, %v176_v61  }
  0xbf   :  { %184 = vst.msk [vmem:[#allocation0] sm:$0x1] %vm183_vm14, %v182_v55  }
  0xc4   :  { %v188_v62 = vpop.permute.xlu0 %187  }
  0xc5   :  { %190 = vst.msk [vmem:[#allocation0] sm:$0x1] %vm189_vm15, %v188_v62  }
  0xcc   :  { %v193_v63 = vld [vmem:[#allocation0] sm:$0x1] }
  0xcd   :  { %196 = vst [vmem:[%s400_s1] sm:$0x1] %v193_v63 }

// kernel: segfast_forward.66
= control target key start
LH: loop header
LB: loop body
LE: loop exit
PB: predicated region body
PF: predicated region fallthrough
CT: control target
= control target key end

     0   :  { %s212_s1 = inlined_call_operand.vmem [shape: bf16[128,128], index: 1, kind: input, shape index: {}]   ;;  %s213_s2 = inlined_call_operand.vmem [shape: f32[1,128], index: 2, kind: input, shape index: {}]   ;;  %s214_s0 = inlined_call_operand.vmem [shape: bf16[16,128], index: 0, kind: input, shape index: {}]   ;;  %s215_s3 = inlined_call_operand.vmem [shape: f32[16,128], index: 3, kind: output, shape index: {}]  }
   0x1   :  { %v154_v0 = vld [vmem:[%s212_s1 + $0x38] sm:$0xff]  ;;  %v153_v1 = vld [vmem:[%s212_s1 + $0x30] sm:$0xff]  ;;  %v152_v2 = vld [vmem:[%s212_s1 + $0x28] sm:$0xff] }
   0x2   :  { %90 = vmatpush.bf16.msra.mxu0 %v154_v0  ;;  %v151_v3 = vld [vmem:[%s212_s1 + $0x20] sm:$0xff]  ;;  %v150_v4 = vld [vmem:[%s212_s1 + $0x18] sm:$0xff]  ;;  %v149_v5 = vld [vmem:[%s212_s1 + $0x10] sm:$0xff] }
   0x3   :  { %v148_v6 = vld [vmem:[%s212_s1 + $0x8] sm:$0xff]  ;;  %v147_v7 = vld [vmem:[%s212_s1] sm:$0xff] }
   0x4   :  { %v146_v8 = vld [vmem:[%s214_s0] sm:$0xff] }
   0x5   :  { %v155_v9 = vld [vmem:[%s213_s2] ss:$0 sm:$0xff] }
   0x6   :  { %91 = vmatpush.bf16.msra.mxu0 %v153_v1 }
   0xa   :  { %92 = vmatpush.bf16.msra.mxu0 %v152_v2 }
   0xe   :  { %93 = vmatpush.bf16.msra.mxu0 %v151_v3 }
  0x12   :  { %94 = vmatpush.bf16.msra.mxu0 %v150_v4 }
  0x16   :  { %95 = vmatpush.bf16.msra.mxu0 %v149_v5 }
  0x1a   :  { %96 = vmatpush.bf16.msra.mxu0 %v148_v6 }
  0x1e   :  { %97 = vmatpush.bf16.msra.mxu0 %v147_v7 }
  0x21   :  { %98 = vmatmul.bf16.vlgmr.msra.gmra.mxu0 %v146_v8 }
  0x9e   :  { %v99_v10 = vpop.f32.mrf.mxu0 }
  0x9f   :  { %v100_v11 = vadd.f32 %v155_v9, %v99_v10 }
  0xa1   :  { %104 = vst [vmem:[%s215_s3] sm:$0xff] %v100_v11 }
  0xa6   :  { %v101_v12 = vpop.f32.mrf.mxu0 }
  0xa7   :  { %v102_v13 = vadd.f32 %v155_v9, %v101_v12 }
  0xa9   :  { %105 = vst [vmem:[%s215_s3 + $0x8] sm:$0xff] %v102_v13 }

// kernel: segfast_forward.67
= control target key start
LH: loop header
LB: loop body
LE: loop exit
PB: predicated region body
PF: predicated region fallthrough
CT: control target
= control target key end

     0   :  { %s136_s0 = inlined_call_operand.vmem [shape: f32[16,128], index: 0, kind: input, shape index: {}]   ;;  %s137_s1 = inlined_call_operand.vmem [shape: f32[16,128], index: 1, kind: input, shape index: {}]   ;;  %s138_s2 = inlined_call_operand.vmem [shape: f32[16,128], index: 2, kind: input, shape index: {}]   ;;  %s139_s3 = inlined_call_operand.vmem [shape: f32[16,128], index: 3, kind: input, shape index: {}]   ;;  %s140_s5 = inlined_call_operand.vmem [shape: f32[16,128], index: 5, kind: input, shape index: {}]   ;;  %s141_s4 = inlined_call_operand.vmem [shape: f32[16,128], index: 4, kind: input, shape index: {}]   ;;  %s142_s6 = inlined_call_operand.vmem [shape: f32[16,128], index: 6, kind: output, shape index: {}]  }
   0x1   :  { %v23_v0 = vld [vmem:[%s140_s5] sm:$0xff]  ;;  %v24_v7 = vld [vmem:[%s140_s5 + $0x8] sm:$0xff] }
   0x2   :  { %v25_v1 = vld [vmem:[%s136_s0] sm:$0xff]  ;;  %v26_v8 = vld [vmem:[%s136_s0 + $0x8] sm:$0xff] }
   0x3   :  { %v27_v2 = vld [vmem:[%s137_s1] sm:$0xff]  ;;  %v28_v9 = vld [vmem:[%s137_s1 + $0x8] sm:$0xff] }
   0x4   :  { %v29_v3 = vsub.f32 %v27_v2, %v25_v1  ;;  %v35_v4 = vld [vmem:[%s138_s2] sm:$0xff]  ;;  %v30_v11 = vsub.f32 %v28_v9, %v26_v8  ;;  %v36_v12 = vld [vmem:[%s138_s2 + $0x8] sm:$0xff] }
   0x5   :  { %v37_v5 = vld [vmem:[%s139_s3] sm:$0xff]  ;;  %v38_v13 = vld [vmem:[%s139_s3 + $0x8] sm:$0xff] }
   0x6   :  { %v39_v6 = vsub.f32 %v37_v5, %v35_v4  ;;  %v31_v10 = vmul.f32 %v29_v3, %v23_v0  ;;  %v40_v15 = vsub.f32 %v38_v13, %v36_v12  ;;  %v32_v17 = vmul.f32 %v30_v11, %v24_v7  ;;  %v45_v20 = vld [vmem:[%s141_s4] sm:$0xff]  ;;  %v46_v24 = vld [vmem:[%s141_s4 + $0x8] sm:$0xff] }
   0x8   :  { %v41_v14 = vmul.f32 %v39_v6, %v23_v0  ;;  %v33_v16 = vadd.f32 %v31_v10, %v25_v1  ;;  %v42_v19 = vmul.f32 %v40_v15, %v24_v7  ;;  %v34_v21 = vadd.f32 %v32_v17, %v26_v8 }
   0xa   :  { %v43_v18 = vadd.f32 %v41_v14, %v35_v4  ;;  %v44_v23 = vadd.f32 %v42_v19, %v36_v12 }
   0xc   :  { %v47_v22 = vsub.f32 %v43_v18, %v33_v16  ;;  %v48_v26 = vsub.f32 %v44_v23, %v34_v21 }
   0xe   :  { %v49_v25 = vmul.f32 %v47_v22, %v45_v20  ;;  %v50_v28 = vmul.f32 %v48_v26, %v46_v24 }
  0x10   :  { %v51_v27 = vadd.f32 %v49_v25, %v33_v16  ;;  %v52_v29 = vadd.f32 %v50_v28, %v34_v21 }
  0x12   :  { %53 = vst [vmem:[%s142_s6] sm:$0xff] %v51_v27 }
  0x13   :  { %54 = vst [vmem:[%s142_s6 + $0x8] sm:$0xff] %v52_v29 }

</bundles_post_ra>
